<compile_context>
chip_gen: v6e
topology: v6e:2x2x1
jax: 0.10.0
libtpu: 0.0.40
codegen_flags: <defaults>
</compile_context>

<pallas_src>
import functools

import jax
import jax.numpy as jnp
import numpy as np
from jax.experimental import pallas as pl
from jax.experimental.pallas import tpu as pltpu


_BN = 8      # samples per grid step (batch padded up to a multiple of this)
_KH = 5      # conv kernel size


def _round_up(x, m):
    return (x + m - 1) // m * m


# ---------------------------------------------------------------------------
# The single fused Pallas kernel (one grid step == one block of _BN samples)
# ---------------------------------------------------------------------------
def _lenet_fused_kernel(x1_ref, r1_ref, b1_ref, r2_ref, b2_ref,
                        w1_ref, fb1_ref, w2_ref, fb2_ref, w3_ref, fb3_ref,
                        o_ref, s1_ref, s2_ref, *, bn):
    f32 = jnp.float32

    # Hoisted loads: weights / biases are read exactly once per grid step.
    r1 = r1_ref[...]          # (160, 256) conv1 Toeplitz, K-concat over kernel rows
    r2 = r2_ref[...]          # (640, 256) conv2 Toeplitz, K-concat over kernel rows
    b1 = b1_ref[...]          # (1, 128)
    b2 = b2_ref[...]          # (1, 128)
    fb1 = fb1_ref[...]        # (1, 256)
    fb2 = fb2_ref[...]        # (1, 128)
    fb3 = fb3_ref[...]        # (1, ncp)

    # ---- stage 1: conv1 + bias + ReLU + 2x2 max pool (fused) --------------
    # x1_ref[0, 2*e+a] is a (7*bn, 160) slab; row = t*bn + n, K = 5 kernel
    # rows * 32 image cols.  s1 row layout: e*7*bn + t*bn + n  <-> h1 = 2t+e;
    # s1 col = pw1*6 + c.
    for e in (0, 1):                                  # pooled-row parity
        a0 = jnp.dot(x1_ref[0, 2 * e + 0], r1, preferred_element_type=f32)
        a1 = jnp.dot(x1_ref[0, 2 * e + 1], r1, preferred_element_type=f32)
        m = jnp.maximum(a0, a1)                       # max over pool rows (7*bn, 256)
        pooled = jnp.maximum(m[:, :128], m[:, 128:])  # max over pool cols  (7*bn, 128)
        s1_ref[e * 7 * bn:(e + 1) * 7 * bn, :] = jnp.maximum(pooled + b1, 0.0)

    # ---- stage 2: conv2 + bias + ReLU + 2x2 max pool (fused) --------------
    # LHS: 5 lane-aligned contiguous (5*bn, 128) s1 slices concatenated along
    # lanes -> (5*bn, 640).  s2 row layout: h2*bn + n; col = pw2*16 + c.
    acc = []
    for a in (0, 1):                                  # pool window row
        parts = []
        for i in range(_KH):                          # conv kernel row
            off = a + i                               # h1 = 2*h2 + off
            base = (off % 2) * 7 * bn + (off // 2) * bn
            parts.append(s1_ref[base:base + 5 * bn, :])
        lhs = jnp.concatenate(parts, axis=-1)         # (5*bn, 640)
        acc.append(jnp.dot(lhs, r2, preferred_element_type=f32))
    m = jnp.maximum(acc[0], acc[1])
    pooled = jnp.maximum(m[:, :128], m[:, 128:])
    s2_ref[...] = jnp.maximum(pooled + b2, 0.0)       # (5*bn, 128)

    # ---- fc1 -> ReLU -> fc2 -> ReLU -> fc3 (batched, operands in VMEM) ----
    # fc1's 5-row decomposition is folded into K: lane-concat the 5 pooled
    # rows of every sample -> (bn, 640), one matmul against packed (640, 256).
    flat = jnp.concatenate([s2_ref[h * bn:(h + 1) * bn, :] for h in range(5)],
                           axis=-1)                   # (bn, 640)
    h1 = jnp.maximum(
        jnp.dot(flat, w1_ref[...], preferred_element_type=f32) + fb1, 0.0)
    h2 = jnp.maximum(
        jnp.dot(h1, w2_ref[...], preferred_element_type=f32) + fb2, 0.0)
    o_ref[...] = jnp.dot(h2, w3_ref[...], preferred_element_type=f32) + fb3


# ---------------------------------------------------------------------------
# Wrapper / pallas_call
# ---------------------------------------------------------------------------
def _build_stage1_lhs(x_nchw, bn):
    """(N,1,32,32) -> (nb, 4, 7*bn, 160) stage-1 LHS slabs.

    slab[g, 2*e+a, t*bn + n, i*32 + w] = x[g*bn + n, 0, 4*t + 2*e + a + i, w],
    i.e. the image rows feeding pooled row h1 = 2t+e, pool-window row a,
    conv kernel row i, already K-concatenated over i and M-batched over (t,n).
    Done once per call with cheap strided slices / reshapes (no im2col).
    """
    n = x_nchw.shape[0]                                # already padded
    xr = x_nchw[:, 0]                                  # (n, 32, 32)
    slabs = []
    for e in (0, 1):
        for a in (0, 1):
            cols = [xr[:, (2 * e + a + i)::4, :][:, :7, :] for i in range(_KH)]
            slabs.append(jnp.concatenate(cols, axis=-1))   # (n, 7, 160)
    lhs = jnp.stack(slabs, axis=1)                     # (n, 4, 7, 160)
    nb = n // bn
    lhs = lhs.reshape(nb, bn, 4, 7, 160).transpose(0, 2, 3, 1, 4)
    return lhs.reshape(nb, 4, 7 * bn, 160)


@jax.jit
def _lenet_apply(packed, x_nchw):
    n = x_nchw.shape[0]
    ncp = packed["w3"].shape[1]
    nb = pl.cdiv(n, _BN)
    n_pad = nb * _BN
    if n_pad > n:
        x_nchw = jnp.pad(x_nchw, ((0, n_pad - n), (0, 0), (0, 0), (0, 0)))

    x1 = _build_stage1_lhs(x_nchw, _BN)                # (nb, 4, 7*BN, 160)

    out = pl.pallas_call(
        functools.partial(_lenet_fused_kernel, bn=_BN),
        out_shape=jax.ShapeDtypeStruct((n_pad, ncp), jnp.float32),
        grid=(nb,),
        in_specs=[
            # per-block input slab
            pl.BlockSpec((1, 4, 7 * _BN, 160), lambda g: (g, 0, 0, 0)),
            # weights / biases: constant index_maps -> stay VMEM-resident
            pl.BlockSpec((160, 256), lambda g: (0, 0)),   # r1
            pl.BlockSpec((1, 128), lambda g: (0, 0)),     # b1
            pl.BlockSpec((640, 256), lambda g: (0, 0)),   # r2
            pl.BlockSpec((1, 128), lambda g: (0, 0)),     # b2
            pl.BlockSpec((640, 256), lambda g: (0, 0)),   # fc1 w
            pl.BlockSpec((1, 256), lambda g: (0, 0)),     # fc1 b
            pl.BlockSpec((256, 128), lambda g: (0, 0)),   # fc2 w
            pl.BlockSpec((1, 128), lambda g: (0, 0)),     # fc2 b
            pl.BlockSpec((128, ncp), lambda g: (0, 0)),   # fc3 w
            pl.BlockSpec((1, ncp), lambda g: (0, 0)),     # fc3 b
        ],
        out_specs=pl.BlockSpec((_BN, ncp), lambda g: (g, 0)),
        scratch_shapes=[
            pltpu.VMEM((14 * _BN, 128), jnp.float32),     # stage-1 pooled maps
            pltpu.VMEM((5 * _BN, 128), jnp.float32),      # stage-2 pooled maps
        ],
        compiler_params=pltpu.CompilerParams(
            dimension_semantics=("parallel",)),
    )(x1, packed["r1"], packed["b1"], packed["r2"], packed["b2"],
      packed["w1"], packed["fb1"], packed["w2"], packed["fb2"],
      packed["w3"], packed["fb3"])

    return out[:n]


def lenet_forward(packed, x_nchw, num_classes=100):
    assert x_nchw.shape[1:] == (1, 32, 32), x_nchw.shape
    n = x_nchw.shape[0]
    shape_dict = {1: [(n, 6, 14, 14)], 2: [(n, 16, 5, 5)], 3: [(n, 400)],
                  4: [(n, 256)], 5: [(n, 128)], 6: [(n, num_classes)]}
    out = _lenet_apply(packed, x_nchw)[:, :num_classes]
    return out, shape_dict


# ---------------------------------------------------------------------------
# Parameters: PyTorch layout + one-time kernel packing
# ---------------------------------------------------------------------------
def init_lenet_params(key, num_classes=100):
    ks = jax.random.split(key, 10)

    def u(k, shape, fan_in):
        bound = 1.0 / jnp.sqrt(float(fan_in))
        return jax.random.uniform(k, shape, jnp.float32, -bound, bound)

    return {
        "w_conv1": u(ks[0], (6, 1, 5, 5), 1 * 25),
        "b_conv1": u(ks[1], (6,), 1 * 25),
        "w_conv2": u(ks[2], (16, 6, 5, 5), 6 * 25),
        "b_conv2": u(ks[3], (16,), 6 * 25),
        "w_fc1": u(ks[4], (256, 16 * 5 * 5), 16 * 5 * 5),   # PyTorch (out, in)
        "b_fc1": u(ks[5], (256,), 16 * 5 * 5),
        "w_fc2": u(ks[6], (128, 256), 256),
        "b_fc2": u(ks[7], (128,), 256),
        "w_fc3": u(ks[8], (num_classes, 128), 128),
        "b_fc3": u(ks[9], (num_classes,), 128),
    }


def pack_lenet_params(params, num_classes=100):
    """One-time repack of PyTorch-layout params into MXU/lane-friendly
    constants (all padding / transposes / flatten-permutation / K-concat
    happens here, never per forward call)."""
    w1 = np.asarray(params["w_conv1"], np.float32)
    b1 = np.asarray(params["b_conv1"], np.float32)
    w2 = np.asarray(params["w_conv2"], np.float32)
    b2 = np.asarray(params["b_conv2"], np.float32)
    wf1 = np.asarray(params["w_fc1"], np.float32)
    bf1 = np.asarray(params["b_fc1"], np.float32)
    wf2 = np.asarray(params["w_fc2"], np.float32)
    bf2 = np.asarray(params["b_fc2"], np.float32)
    wf3 = np.asarray(params["w_fc3"], np.float32)
    bf3 = np.asarray(params["b_fc3"], np.float32)
    ncp = _round_up(num_classes, 128)

    # conv1: single (160, 256) RHS = 5 row-Toeplitz blocks stacked along K.
    # Column halves (b = 0/1) encode the width parity of the 2x2 pool.
    r1 = np.zeros((160, 256), np.float32)
    for i in range(5):
        for b in range(2):
            for j in range(5):
                for pw in range(14):
                    row = i * 32 + 2 * pw + b + j
                    col = b * 128 + pw * 6
                    r1[row, col:col + 6] = w1[:, 0, i, j]
    b1_row = np.zeros((1, 128), np.float32)
    for pw in range(14):
        b1_row[0, pw * 6:pw * 6 + 6] = b1

    # conv2: single (640, 256) RHS; K blocks of 128 correspond to the 5
    # kernel rows (= the 5 lane-concatenated s1 slices in the kernel).
    r2 = np.zeros((640, 256), np.float32)
    for i in range(5):
        for b in range(2):
            for j in range(5):
                for pw in range(5):
                    row = i * 128 + (2 * pw + b + j) * 6
                    col = b * 128 + pw * 16
                    r2[row:row + 6, col:col + 16] = w2[:, :, i, j].T
    b2_row = np.zeros((1, 128), np.float32)
    for pw in range(5):
        b2_row[0, pw * 16:pw * 16 + 16] = b2

    # fc1: single (640, 256); K blocks of 128 are the 5 pooled rows h2, and
    # the row permutation absorbs PyTorch's NCHW view(-1, 400) flatten.
    w1p = np.zeros((640, 256), np.float32)
    for h in range(5):
        for pw in range(5):
            for c in range(16):
                w1p[h * 128 + pw * 16 + c, :] = wf1[:, c * 25 + h * 5 + pw]

    w3p = np.zeros((128, ncp), np.float32)
    w3p[:, :num_classes] = wf3.T
    b3_row = np.zeros((1, ncp), np.float32)
    b3_row[0, :num_classes] = bf3

    return {
        "r1": jnp.asarray(r1), "b1": jnp.asarray(b1_row),
        "r2": jnp.asarray(r2), "b2": jnp.asarray(b2_row),
        "w1": jnp.asarray(w1p), "fb1": jnp.asarray(bf1.reshape(1, 256)),
        "w2": jnp.asarray(wf2.T.copy()), "fb2": jnp.asarray(bf2.reshape(1, 128)),
        "w3": jnp.asarray(w3p), "fb3": jnp.asarray(b3_row),
    }


# ---------------------------------------------------------------------------
# Pure-JAX reference for validation (full-precision f32 path)
# ---------------------------------------------------------------------------
def lenet_reference(params, x):
    hp = jax.lax.Precision.HIGHEST

    def conv(z, w, b):
        y = jax.lax.conv_general_dilated(
            z, w, (1, 1), "VALID",
            dimension_numbers=("NCHW", "OIHW", "NCHW"), precision=hp)
        return y + b.reshape(1, -1, 1, 1)

    def pool(z):
        return jax.lax.reduce_window(
            z, -jnp.inf, jax.lax.max, (1, 1, 2, 2), (1, 1, 2, 2), "VALID")

    m1 = pool(jax.nn.relu(conv(x, params["w_conv1"], params["b_conv1"])))
    m2 = pool(jax.nn.relu(conv(m1, params["w_conv2"], params["b_conv2"])))
    f = m2.reshape(m2.shape[0], -1)
    h1 = jax.nn.relu(jnp.dot(f, params["w_fc1"].T, precision=hp) + params["b_fc1"])
    h2 = jax.nn.relu(jnp.dot(h1, params["w_fc2"].T, precision=hp) + params["b_fc2"])
    return jnp.dot(h2, params["w_fc3"].T, precision=hp) + params["b_fc3"]


if __name__ == "__main__":
    key = jax.random.PRNGKey(0)
    k_x, k_p = jax.random.split(key)
    x = jax.random.normal(k_x, (2, 1, 32, 32), jnp.float32)   # batch=2, 1x32x32
    params = init_lenet_params(k_p, num_classes=100)
    packed = pack_lenet_params(params, num_classes=100)

    out, shape_dict = lenet_forward(packed, x, num_classes=100)
    out = jax.block_until_ready(out)

    assert out.shape == (2, 100), out.shape
    assert shape_dict[1][0] == (2, 6, 14, 14)
    assert shape_dict[2][0] == (2, 16, 5, 5)
    assert shape_dict[3][0] == (2, 400)
    assert shape_dict[4][0] == (2, 256)
    assert shape_dict[5][0] == (2, 128)
    assert shape_dict[6][0] == (2, 100)

    ref = jax.block_until_ready(lenet_reference(params, x))
    max_err = float(jnp.max(jnp.abs(out - ref)))
    assert jnp.allclose(out, ref, atol=1e-4, rtol=1e-4), max_err

    print("KERNEL_OK")
</pallas_src>

<mosaic_0001>
module attributes {stable_mosaic.version = 11 : i64} {
  func.func @_lenet_fused_kernel(%arg0: i32, %arg1: memref<1x4x56x160xf32, #tpu.memory_space<vmem>>, %arg2: memref<160x256xf32, #tpu.memory_space<vmem>>, %arg3: memref<1x128xf32, #tpu.memory_space<vmem>>, %arg4: memref<640x256xf32, #tpu.memory_space<vmem>>, %arg5: memref<1x128xf32, #tpu.memory_space<vmem>>, %arg6: memref<640x256xf32, #tpu.memory_space<vmem>>, %arg7: memref<1x256xf32, #tpu.memory_space<vmem>>, %arg8: memref<256x128xf32, #tpu.memory_space<vmem>>, %arg9: memref<1x128xf32, #tpu.memory_space<vmem>>, %arg10: memref<128x128xf32, #tpu.memory_space<vmem>>, %arg11: memref<1x128xf32, #tpu.memory_space<vmem>>, %arg12: memref<8x128xf32, #tpu.memory_space<vmem>>, %arg13: memref<112x128xf32, #tpu.memory_space<vmem>>, %arg14: memref<40x128xf32, #tpu.memory_space<vmem>>) attributes {dimension_semantics = [#tpu.dimension_semantics<parallel>], iteration_bounds = array<i64: 1>, scalar_prefetch = 0 : i64, scratch_operands = 2 : i64, tpu.core_type = #tpu.core_type<tc>, window_params = [{transform_indices = @transform_0, window_bounds = array<i64: 1, 4, 56, 160>}, {pipeline_mode = #tpu.pipeline_mode<synchronous>, transform_indices = @transform_1, window_bounds = array<i64: 160, 256>}, {pipeline_mode = #tpu.pipeline_mode<synchronous>, transform_indices = @transform_2, window_bounds = array<i64: 1, 128>}, {pipeline_mode = #tpu.pipeline_mode<synchronous>, transform_indices = @transform_3, window_bounds = array<i64: 640, 256>}, {pipeline_mode = #tpu.pipeline_mode<synchronous>, transform_indices = @transform_4, window_bounds = array<i64: 1, 128>}, {pipeline_mode = #tpu.pipeline_mode<synchronous>, transform_indices = @transform_5, window_bounds = array<i64: 640, 256>}, {pipeline_mode = #tpu.pipeline_mode<synchronous>, transform_indices = @transform_6, window_bounds = array<i64: 1, 256>}, {pipeline_mode = #tpu.pipeline_mode<synchronous>, transform_indices = @transform_7, window_bounds = array<i64: 256, 128>}, {pipeline_mode = #tpu.pipeline_mode<synchronous>, transform_indices = @transform_8, window_bounds = array<i64: 1, 128>}, {pipeline_mode = #tpu.pipeline_mode<synchronous>, transform_indices = @transform_9, window_bounds = array<i64: 128, 128>}, {pipeline_mode = #tpu.pipeline_mode<synchronous>, transform_indices = @transform_10, window_bounds = array<i64: 1, 128>}, {transform_indices = @transform_11, window_bounds = array<i64: 8, 128>}]} {
    %c0 = arith.constant 0 : index
    %c0_0 = arith.constant 0 : index
    %0 = vector.load %arg2[%c0, %c0_0] : memref<160x256xf32, #tpu.memory_space<vmem>>, vector<160x256xf32>
    %c0_1 = arith.constant 0 : index
    %c0_2 = arith.constant 0 : index
    %1 = vector.load %arg4[%c0_1, %c0_2] : memref<640x256xf32, #tpu.memory_space<vmem>>, vector<640x256xf32>
    %c0_3 = arith.constant 0 : index
    %c0_4 = arith.constant 0 : index
    %2 = vector.load %arg3[%c0_3, %c0_4] : memref<1x128xf32, #tpu.memory_space<vmem>>, vector<1x128xf32>
    %c0_5 = arith.constant 0 : index
    %c0_6 = arith.constant 0 : index
    %3 = vector.load %arg5[%c0_5, %c0_6] : memref<1x128xf32, #tpu.memory_space<vmem>>, vector<1x128xf32>
    %c0_7 = arith.constant 0 : index
    %c0_8 = arith.constant 0 : index
    %4 = vector.load %arg7[%c0_7, %c0_8] : memref<1x256xf32, #tpu.memory_space<vmem>>, vector<1x256xf32>
    %c0_9 = arith.constant 0 : index
    %c0_10 = arith.constant 0 : index
    %5 = vector.load %arg9[%c0_9, %c0_10] : memref<1x128xf32, #tpu.memory_space<vmem>>, vector<1x128xf32>
    %c0_11 = arith.constant 0 : index
    %c0_12 = arith.constant 0 : index
    %6 = vector.load %arg11[%c0_11, %c0_12] : memref<1x128xf32, #tpu.memory_space<vmem>>, vector<1x128xf32>
    %c0_13 = arith.constant 0 : index
    %c0_14 = arith.constant 0 : index
    %c0_15 = arith.constant 0 : index
    %c0_16 = arith.constant 0 : index
    %7 = vector.load %arg1[%c0_13, %c0_14, %c0_15, %c0_16] : memref<1x4x56x160xf32, #tpu.memory_space<vmem>>, vector<1x1x56x160xf32>
    %8 = vector.shape_cast %7 : vector<1x1x56x160xf32> to vector<56x160xf32>
    %cst = arith.constant dense<0.000000e+00> : vector<56x256xf32>
    %9 = tpu.matmul %8, %0, %cst {dimension_numbers = #tpu.dot_dimension_numbers<[1], [0], [0], [1], [0, 0, 1, 1], [], []>} : vector<56x160xf32>, vector<160x256xf32>, vector<56x256xf32> -> vector<56x256xf32>
    %c0_17 = arith.constant 0 : index
    %c1 = arith.constant 1 : index
    %c0_18 = arith.constant 0 : index
    %c0_19 = arith.constant 0 : index
    %10 = vector.load %arg1[%c0_17, %c1, %c0_18, %c0_19] : memref<1x4x56x160xf32, #tpu.memory_space<vmem>>, vector<1x1x56x160xf32>
    %11 = vector.shape_cast %10 : vector<1x1x56x160xf32> to vector<56x160xf32>
    %cst_20 = arith.constant dense<0.000000e+00> : vector<56x256xf32>
    %12 = tpu.matmul %11, %0, %cst_20 {dimension_numbers = #tpu.dot_dimension_numbers<[1], [0], [0], [1], [0, 0, 1, 1], [], []>} : vector<56x160xf32>, vector<160x256xf32>, vector<56x256xf32> -> vector<56x256xf32>
    %13 = arith.maximumf %9, %12 : vector<56x256xf32>
    %14 = vector.extract_strided_slice %13 {offsets = [0, 0], sizes = [56, 128], strides = [1, 1]} : vector<56x256xf32> to vector<56x128xf32>
    %15 = vector.extract_strided_slice %13 {offsets = [0, 128], sizes = [56, 128], strides = [1, 1]} : vector<56x256xf32> to vector<56x128xf32>
    %16 = arith.maximumf %14, %15 : vector<56x128xf32>
    %17 = vector.broadcast %2 : vector<1x128xf32> to vector<56x128xf32>
    %18 = arith.addf %16, %17 : vector<56x128xf32>
    %cst_21 = arith.constant 0.000000e+00 : f32
    %19 = vector.broadcast %cst_21 : f32 to vector<56x128xf32>
    %20 = arith.maximumf %18, %19 : vector<56x128xf32>
    %c0_22 = arith.constant 0 : index
    %c0_23 = arith.constant 0 : index
    %21 = vector.load %arg13[%c0_22, %c0_23] : memref<112x128xf32, #tpu.memory_space<vmem>>, vector<56x128xf32>
    tpu.vector_store %arg13[%c0_22, %c0_23], %20 {strides = array<i32>} : memref<112x128xf32, #tpu.memory_space<vmem>>, vector<56x128xf32>,
    %c0_24 = arith.constant 0 : index
    %c2 = arith.constant 2 : index
    %c0_25 = arith.constant 0 : index
    %c0_26 = arith.constant 0 : index
    %22 = vector.load %arg1[%c0_24, %c2, %c0_25, %c0_26] : memref<1x4x56x160xf32, #tpu.memory_space<vmem>>, vector<1x1x56x160xf32>
    %23 = vector.shape_cast %22 : vector<1x1x56x160xf32> to vector<56x160xf32>
    %cst_27 = arith.constant dense<0.000000e+00> : vector<56x256xf32>
    %24 = tpu.matmul %23, %0, %cst_27 {dimension_numbers = #tpu.dot_dimension_numbers<[1], [0], [0], [1], [0, 0, 1, 1], [], []>} : vector<56x160xf32>, vector<160x256xf32>, vector<56x256xf32> -> vector<56x256xf32>
    %c0_28 = arith.constant 0 : index
    %c3 = arith.constant 3 : index
    %c0_29 = arith.constant 0 : index
    %c0_30 = arith.constant 0 : index
    %25 = vector.load %arg1[%c0_28, %c3, %c0_29, %c0_30] : memref<1x4x56x160xf32, #tpu.memory_space<vmem>>, vector<1x1x56x160xf32>
    %26 = vector.shape_cast %25 : vector<1x1x56x160xf32> to vector<56x160xf32>
    %cst_31 = arith.constant dense<0.000000e+00> : vector<56x256xf32>
    %27 = tpu.matmul %26, %0, %cst_31 {dimension_numbers = #tpu.dot_dimension_numbers<[1], [0], [0], [1], [0, 0, 1, 1], [], []>} : vector<56x160xf32>, vector<160x256xf32>, vector<56x256xf32> -> vector<56x256xf32>
    %28 = arith.maximumf %24, %27 : vector<56x256xf32>
    %29 = vector.extract_strided_slice %28 {offsets = [0, 0], sizes = [56, 128], strides = [1, 1]} : vector<56x256xf32> to vector<56x128xf32>
    %30 = vector.extract_strided_slice %28 {offsets = [0, 128], sizes = [56, 128], strides = [1, 1]} : vector<56x256xf32> to vector<56x128xf32>
    %31 = arith.maximumf %29, %30 : vector<56x128xf32>
    %32 = vector.broadcast %2 : vector<1x128xf32> to vector<56x128xf32>
    %33 = arith.addf %31, %32 : vector<56x128xf32>
    %cst_32 = arith.constant 0.000000e+00 : f32
    %34 = vector.broadcast %cst_32 : f32 to vector<56x128xf32>
    %35 = arith.maximumf %33, %34 : vector<56x128xf32>
    %c56 = arith.constant 56 : index
    %c0_33 = arith.constant 0 : index
    %36 = vector.load %arg13[%c56, %c0_33] : memref<112x128xf32, #tpu.memory_space<vmem>>, vector<56x128xf32>
    tpu.vector_store %arg13[%c56, %c0_33], %35 {strides = array<i32>} : memref<112x128xf32, #tpu.memory_space<vmem>>, vector<56x128xf32>,
    %c0_34 = arith.constant 0 : index
    %c0_35 = arith.constant 0 : index
    %37 = vector.load %arg13[%c0_34, %c0_35] : memref<112x128xf32, #tpu.memory_space<vmem>>, vector<40x128xf32>
    %c56_36 = arith.constant 56 : index
    %c0_37 = arith.constant 0 : index
    %38 = vector.load %arg13[%c56_36, %c0_37] : memref<112x128xf32, #tpu.memory_space<vmem>>, vector<40x128xf32>
    %c8 = arith.constant 8 : index
    %c0_38 = arith.constant 0 : index
    %39 = vector.load %arg13[%c8, %c0_38] : memref<112x128xf32, #tpu.memory_space<vmem>>, vector<40x128xf32>
    %c64 = arith.constant 64 : index
    %c0_39 = arith.constant 0 : index
    %40 = vector.load %arg13[%c64, %c0_39] : memref<112x128xf32, #tpu.memory_space<vmem>>, vector<40x128xf32>
    %c16 = arith.constant 16 : index
    %c0_40 = arith.constant 0 : index
    %41 = vector.load %arg13[%c16, %c0_40] : memref<112x128xf32, #tpu.memory_space<vmem>>, vector<40x128xf32>
    %42 = tpu.concatenate %37, %38, %39, %40, %41 in 1 : vector<40x128xf32>, vector<40x128xf32>, vector<40x128xf32>, vector<40x128xf32>, vector<40x128xf32> -> vector<40x640xf32>
    %cst_41 = arith.constant dense<0.000000e+00> : vector<40x256xf32>
    %43 = tpu.matmul %42, %1, %cst_41 {dimension_numbers = #tpu.dot_dimension_numbers<[1], [0], [0], [1], [0, 0, 1, 1], [], []>} : vector<40x640xf32>, vector<640x256xf32>, vector<40x256xf32> -> vector<40x256xf32>
    %c56_42 = arith.constant 56 : index
    %c0_43 = arith.constant 0 : index
    %44 = vector.load %arg13[%c56_42, %c0_43] : memref<112x128xf32, #tpu.memory_space<vmem>>, vector<40x128xf32>
    %c8_44 = arith.constant 8 : index
    %c0_45 = arith.constant 0 : index
    %45 = vector.load %arg13[%c8_44, %c0_45] : memref<112x128xf32, #tpu.memory_space<vmem>>, vector<40x128xf32>
    %c64_46 = arith.constant 64 : index
    %c0_47 = arith.constant 0 : index
    %46 = vector.load %arg13[%c64_46, %c0_47] : memref<112x128xf32, #tpu.memory_space<vmem>>, vector<40x128xf32>
    %c16_48 = arith.constant 16 : index
    %c0_49 = arith.constant 0 : index
    %47 = vector.load %arg13[%c16_48, %c0_49] : memref<112x128xf32, #tpu.memory_space<vmem>>, vector<40x128xf32>
    %c72 = arith.constant 72 : index
    %c0_50 = arith.constant 0 : index
    %48 = vector.load %arg13[%c72, %c0_50] : memref<112x128xf32, #tpu.memory_space<vmem>>, vector<40x128xf32>
    %49 = tpu.concatenate %44, %45, %46, %47, %48 in 1 : vector<40x128xf32>, vector<40x128xf32>, vector<40x128xf32>, vector<40x128xf32>, vector<40x128xf32> -> vector<40x640xf32>
    %cst_51 = arith.constant dense<0.000000e+00> : vector<40x256xf32>
    %50 = tpu.matmul %49, %1, %cst_51 {dimension_numbers = #tpu.dot_dimension_numbers<[1], [0], [0], [1], [0, 0, 1, 1], [], []>} : vector<40x640xf32>, vector<640x256xf32>, vector<40x256xf32> -> vector<40x256xf32>
    %51 = arith.maximumf %43, %50 : vector<40x256xf32>
    %52 = vector.extract_strided_slice %51 {offsets = [0, 0], sizes = [40, 128], strides = [1, 1]} : vector<40x256xf32> to vector<40x128xf32>
    %53 = vector.extract_strided_slice %51 {offsets = [0, 128], sizes = [40, 128], strides = [1, 1]} : vector<40x256xf32> to vector<40x128xf32>
    %54 = arith.maximumf %52, %53 : vector<40x128xf32>
    %55 = vector.broadcast %3 : vector<1x128xf32> to vector<40x128xf32>
    %56 = arith.addf %54, %55 : vector<40x128xf32>
    %cst_52 = arith.constant 0.000000e+00 : f32
    %57 = vector.broadcast %cst_52 : f32 to vector<40x128xf32>
    %58 = arith.maximumf %56, %57 : vector<40x128xf32>
    %c0_53 = arith.constant 0 : index
    %c0_54 = arith.constant 0 : index
    %59 = vector.load %arg14[%c0_53, %c0_54] : memref<40x128xf32, #tpu.memory_space<vmem>>, vector<40x128xf32>
    tpu.vector_store %arg14[%c0_53, %c0_54], %58 {strides = array<i32>} : memref<40x128xf32, #tpu.memory_space<vmem>>, vector<40x128xf32>,
    %c0_55 = arith.constant 0 : index
    %c0_56 = arith.constant 0 : index
    %60 = vector.load %arg14[%c0_55, %c0_56] : memref<40x128xf32, #tpu.memory_space<vmem>>, vector<8x128xf32>
    %c8_57 = arith.constant 8 : index
    %c0_58 = arith.constant 0 : index
    %61 = vector.load %arg14[%c8_57, %c0_58] : memref<40x128xf32, #tpu.memory_space<vmem>>, vector<8x128xf32>
    %c16_59 = arith.constant 16 : index
    %c0_60 = arith.constant 0 : index
    %62 = vector.load %arg14[%c16_59, %c0_60] : memref<40x128xf32, #tpu.memory_space<vmem>>, vector<8x128xf32>
    %c24 = arith.constant 24 : index
    %c0_61 = arith.constant 0 : index
    %63 = vector.load %arg14[%c24, %c0_61] : memref<40x128xf32, #tpu.memory_space<vmem>>, vector<8x128xf32>
    %c32 = arith.constant 32 : index
    %c0_62 = arith.constant 0 : index
    %64 = vector.load %arg14[%c32, %c0_62] : memref<40x128xf32, #tpu.memory_space<vmem>>, vector<8x128xf32>
    %65 = tpu.concatenate %60, %61, %62, %63, %64 in 1 : vector<8x128xf32>, vector<8x128xf32>, vector<8x128xf32>, vector<8x128xf32>, vector<8x128xf32> -> vector<8x640xf32>
    %c0_63 = arith.constant 0 : index
    %c0_64 = arith.constant 0 : index
    %66 = vector.load %arg6[%c0_63, %c0_64] : memref<640x256xf32, #tpu.memory_space<vmem>>, vector<640x256xf32>
    %cst_65 = arith.constant dense<0.000000e+00> : vector<8x256xf32>
    %67 = tpu.matmul %65, %66, %cst_65 {dimension_numbers = #tpu.dot_dimension_numbers<[1], [0], [0], [1], [0, 0, 1, 1], [], []>} : vector<8x640xf32>, vector<640x256xf32>, vector<8x256xf32> -> vector<8x256xf32>
    %68 = vector.broadcast %4 : vector<1x256xf32> to vector<8x256xf32>
    %69 = arith.addf %67, %68 : vector<8x256xf32>
    %cst_66 = arith.constant 0.000000e+00 : f32
    %70 = vector.broadcast %cst_66 : f32 to vector<8x256xf32>
    %71 = arith.maximumf %69, %70 : vector<8x256xf32>
    %c0_67 = arith.constant 0 : index
    %c0_68 = arith.constant 0 : index
    %72 = vector.load %arg8[%c0_67, %c0_68] : memref<256x128xf32, #tpu.memory_space<vmem>>, vector<256x128xf32>
    %cst_69 = arith.constant dense<0.000000e+00> : vector<8x128xf32>
    %73 = tpu.matmul %71, %72, %cst_69 {dimension_numbers = #tpu.dot_dimension_numbers<[1], [0], [0], [1], [0, 0, 1, 1], [], []>} : vector<8x256xf32>, vector<256x128xf32>, vector<8x128xf32> -> vector<8x128xf32>
    %74 = vector.broadcast %5 : vector<1x128xf32> to vector<8x128xf32>
    %75 = arith.addf %73, %74 : vector<8x128xf32>
    %cst_70 = arith.constant 0.000000e+00 : f32
    %76 = vector.broadcast %cst_70 : f32 to vector<8x128xf32>
    %77 = arith.maximumf %75, %76 : vector<8x128xf32>
    %c0_71 = arith.constant 0 : index
    %c0_72 = arith.constant 0 : index
    %78 = vector.load %arg10[%c0_71, %c0_72] : memref<128x128xf32, #tpu.memory_space<vmem>>, vector<128x128xf32>
    %cst_73 = arith.constant dense<0.000000e+00> : vector<8x128xf32>
    %79 = tpu.matmul %77, %78, %cst_73 {dimension_numbers = #tpu.dot_dimension_numbers<[1], [0], [0], [1], [0, 0, 1, 1], [], []>} : vector<8x128xf32>, vector<128x128xf32>, vector<8x128xf32> -> vector<8x128xf32>
    %80 = vector.broadcast %6 : vector<1x128xf32> to vector<8x128xf32>
    %81 = arith.addf %79, %80 : vector<8x128xf32>
    %c0_74 = arith.constant 0 : index
    %c0_75 = arith.constant 0 : index
    %82 = vector.load %arg12[%c0_74, %c0_75] : memref<8x128xf32, #tpu.memory_space<vmem>>, vector<8x128xf32>
    tpu.vector_store %arg12[%c0_74, %c0_75], %81 {strides = array<i32>} : memref<8x128xf32, #tpu.memory_space<vmem>>, vector<8x128xf32>,
    return
  }
  func.func @transform_0(%arg0: i32) -> (i32, i32, i32, i32) {
    %c0_i32 = arith.constant 0 : i32
    %c0_i32_0 = arith.constant 0 : i32
    %c0_i32_1 = arith.constant 0 : i32
    %c0_i32_2 = arith.constant 0 : i32
    return %arg0, %c0_i32, %c0_i32_0, %c0_i32_1 : i32, i32, i32, i32
  }
  func.func @transform_1(%arg0: i32) -> (i32, i32) {
    %c0_i32 = arith.constant 0 : i32
    %c0_i32_0 = arith.constant 0 : i32
    %c0_i32_1 = arith.constant 0 : i32
    return %c0_i32, %c0_i32_0 : i32, i32
  }
  func.func @transform_2(%arg0: i32) -> (i32, i32) {
    %c0_i32 = arith.constant 0 : i32
    %c0_i32_0 = arith.constant 0 : i32
    %c0_i32_1 = arith.constant 0 : i32
    return %c0_i32, %c0_i32_0 : i32, i32
  }
  func.func @transform_3(%arg0: i32) -> (i32, i32) {
    %c0_i32 = arith.constant 0 : i32
    %c0_i32_0 = arith.constant 0 : i32
    %c0_i32_1 = arith.constant 0 : i32
    return %c0_i32, %c0_i32_0 : i32, i32
  }
  func.func @transform_4(%arg0: i32) -> (i32, i32) {
    %c0_i32 = arith.constant 0 : i32
    %c0_i32_0 = arith.constant 0 : i32
    %c0_i32_1 = arith.constant 0 : i32
    return %c0_i32, %c0_i32_0 : i32, i32
  }
  func.func @transform_5(%arg0: i32) -> (i32, i32) {
    %c0_i32 = arith.constant 0 : i32
    %c0_i32_0 = arith.constant 0 : i32
    %c0_i32_1 = arith.constant 0 : i32
    return %c0_i32, %c0_i32_0 : i32, i32
  }
  func.func @transform_6(%arg0: i32) -> (i32, i32) {
    %c0_i32 = arith.constant 0 : i32
    %c0_i32_0 = arith.constant 0 : i32
    %c0_i32_1 = arith.constant 0 : i32
    return %c0_i32, %c0_i32_0 : i32, i32
  }
  func.func @transform_7(%arg0: i32) -> (i32, i32) {
    %c0_i32 = arith.constant 0 : i32
    %c0_i32_0 = arith.constant 0 : i32
    %c0_i32_1 = arith.constant 0 : i32
    return %c0_i32, %c0_i32_0 : i32, i32
  }
  func.func @transform_8(%arg0: i32) -> (i32, i32) {
    %c0_i32 = arith.constant 0 : i32
    %c0_i32_0 = arith.constant 0 : i32
    %c0_i32_1 = arith.constant 0 : i32
    return %c0_i32, %c0_i32_0 : i32, i32
  }
  func.func @transform_9(%arg0: i32) -> (i32, i32) {
    %c0_i32 = arith.constant 0 : i32
    %c0_i32_0 = arith.constant 0 : i32
    %c0_i32_1 = arith.constant 0 : i32
    return %c0_i32, %c0_i32_0 : i32, i32
  }
  func.func @transform_10(%arg0: i32) -> (i32, i32) {
    %c0_i32 = arith.constant 0 : i32
    %c0_i32_0 = arith.constant 0 : i32
    %c0_i32_1 = arith.constant 0 : i32
    return %c0_i32, %c0_i32_0 : i32, i32
  }
  func.func @transform_11(%arg0: i32) -> (i32, i32) {
    %c0_i32 = arith.constant 0 : i32
    %c0_i32_0 = arith.constant 0 : i32
    return %arg0, %c0_i32 : i32, i32
  }
}

</mosaic_0001>

<bundles_post_ra>
// kernel: _lenet_apply.1
= control target key start
LH: loop header
LB: loop body
LE: loop exit
PB: predicated region body
PF: predicated region fallthrough
CT: control target
= control target key end

     0   :  { %vm257_vm0 = vcmask 261120   ;;  %vm2296_vm1 = vmmov 0   ;;  %s4900_s1 = inlined_call_operand.vmem [shape: f32[160,256], index: 1, kind: input, shape index: {}]   ;;  %s4901_s0 = inlined_call_operand.vmem [shape: f32[1,4,56,160], index: 0, kind: input, shape index: {}]   ;;  %s4902_s3 = inlined_call_operand.vmem [shape: f32[640,256], index: 3, kind: input, shape index: {}]   ;;  %s4903_s2 = inlined_call_operand.vmem [shape: f32[1,128], index: 2, kind: input, shape index: {}]   ;;  %s4904_s5 = inlined_call_operand.vmem [shape: f32[640,256], index: 5, kind: input, shape index: {}]   ;;  %s4905_s4 = inlined_call_operand.vmem [shape: f32[1,128], index: 4, kind: input, shape index: {}]   ;;  %s4906_s7 = inlined_call_operand.vmem [shape: f32[256,128], index: 7, kind: input, shape index: {}]   ;;  %s4907_s9 = inlined_call_operand.vmem [shape: f32[128,128], index: 9, kind: input, shape index: {}]   ;;  %s4908_s6 = inlined_call_operand.vmem [shape: f32[1,256], index: 6, kind: input, shape index: {}]   ;;  %s4909_s8 = inlined_call_operand.vmem [shape: f32[1,128], index: 8, kind: input, shape index: {}]   ;;  %s4910_s10 = inlined_call_operand.vmem [shape: f32[1,128], index: 10, kind: input, shape index: {}]   ;;  %s4911_s11 = inlined_call_operand.vmem [shape: f32[8,128], index: 11, kind: output, shape index: {}]  }
   0x1   :  { %v2360_v0 = vld [vmem:[%s4900_s1 + $0xf8] sm:$0xff]  ;;  %v2365_v1 = vld [vmem:[%s4900_s1 + $0xf0] sm:$0xff]  ;;  %v2370_v2 = vld [vmem:[%s4900_s1 + $0xe8] sm:$0xff] }
   0x2   :  { %279 = vmatprep.subr.mxu0 %v2360_v0  ;;  %422 = vmatprep.subr.mxu1 %v2360_v0  ;;  %v2377_v3 = vld [vmem:[%s4900_s1 + $0xe0] sm:$0xff]  ;;  %v2384_v4 = vld [vmem:[%s4900_s1 + $0xd8] sm:$0xff]  ;;  %v2391_v5 = vld [vmem:[%s4900_s1 + $0xd0] sm:$0xff] }
   0x3   :  { %280 = vmatpush1.msra.mxu0 %v2365_v1  ;;  %423 = vmatpush1.msra.mxu1 %v2365_v1  ;;  %v2398_v6 = vld [vmem:[%s4900_s1 + $0xc8] sm:$0xff]  ;;  %v2405_v7 = vld [vmem:[%s4900_s1 + $0xc0] sm:$0xff]  ;;  %v2412_v8 = vld [vmem:[%s4900_s1 + $0xb8] sm:$0xff] }
   0x4   :  { %281 = vmatprep.subr.mxu0 %v2370_v2  ;;  %424 = vmatprep.subr.mxu1 %v2370_v2  ;;  %v2419_v9 = vld [vmem:[%s4900_s1 + $0xb0] sm:$0xff]  ;;  %v2426_v10 = vld [vmem:[%s4900_s1 + $0xa8] sm:$0xff]  ;;  %v2433_v11 = vld [vmem:[%s4900_s1 + $0xa0] sm:$0xff] }
   0x5   :  { %282 = vmatpush1.msra.mxu0 %v2377_v3  ;;  %425 = vmatpush1.msra.mxu1 %v2377_v3  ;;  %v2440_v12 = vld [vmem:[%s4900_s1 + $0x98] sm:$0xff]  ;;  %v2447_v13 = vld [vmem:[%s4900_s1 + $0x90] sm:$0xff]  ;;  %v2454_v14 = vld [vmem:[%s4900_s1 + $0x88] sm:$0xff] }
   0x6   :  { %283 = vmatprep.subr.mxu0 %v2384_v4  ;;  %426 = vmatprep.subr.mxu1 %v2384_v4  ;;  %v2461_v15 = vld [vmem:[%s4900_s1 + $0x80] sm:$0xff]  ;;  %v2468_v16 = vld [vmem:[%s4900_s1 + $0x78] sm:$0xff]  ;;  %v2475_v17 = vld [vmem:[%s4900_s1 + $0x70] sm:$0xff] }
   0x7   :  { %284 = vmatpush1.msra.mxu0 %v2391_v5  ;;  %427 = vmatpush1.msra.mxu1 %v2391_v5  ;;  %v2482_v18 = vld [vmem:[%s4900_s1 + $0x68] sm:$0xff]  ;;  %v2489_v19 = vld [vmem:[%s4900_s1 + $0x60] sm:$0xff]  ;;  %v2496_v20 = vld [vmem:[%s4900_s1 + $0x58] sm:$0xff] }
   0x8   :  { %285 = vmatprep.subr.mxu0 %v2398_v6  ;;  %428 = vmatprep.subr.mxu1 %v2398_v6  ;;  %v2503_v21 = vld [vmem:[%s4900_s1 + $0x50] sm:$0xff]  ;;  %v2510_v22 = vld [vmem:[%s4900_s1 + $0x48] sm:$0xff]  ;;  %v2517_v23 = vld [vmem:[%s4900_s1 + $0x40] sm:$0xff] }
   0x9   :  { %286 = vmatpush1.msra.mxu0 %v2405_v7  ;;  %429 = vmatpush1.msra.mxu1 %v2405_v7  ;;  %v2524_v24 = vld [vmem:[%s4900_s1 + $0x38] sm:$0xff]  ;;  %v2531_v25 = vld [vmem:[%s4900_s1 + $0x30] sm:$0xff]  ;;  %v2538_v26 = vld [vmem:[%s4900_s1 + $0x28] sm:$0xff] }
   0xa   :  { %287 = vmatprep.subr.mxu0 %v2412_v8  ;;  %430 = vmatprep.subr.mxu1 %v2412_v8  ;;  %v2545_v27 = vld [vmem:[%s4900_s1 + $0x20] sm:$0xff]  ;;  %v2552_v28 = vld [vmem:[%s4900_s1 + $0x18] sm:$0xff]  ;;  %v2559_v29 = vld [vmem:[%s4900_s1 + $0x10] sm:$0xff] }
   0xb   :  { %288 = vmatpush1.msra.mxu0 %v2419_v9  ;;  %431 = vmatpush1.msra.mxu1 %v2419_v9  ;;  %v2566_v30 = vld [vmem:[%s4900_s1 + $0x8] sm:$0xff]  ;;  %v2573_v31 = vld [vmem:[%s4900_s1] sm:$0xff]  ;;  %v2580_v32 = vld [vmem:[%s4900_s1 + $0x138] sm:$0xff] }
   0xc   :  { %289 = vmatprep.subr.mxu0 %v2426_v10  ;;  %432 = vmatprep.subr.mxu1 %v2426_v10  ;;  %v2587_v33 = vld [vmem:[%s4900_s1 + $0x130] sm:$0xff]  ;;  %v2594_v34 = vld [vmem:[%s4900_s1 + $0x128] sm:$0xff]  ;;  %v2601_v35 = vld [vmem:[%s4900_s1 + $0x120] sm:$0xff] }
   0xd   :  { %290 = vmatpush1.msra.mxu0 %v2433_v11  ;;  %433 = vmatpush1.msra.mxu1 %v2433_v11  ;;  %v2608_v36 = vld [vmem:[%s4900_s1 + $0x118] sm:$0xff]  ;;  %v2615_v37 = vld [vmem:[%s4900_s1 + $0x110] sm:$0xff]  ;;  %v2622_v38 = vld [vmem:[%s4900_s1 + $0x108] sm:$0xff] }
   0xe   :  { %291 = vmatprep.subr.mxu0 %v2440_v12  ;;  %434 = vmatprep.subr.mxu1 %v2440_v12  ;;  %v2629_v39 = vld [vmem:[%s4900_s1 + $0x100] sm:$0xff]  ;;  %v244_v40 = vld [vmem:[%s4901_s0 + $0x8] sm:$0xff]  ;;  %v2134_v41 = vld [vmem:[%s4901_s0 + $0x78] sm:$0xff] }
   0xf   :  { %292 = vmatpush1.msra.mxu0 %v2447_v13  ;;  %435 = vmatpush1.msra.mxu1 %v2447_v13  ;;  %v243_v42 = vld [vmem:[%s4901_s0] sm:$0xff]  ;;  %v2133_v43 = vld [vmem:[%s4901_s0 + $0x70] sm:$0xff]  ;;  %v246_v44 = vld [vmem:[%s4901_s0 + $0x18] sm:$0xff] }
  0x10   :  { %293 = vmatprep.subr.mxu0 %v2454_v14  ;;  %436 = vmatprep.subr.mxu1 %v2454_v14  ;;  %v2136_v45 = vld [vmem:[%s4901_s0 + $0x88] sm:$0xff]  ;;  %v245_v46 = vld [vmem:[%s4901_s0 + $0x10] sm:$0xff]  ;;  %v2135_v47 = vld [vmem:[%s4901_s0 + $0x80] sm:$0xff] }
  0x11   :  { %294 = vmatpush1.msra.mxu0 %v2461_v15  ;;  %437 = vmatpush1.msra.mxu1 %v2461_v15  ;;  %v248_v48 = vld [vmem:[%s4901_s0 + $0x28] sm:$0xff]  ;;  %v2138_v49 = vld [vmem:[%s4901_s0 + $0x98] sm:$0xff]  ;;  %v247_v50 = vld [vmem:[%s4901_s0 + $0x20] sm:$0xff] }
  0x12   :  { %295 = vmatprep.subr.mxu0 %v2468_v16  ;;  %438 = vmatprep.subr.mxu1 %v2468_v16  ;;  %v2137_v51 = vld [vmem:[%s4901_s0 + $0x90] sm:$0xff]  ;;  %v250_v52 = vld [vmem:[%s4901_s0 + $0x38] sm:$0xff]  ;;  %v2140_v53 = vld [vmem:[%s4901_s0 + $0xa8] sm:$0xff] }
  0x13   :  { %296 = vmatpush1.msra.mxu0 %v2475_v17  ;;  %439 = vmatpush1.msra.mxu1 %v2475_v17  ;;  %v249_v54 = vld [vmem:[%s4901_s0 + $0x30] sm:$0xff]  ;;  %v2139_v55 = vld [vmem:[%s4901_s0 + $0xa0] sm:$0xff]  ;;  %v252_v56 = vld [vmem:[%s4901_s0 + $0x48] sm:$0xff] }
  0x14   :  { %297 = vmatprep.subr.mxu0 %v2482_v18  ;;  %440 = vmatprep.subr.mxu1 %v2482_v18  ;;  %v2142_v57 = vld [vmem:[%s4901_s0 + $0xb8] sm:$0xff]  ;;  %v251_v58 = vld [vmem:[%s4901_s0 + $0x40] sm:$0xff]  ;;  %v2141_v59 = vld [vmem:[%s4901_s0 + $0xb0] sm:$0xff] }
  0x15   :  { %298 = vmatpush1.msra.mxu0 %v2489_v19  ;;  %441 = vmatpush1.msra.mxu1 %v2489_v19  ;;  %v254_v60 = vld [vmem:[%s4901_s0 + $0x58] sm:$0xff]  ;;  %v2144_v61 = vld [vmem:[%s4901_s0 + $0xc8] sm:$0xff]  ;;  %v253_v62 = vld [vmem:[%s4901_s0 + $0x50] sm:$0xff] }
  0x16   :  { %299 = vmatprep.subr.mxu0 %v2496_v20  ;;  %442 = vmatprep.subr.mxu1 %v2496_v20  ;;  %v2143_v63 = vld [vmem:[%s4901_s0 + $0xc0] sm:$0xff] }
  0x17   :  { %300 = vmatpush1.msra.mxu0 %v2503_v21  ;;  %443 = vmatpush1.msra.mxu1 %v2503_v21 }
  0x18   :  { %301 = vmatprep.subr.mxu0 %v2510_v22  ;;  %444 = vmatprep.subr.mxu1 %v2510_v22 }
  0x19   :  { %302 = vmatpush1.msra.mxu0 %v2517_v23  ;;  %445 = vmatpush1.msra.mxu1 %v2517_v23 }
  0x1a   :  { %303 = vmatprep.subr.mxu0 %v2524_v24  ;;  %446 = vmatprep.subr.mxu1 %v2524_v24 }
  0x1b   :  { %304 = vmatpush1.msra.mxu0 %v2531_v25  ;;  %447 = vmatpush1.msra.mxu1 %v2531_v25 }
  0x1c   :  { %305 = vmatprep.subr.mxu0 %v2538_v26  ;;  %448 = vmatprep.subr.mxu1 %v2538_v26 }
  0x1d   :  { %306 = vmatpush1.msra.mxu0 %v2545_v27  ;;  %449 = vmatpush1.msra.mxu1 %v2545_v27 }
  0x1e   :  { %307 = vmatprep.subr.mxu0 %v2552_v28  ;;  %450 = vmatprep.subr.mxu1 %v2552_v28 }
  0x1f   :  { %308 = vmatpush1.msra.mxu0 %v2559_v29  ;;  %451 = vmatpush1.msra.mxu1 %v2559_v29 }
  0x20   :  { %309 = vmatprep.subr.mxu0 %v2566_v30  ;;  %452 = vmatprep.subr.mxu1 %v2566_v30 }
  0x21   :  { %310 = vmatpush1.msra.mxu0 %v2573_v31  ;;  %453 = vmatpush1.msra.mxu1 %v2573_v31 }
  0x22   :  { %335 = vmatprep.subr.mxu0 %v2580_v32  ;;  %478 = vmatprep.subr.mxu1 %v2580_v32 }
  0x23   :  { %336 = vmatpush2.msra.mxu0 %v2587_v33  ;;  %479 = vmatpush2.msra.mxu1 %v2587_v33 }
  0x24   :  { %337 = vmatprep.subr.mxu0 %v2594_v34  ;;  %480 = vmatprep.subr.mxu1 %v2594_v34 }
  0x25   :  { %338 = vmatpush2.msra.mxu0 %v2601_v35  ;;  %481 = vmatpush2.msra.mxu1 %v2601_v35 }
  0x26   :  { %339 = vmatprep.subr.mxu0 %v2608_v36  ;;  %482 = vmatprep.subr.mxu1 %v2608_v36 }
  0x27   :  { %340 = vmatpush2.msra.mxu0 %v2615_v37  ;;  %483 = vmatpush2.msra.mxu1 %v2615_v37 }
  0x28   :  { %341 = vmatprep.subr.mxu0 %v2622_v38  ;;  %484 = vmatprep.subr.mxu1 %v2622_v38 }
  0x29   :  { %342 = vmatpush2.msra.mxu0 %v2629_v39  ;;  %2126 = vmatprep.mubr.msk.f32.mxu0 %vm257_vm0, %v244_v40  ;;  %v2166_v40 = vld [vmem:[%s4901_s0 + $0x138] sm:$0xff] }
  0x2a   :  { %485 = vmatpush2.msra.mxu1 %v2629_v39  ;;  %2147 = vmatprep.mubr.msk.f32.mxu1 %vm257_vm0, %v2134_v41  ;;  %v2187_v41 = vld [vmem:[%s4901_s0 + $0x1a8] sm:$0xff] }
  0x2b   :  { %344 = vmatmul.mubr.f32.vlgmr.msra.gmra.mxu0 %v243_v42  ;;  %487 = vmatmul.mubr.f32.vlgmr.msra.gmra.mxu1 %v2133_v43  ;;  %v2971_v42 = vld [vmem:[%s4902_s3 + $0xb8] sm:$0xff] }
  0x2c   :  { %613 = vmatprep.subr.mxu0 %v2360_v0  ;;  %756 = vmatprep.subr.mxu1 %v2360_v0  ;;  %v256_v0 = vld [vmem:[%s4901_s0 + $0x68] sm:$0xff]  ;;  %v2977_v43 = vld [vmem:[%s4902_s3 + $0x2b8] sm:$0xff] }
  0x2d   :  { %614 = vmatpush1.msra.mxu0 %v2365_v1  ;;  %757 = vmatpush1.msra.mxu1 %v2365_v1  ;;  %v2146_v1 = vld [vmem:[%s4901_s0 + $0xd8] sm:$0xff]  ;;  %5014 = vst [vmem:[#allocation6_spill] sm:$0xff] %v2977_v43 }
  0x2e   :  { %615 = vmatprep.subr.mxu0 %v2370_v2  ;;  %758 = vmatprep.subr.mxu1 %v2370_v2  ;;  %v255_v2 = vld [vmem:[%s4901_s0 + $0x60] sm:$0xff] }
  0x2f   :  { %616 = vmatpush1.msra.mxu0 %v2377_v3  ;;  %759 = vmatpush1.msra.mxu1 %v2377_v3  ;;  %v2145_v3 = vld [vmem:[%s4901_s0 + $0xd0] sm:$0xff] }
  0x30   :  { %617 = vmatprep.subr.mxu0 %v2384_v4  ;;  %760 = vmatprep.subr.mxu1 %v2384_v4  ;;  %v2156_v4 = vld [vmem:[%s4901_s0 + $0xe8] sm:$0xff] }
  0x31   :  { %618 = vmatpush1.msra.mxu0 %v2391_v5  ;;  %761 = vmatpush1.msra.mxu1 %v2391_v5  ;;  %v2177_v5 = vld [vmem:[%s4901_s0 + $0x158] sm:$0xff] }
  0x32   :  { %619 = vmatprep.subr.mxu0 %v2398_v6  ;;  %762 = vmatprep.subr.mxu1 %v2398_v6  ;;  %v2155_v6 = vld [vmem:[%s4901_s0 + $0xe0] sm:$0xff] }
  0x33   :  { %620 = vmatpush1.msra.mxu0 %v2405_v7  ;;  %763 = vmatpush1.msra.mxu1 %v2405_v7  ;;  %v2176_v7 = vld [vmem:[%s4901_s0 + $0x150] sm:$0xff] }
  0x34   :  { %621 = vmatprep.subr.mxu0 %v2412_v8  ;;  %764 = vmatprep.subr.mxu1 %v2412_v8  ;;  %v2158_v8 = vld [vmem:[%s4901_s0 + $0xf8] sm:$0xff] }
  0x35   :  { %622 = vmatpush1.msra.mxu0 %v2419_v9  ;;  %765 = vmatpush1.msra.mxu1 %v2419_v9  ;;  %v2179_v9 = vld [vmem:[%s4901_s0 + $0x168] sm:$0xff] }
  0x36   :  { %623 = vmatprep.subr.mxu0 %v2426_v10  ;;  %766 = vmatprep.subr.mxu1 %v2426_v10  ;;  %v2838_v10 = vld [vmem:[%s4902_s3 + $0xf8] sm:$0xff] }
  0x37   :  { %624 = vmatpush1.msra.mxu0 %v2433_v11  ;;  %767 = vmatpush1.msra.mxu1 %v2433_v11  ;;  %v173_v11 = vld [vmem:[%s4902_s3 + $0x2f8] sm:$0xff] }
  0x38   :  { %625 = vmatprep.subr.mxu0 %v2440_v12  ;;  %768 = vmatprep.subr.mxu1 %v2440_v12  ;;  %v2846_v12 = vld [vmem:[%s4902_s3 + $0xf0] sm:$0xff] }
  0x39   :  { %2127 = vmatprep.mubr.msk.f32.mxu0 %vm257_vm0, %v246_v44  ;;  %2148 = vmatprep.mubr.msk.f32.mxu1 %vm257_vm0, %v2136_v45  ;;  %v2982_v44 = vld [vmem:[%s4902_s3 + $0xb0] sm:$0xff] }
  0x3a   :  { %626 = vmatpush1.msra.mxu0 %v2447_v13  ;;  %769 = vmatpush1.msra.mxu1 %v2447_v13  ;;  %v172_v13 = vld [vmem:[%s4902_s3 + $0x2f0] sm:$0xff] }
  0x3b   :  { %350 = vmatmul.mubr.f32.gmra.mxu0 %v245_v46  ;;  %493 = vmatmul.mubr.f32.gmra.mxu1 %v2135_v47  ;;  %v2987_v45 = vld [vmem:[%s4902_s3 + $0x2b0] sm:$0xff]  ;;  %v2186_v47 = vld [vmem:[%s4901_s0 + $0x1a0] sm:$0xff] }
  0x3c   :  { %627 = vmatprep.subr.mxu0 %v2454_v14  ;;  %770 = vmatprep.subr.mxu1 %v2454_v14  ;;  %v2157_v14 = vld [vmem:[%s4901_s0 + $0xf0] sm:$0xff]  ;;  %5015 = vst [vmem:[#allocation7_spill] sm:$0xff] %v2987_v45 }
  0x3d   :  { %628 = vmatpush1.msra.mxu0 %v2461_v15  ;;  %771 = vmatpush1.msra.mxu1 %v2461_v15  ;;  %v2178_v15 = vld [vmem:[%s4901_s0 + $0x160] sm:$0xff]  ;;  %v2165_v46 = vld [vmem:[%s4901_s0 + $0x130] sm:$0xff] }
  0x3e   :  { %629 = vmatprep.subr.mxu0 %v2468_v16  ;;  %772 = vmatprep.subr.mxu1 %v2468_v16  ;;  %v2160_v16 = vld [vmem:[%s4901_s0 + $0x108] sm:$0xff] }
  0x3f   :  { %2128 = vmatprep.mubr.msk.f32.mxu0 %vm257_vm0, %v248_v48  ;;  %2149 = vmatprep.mubr.msk.f32.mxu1 %vm257_vm0, %v2138_v49  ;;  %v2168_v48 = vld [vmem:[%s4901_s0 + $0x148] sm:$0xff]  ;;  %v2189_v49 = vld [vmem:[%s4901_s0 + $0x1b8] sm:$0xff] }
  0x40   :  { %630 = vmatpush1.msra.mxu0 %v2475_v17  ;;  %773 = vmatpush1.msra.mxu1 %v2475_v17  ;;  %v2181_v17 = vld [vmem:[%s4901_s0 + $0x178] sm:$0xff] }
  0x41   :  { %356 = vmatmul.mubr.f32.gmra.mxu0 %v247_v50  ;;  %499 = vmatmul.mubr.f32.gmra.mxu1 %v2137_v51  ;;  %v3009_v50 = vld [vmem:[%s4902_s3 + $0xa8] sm:$0xff] }
  0x42   :  { %631 = vmatprep.subr.mxu0 %v2482_v18  ;;  %774 = vmatprep.subr.mxu1 %v2482_v18  ;;  %v2870_v18 = vld [vmem:[%s4902_s3 + $0xe8] sm:$0xff] }
  0x43   :  { %632 = vmatpush1.msra.mxu0 %v2489_v19  ;;  %775 = vmatpush1.msra.mxu1 %v2489_v19  ;;  %v171_v19 = vld [vmem:[%s4902_s3 + $0x2e8] sm:$0xff] }
  0x44   :  { %633 = vmatprep.subr.mxu0 %v2496_v20  ;;  %776 = vmatprep.subr.mxu1 %v2496_v20  ;;  %v2878_v20 = vld [vmem:[%s4902_s3 + $0xe0] sm:$0xff]  ;;  %v3015_v51 = vld [vmem:[%s4902_s3 + $0x2a8] sm:$0xff] }
  0x45   :  { %2129 = vmatprep.mubr.msk.f32.mxu0 %vm257_vm0, %v250_v52  ;;  %2150 = vmatprep.mubr.msk.f32.mxu1 %vm257_vm0, %v2140_v53  ;;  %5016 = vst [vmem:[#allocation8_spill] sm:$0xff] %v3015_v51  ;;  %v3020_v52 = vld [vmem:[%s4902_s3 + $0xa0] sm:$0xff] }
  0x46   :  { %634 = vmatpush1.msra.mxu0 %v2503_v21  ;;  %777 = vmatpush1.msra.mxu1 %v2503_v21  ;;  %v170_v21 = vld [vmem:[%s4902_s3 + $0x2e0] sm:$0xff] }
  0x47   :  { %362 = vmatmul.mubr.f32.gmra.mxu0 %v249_v54  ;;  %505 = vmatmul.mubr.f32.gmra.mxu1 %v2139_v55  ;;  %v3025_v53 = vld [vmem:[%s4902_s3 + $0x2a0] sm:$0xff]  ;;  %v2188_v55 = vld [vmem:[%s4901_s0 + $0x1b0] sm:$0xff] }
  0x48   :  { %635 = vmatprep.subr.mxu0 %v2510_v22  ;;  %778 = vmatprep.subr.mxu1 %v2510_v22  ;;  %v2159_v22 = vld [vmem:[%s4901_s0 + $0x100] sm:$0xff]  ;;  %5017 = vst [vmem:[#allocation9_spill] sm:$0xff] %v3025_v53 }
  0x49   :  { %636 = vmatpush1.msra.mxu0 %v2517_v23  ;;  %779 = vmatpush1.msra.mxu1 %v2517_v23  ;;  %v2180_v23 = vld [vmem:[%s4901_s0 + $0x170] sm:$0xff]  ;;  %v2167_v54 = vld [vmem:[%s4901_s0 + $0x140] sm:$0xff] }
  0x4a   :  { %637 = vmatprep.subr.mxu0 %v2524_v24  ;;  %780 = vmatprep.subr.mxu1 %v2524_v24  ;;  %v2162_v24 = vld [vmem:[%s4901_s0 + $0x118] sm:$0xff] }
  0x4b   :  { %2130 = vmatprep.mubr.msk.f32.mxu0 %vm257_vm0, %v252_v56  ;;  %2151 = vmatprep.mubr.msk.f32.mxu1 %vm257_vm0, %v2142_v57  ;;  %v3039_v56 = vld [vmem:[%s4902_s3 + $0x98] sm:$0xff] }
  0x4c   :  { %638 = vmatpush1.msra.mxu0 %v2531_v25  ;;  %781 = vmatpush1.msra.mxu1 %v2531_v25  ;;  %v2183_v25 = vld [vmem:[%s4901_s0 + $0x188] sm:$0xff]  ;;  %v3045_v57 = vld [vmem:[%s4902_s3 + $0x298] sm:$0xff] }
  0x4d   :  { %368 = vmatmul.mubr.f32.gmra.mxu0 %v251_v58  ;;  %511 = vmatmul.mubr.f32.gmra.mxu1 %v2141_v59  ;;  %5018 = vst [vmem:[#allocation10_spill] sm:$0xff] %v3045_v57  ;;  %v3051_v58 = vld [vmem:[%s4902_s3 + $0x90] sm:$0xff] }
  0x4e   :  { %639 = vmatprep.subr.mxu0 %v2538_v26  ;;  %782 = vmatprep.subr.mxu1 %v2538_v26  ;;  %v2902_v26 = vld [vmem:[%s4902_s3 + $0xd8] sm:$0xff]  ;;  %v3057_v59 = vld [vmem:[%s4902_s3 + $0x290] sm:$0xff] }
  0x4f   :  { %640 = vmatpush1.msra.mxu0 %v2545_v27  ;;  %783 = vmatpush1.msra.mxu1 %v2545_v27  ;;  %v169_v27 = vld [vmem:[%s4902_s3 + $0x2d8] sm:$0xff]  ;;  %5019 = vst [vmem:[#allocation11_spill] sm:$0xff] %v3057_v59 }
  0x50   :  { %641 = vmatprep.subr.mxu0 %v2552_v28  ;;  %784 = vmatprep.subr.mxu1 %v2552_v28  ;;  %v2910_v28 = vld [vmem:[%s4902_s3 + $0xd0] sm:$0xff] }
  0x51   :  { %2131 = vmatprep.mubr.msk.f32.mxu0 %vm257_vm0, %v254_v60  ;;  %2152 = vmatprep.mubr.msk.f32.mxu1 %vm257_vm0, %v2144_v61  ;;  %v3062_v60 = vld [vmem:[%s4902_s3 + $0x88] sm:$0xff] }
  0x52   :  { %642 = vmatpush1.msra.mxu0 %v2559_v29  ;;  %785 = vmatpush1.msra.mxu1 %v2559_v29  ;;  %v168_v29 = vld [vmem:[%s4902_s3 + $0x2d0] sm:$0xff]  ;;  %v3067_v61 = vld [vmem:[%s4902_s3 + $0x288] sm:$0xff] }
  0x53   :  { %374 = vmatmul.mubr.f32.gmra.mxu0 %v253_v62  ;;  %517 = vmatmul.mubr.f32.gmra.mxu1 %v2143_v63  ;;  %5020 = vst [vmem:[#allocation12_spill] sm:$0xff] %v3067_v61  ;;  %v3073_v62 = vld [vmem:[%s4902_s3 + $0x80] sm:$0xff] }
  0x54   :  { %643 = vmatprep.subr.mxu0 %v2566_v30  ;;  %786 = vmatprep.subr.mxu1 %v2566_v30  ;;  %v2161_v30 = vld [vmem:[%s4901_s0 + $0x110] sm:$0xff]  ;;  %v3079_v63 = vld [vmem:[%s4902_s3 + $0x280] sm:$0xff] }
  0x55   :  { %644 = vmatpush1.msra.mxu0 %v2573_v31  ;;  %787 = vmatpush1.msra.mxu1 %v2573_v31  ;;  %v2182_v31 = vld [vmem:[%s4901_s0 + $0x180] sm:$0xff]  ;;  %5021 = vst [vmem:[#allocation13_spill] sm:$0xff] %v3079_v63 }
  0x56   :  { %669 = vmatprep.subr.mxu0 %v2580_v32  ;;  %812 = vmatprep.subr.mxu1 %v2580_v32  ;;  %v2164_v32 = vld [vmem:[%s4901_s0 + $0x128] sm:$0xff] }
  0x57   :  { %2132 = vmatprep.mubr.msk.f32.mxu0 %vm257_vm0, %v256_v0  ;;  %2153 = vmatprep.mubr.msk.f32.mxu1 %vm257_vm0, %v2146_v1  ;;  %v3085_v0 = vld [vmem:[%s4902_s3 + $0x78] sm:$0xff] }
  0x58   :  { %670 = vmatpush2.msra.mxu0 %v2587_v33  ;;  %813 = vmatpush2.msra.mxu1 %v2587_v33  ;;  %v2185_v33 = vld [vmem:[%s4901_s0 + $0x198] sm:$0xff] }
  0x59   :  { %380 = vmatmul.mubr.f32.gmra.mxu0 %v255_v2  ;;  %523 = vmatmul.mubr.f32.gmra.mxu1 %v2145_v3  ;;  %v3091_v1 = vld [vmem:[%s4902_s3 + $0x278] sm:$0xff]  ;;  %v3097_v2 = vld [vmem:[%s4902_s3 + $0x70] sm:$0xff] }
  0x5a   :  { %671 = vmatprep.subr.mxu0 %v2594_v34  ;;  %814 = vmatprep.subr.mxu1 %v2594_v34  ;;  %v2934_v34 = vld [vmem:[%s4902_s3 + $0xc8] sm:$0xff]  ;;  %5022 = vst [vmem:[#allocation14_spill] sm:$0xff] %v3091_v1  ;;  %v3103_v3 = vld [vmem:[%s4902_s3 + $0x270] sm:$0xff] }
  0x5b   :  { %672 = vmatpush2.msra.mxu0 %v2601_v35  ;;  %815 = vmatpush2.msra.mxu1 %v2601_v35  ;;  %v2939_v35 = vld [vmem:[%s4902_s3 + $0x2c8] sm:$0xff]  ;;  %5023 = vst [vmem:[#allocation15_spill] sm:$0xff] %v3103_v3 }
  0x5c   :  { %673 = vmatprep.subr.mxu0 %v2608_v36  ;;  %816 = vmatprep.subr.mxu1 %v2608_v36  ;;  %5012 = vst [vmem:[#allocation4_spill] sm:$0xff] %v2939_v35  ;;  %v2944_v36 = vld [vmem:[%s4902_s3 + $0xc0] sm:$0xff] }
  0x5d   :  { %674 = vmatpush2.msra.mxu0 %v2615_v37  ;;  %817 = vmatpush2.msra.mxu1 %v2615_v37  ;;  %v2949_v37 = vld [vmem:[%s4902_s3 + $0x2c0] sm:$0xff] }
  0x5e   :  { %675 = vmatprep.subr.mxu0 %v2622_v38  ;;  %818 = vmatprep.subr.mxu1 %v2622_v38  ;;  %5013 = vst [vmem:[#allocation5_spill] sm:$0xff] %v2949_v37  ;;  %v2163_v38 = vld [vmem:[%s4901_s0 + $0x120] sm:$0xff] }
  0x5f   :  { %676 = vmatpush2.msra.mxu0 %v2629_v39  ;;  %2169 = vmatprep.mubr.msk.f32.mxu0 %vm257_vm0, %v2156_v4  ;;  %v3109_v4 = vld [vmem:[%s4902_s3 + $0x68] sm:$0xff] }
  0x60   :  { %819 = vmatpush2.msra.mxu1 %v2629_v39  ;;  %2190 = vmatprep.mubr.msk.f32.mxu1 %vm257_vm0, %v2177_v5  ;;  %v2184_v39 = vld [vmem:[%s4901_s0 + $0x190] sm:$0xff]  ;;  %v3115_v5 = vld [vmem:[%s4902_s3 + $0x268] sm:$0xff] }
  0x61   :  { %678 = vmatmul.mubr.f32.vlgmr.msra.gmra.mxu0 %v2155_v6  ;;  %821 = vmatmul.mubr.f32.vlgmr.msra.gmra.mxu1 %v2176_v7  ;;  %5024 = vst [vmem:[#allocation16_spill] sm:$0xff] %v3115_v5  ;;  %v3121_v6 = vld [vmem:[%s4902_s3 + $0x60] sm:$0xff] }
  0x62   :  { %2170 = vmatprep.mubr.msk.f32.mxu0 %vm257_vm0, %v2158_v8  ;;  %2191 = vmatprep.mubr.msk.f32.mxu1 %vm257_vm0, %v2179_v9  ;;  %v3127_v7 = vld [vmem:[%s4902_s3 + $0x260] sm:$0xff]  ;;  %v3133_v8 = vld [vmem:[%s4902_s3 + $0x58] sm:$0xff] }
  0x63   :  { %918 = vmatprep.subr.mxu0 %v2838_v10  ;;  %1013 = vmatprep.subr.mxu1 %v173_v11  ;;  %5025 = vst [vmem:[#allocation17_spill] sm:$0xff] %v3127_v7  ;;  %v3139_v9 = vld [vmem:[%s4902_s3 + $0x258] sm:$0xff]  ;;  %v3145_v11 = vld [vmem:[%s4902_s3 + $0x50] sm:$0xff] }
  0x64   :  { %919 = vmatpush1.msra.mxu0 %v2846_v12  ;;  %1014 = vmatpush1.msra.mxu1 %v172_v13  ;;  %5026 = vst [vmem:[#allocation18_spill] sm:$0xff] %v3139_v9  ;;  %v3151_v13 = vld [vmem:[%s4902_s3 + $0x250] sm:$0xff] }
  0x65   :  { %684 = vmatmul.mubr.f32.gmra.mxu0 %v2157_v14  ;;  %827 = vmatmul.mubr.f32.gmra.mxu1 %v2178_v15  ;;  %5027 = vst [vmem:[#allocation19_spill] sm:$0xff] %v3151_v13  ;;  %v3157_v14 = vld [vmem:[%s4902_s3 + $0x48] sm:$0xff] }
  0x66   :  { %2171 = vmatprep.mubr.msk.f32.mxu0 %vm257_vm0, %v2160_v16  ;;  %2192 = vmatprep.mubr.msk.f32.mxu1 %vm257_vm0, %v2181_v17  ;;  %v3163_v15 = vld [vmem:[%s4902_s3 + $0x248] sm:$0xff]  ;;  %v3169_v16 = vld [vmem:[%s4902_s3 + $0x40] sm:$0xff] }
  0x67   :  { %920 = vmatprep.subr.mxu0 %v2870_v18  ;;  %1015 = vmatprep.subr.mxu1 %v171_v19  ;;  %5028 = vst [vmem:[#allocation20_spill] sm:$0xff] %v3163_v15  ;;  %5029 = vst [vmem:[#allocation21_spill] sm:$0xff] %v3169_v16  ;;  %v3175_v17 = vld [vmem:[%s4902_s3 + $0x240] sm:$0xff]  ;;  %v3181_v19 = vld [vmem:[%s4902_s3 + $0x38] sm:$0xff] }
  0x68   :  { %921 = vmatpush1.msra.mxu0 %v2878_v20  ;;  %1016 = vmatpush1.msra.mxu1 %v170_v21  ;;  %5030 = vst [vmem:[#allocation22_spill] sm:$0xff] %v3175_v17  ;;  %5031 = vst [vmem:[#allocation23_spill] sm:$0xff] %v3181_v19  ;;  %v3187_v21 = vld [vmem:[%s4902_s3 + $0x238] sm:$0xff] }
  0x69   :  { %690 = vmatmul.mubr.f32.gmra.mxu0 %v2159_v22  ;;  %833 = vmatmul.mubr.f32.gmra.mxu1 %v2180_v23  ;;  %5032 = vst [vmem:[#allocation24_spill] sm:$0xff] %v3187_v21  ;;  %v3193_v22 = vld [vmem:[%s4902_s3 + $0x30] sm:$0xff] }
  0x6a   :  { %2172 = vmatprep.mubr.msk.f32.mxu0 %vm257_vm0, %v2162_v24  ;;  %2193 = vmatprep.mubr.msk.f32.mxu1 %vm257_vm0, %v2183_v25  ;;  %5033 = vst [vmem:[#allocation25_spill] sm:$0xff] %v3193_v22  ;;  %v3199_v23 = vld [vmem:[%s4902_s3 + $0x230] sm:$0xff]  ;;  %v3205_v24 = vld [vmem:[%s4902_s3 + $0x28] sm:$0xff] }
  0x6b   :  { %922 = vmatprep.subr.mxu0 %v2902_v26  ;;  %1017 = vmatprep.subr.mxu1 %v169_v27  ;;  %5034 = vst [vmem:[#allocation26_spill] sm:$0xff] %v3199_v23  ;;  %5035 = vst [vmem:[#allocation27_spill] sm:$0xff] %v3205_v24  ;;  %v3211_v25 = vld [vmem:[%s4902_s3 + $0x228] sm:$0xff]  ;;  %v3217_v27 = vld [vmem:[%s4902_s3 + $0x20] sm:$0xff] }
  0x6c   :  { %923 = vmatpush1.msra.mxu0 %v2910_v28  ;;  %1018 = vmatpush1.msra.mxu1 %v168_v29  ;;  %5036 = vst [vmem:[#allocation28_spill] sm:$0xff] %v3211_v25  ;;  %5037 = vst [vmem:[#allocation29_spill] sm:$0xff] %v3217_v27  ;;  %v3223_v29 = vld [vmem:[%s4902_s3 + $0x220] sm:$0xff] }
  0x6d   :  { %696 = vmatmul.mubr.f32.gmra.mxu0 %v2161_v30  ;;  %839 = vmatmul.mubr.f32.gmra.mxu1 %v2182_v31  ;;  %5038 = vst [vmem:[#allocation30_spill] sm:$0xff] %v3223_v29  ;;  %v3229_v30 = vld [vmem:[%s4902_s3 + $0x18] sm:$0xff] }
  0x6e   :  { %2173 = vmatprep.mubr.msk.f32.mxu0 %vm257_vm0, %v2164_v32  ;;  %2194 = vmatprep.mubr.msk.f32.mxu1 %vm257_vm0, %v2185_v33  ;;  %5039 = vst [vmem:[#allocation31_spill] sm:$0xff] %v3229_v30  ;;  %v3235_v31 = vld [vmem:[%s4902_s3 + $0x218] sm:$0xff]  ;;  %v3241_v32 = vld [vmem:[%s4902_s3 + $0x10] sm:$0xff]  ;;  %v3248_v33 = vld [vmem:[%s4902_s3 + $0x8] sm:$0xff] }
  0x6f   :  { %924 = vmatprep.subr.mxu0 %v2934_v34  ;;  %1019 = vmatprep.subr.mxu1 %v2939_v35  ;;  %5040 = vst [vmem:[#allocation32_spill] sm:$0xff] %v3235_v31  ;;  %5041 = vst [vmem:[#allocation33_spill] sm:$0xff] %v3241_v32 }
  0x70   :  { %925 = vmatpush1.msra.mxu0 %v2944_v36  ;;  %1020 = vmatpush1.msra.mxu1 %v2949_v37  ;;  %5042 = vst [vmem:[#allocation34_spill] sm:$0xff] %v3248_v33 }
  0x71   :  { %702 = vmatmul.mubr.f32.gmra.mxu0 %v2163_v38  ;;  %845 = vmatmul.mubr.f32.gmra.mxu1 %v2184_v39  ;;  %v3255_v38 = vld [vmem:[%s4902_s3] sm:$0xff]  ;;  %v3261_v39 = vld [vmem:[%s4902_s3 + $0x210] sm:$0xff] }
  0x72   :  { %2174 = vmatprep.mubr.msk.f32.mxu0 %vm257_vm0, %v2166_v40  ;;  %2195 = vmatprep.mubr.msk.f32.mxu1 %vm257_vm0, %v2187_v41  ;;  %5043 = vst [vmem:[#allocation35_spill] sm:$0xff] %v3255_v38  ;;  %5044 = vst [vmem:[#allocation36_spill] sm:$0xff] %v3261_v39  ;;  %v3267_v40 = vld [vmem:[%s4902_s3 + $0x1f8] sm:$0xff]  ;;  %v3273_v41 = vld [vmem:[%s4902_s3 + $0x208] sm:$0xff] }
  0x73   :  { %926 = vmatprep.subr.mxu0 %v2971_v42  ;;  %1021 = vmatprep.subr.mxu1 %v2977_v43  ;;  %5045 = vst [vmem:[#allocation37_spill] sm:$0xff] %v3267_v40  ;;  %5046 = vst [vmem:[#allocation38_spill] sm:$0xff] %v3273_v41 }
  0x74   :  { %927 = vmatpush1.msra.mxu0 %v2982_v44  ;;  %1022 = vmatpush1.msra.mxu1 %v2987_v45 }
  0x75   :  { %708 = vmatmul.mubr.f32.gmra.mxu0 %v2165_v46  ;;  %851 = vmatmul.mubr.f32.gmra.mxu1 %v2186_v47  ;;  %v3278_v46 = vld [vmem:[%s4902_s3 + $0x200] sm:$0xff]  ;;  %v3284_v47 = vld [vmem:[%s4902_s3 + $0x1f0] sm:$0xff] }
  0x76   :  { %2175 = vmatprep.mubr.msk.f32.mxu0 %vm257_vm0, %v2168_v48  ;;  %2196 = vmatprep.mubr.msk.f32.mxu1 %vm257_vm0, %v2189_v49  ;;  %5047 = vst [vmem:[#allocation39_spill] sm:$0xff] %v3278_v46  ;;  %5048 = vst [vmem:[#allocation40_spill] sm:$0xff] %v3284_v47  ;;  %v3290_v48 = vld [vmem:[%s4902_s3 + $0x3f8] sm:$0xff]  ;;  %v3296_v49 = vld [vmem:[%s4902_s3 + $0x1e8] sm:$0xff] }
  0x77   :  { %928 = vmatprep.subr.mxu0 %v3009_v50  ;;  %1023 = vmatprep.subr.mxu1 %v3015_v51  ;;  %5049 = vst [vmem:[#allocation41_spill] sm:$0xff] %v3290_v48  ;;  %5050 = vst [vmem:[#allocation42_spill] sm:$0xff] %v3296_v49 }
  0x78   :  { %929 = vmatpush1.msra.mxu0 %v3020_v52  ;;  %1024 = vmatpush1.msra.mxu1 %v3025_v53 }
  0x79   :  { %714 = vmatmul.mubr.f32.gmra.mxu0 %v2167_v54  ;;  %857 = vmatmul.mubr.f32.gmra.mxu1 %v2188_v55  ;;  %v3303_v54 = vld [vmem:[%s4902_s3 + $0x1e0] sm:$0xff]  ;;  %v3310_v55 = vld [vmem:[%s4902_s3 + $0x1d8] sm:$0xff] }
  0x7a   :  { %930 = vmatprep.subr.mxu0 %v3039_v56  ;;  %1025 = vmatprep.subr.mxu1 %v3045_v57  ;;  %5051 = vst [vmem:[#allocation43_spill] sm:$0xff] %v3303_v54  ;;  %5052 = vst [vmem:[#allocation44_spill] sm:$0xff] %v3310_v55 }
  0x7b   :  { %931 = vmatpush1.msra.mxu0 %v3051_v58  ;;  %1026 = vmatpush1.msra.mxu1 %v3057_v59 }
  0x7c   :  { %932 = vmatprep.subr.mxu0 %v3062_v60  ;;  %1027 = vmatprep.subr.mxu1 %v3067_v61 }
  0x7d   :  { %933 = vmatpush1.msra.mxu0 %v3073_v62  ;;  %1028 = vmatpush1.msra.mxu1 %v3079_v63 }
  0x7e   :  { %934 = vmatprep.subr.mxu0 %v3085_v0  ;;  %1029 = vmatprep.subr.mxu1 %v3091_v1 }
  0x7f   :  { %935 = vmatpush1.msra.mxu0 %v3097_v2  ;;  %1030 = vmatpush1.msra.mxu1 %v3103_v3 }
  0x80   :  { %936 = vmatprep.subr.mxu0 %v3109_v4  ;;  %1031 = vmatprep.subr.mxu1 %v3115_v5  ;;  %v3460_v5 = vld [vmem:[%s4902_s3 + $0x170] sm:$0xff] }
  0x81   :  { %937 = vmatpush1.msra.mxu0 %v3121_v6  ;;  %1032 = vmatpush1.msra.mxu1 %v3127_v7  ;;  %v3448_v7 = vld [vmem:[%s4902_s3 + $0x178] sm:$0xff]  ;;  %5077 = vst [vmem:[#allocation69_spill] sm:$0xff] %v3460_v5 }
  0x82   :  { %938 = vmatprep.subr.mxu0 %v3133_v8  ;;  %1033 = vmatprep.subr.mxu1 %v3139_v9  ;;  %v3436_v9 = vld [vmem:[%s4902_s3 + $0x180] sm:$0xff]  ;;  %5075 = vst [vmem:[#allocation67_spill] sm:$0xff] %v3448_v7 }
  0x83   :  { %939 = vmatpush1.msra.mxu0 %v3145_v11  ;;  %1034 = vmatpush1.msra.mxu1 %v3151_v13  ;;  %v3424_v13 = vld [vmem:[%s4902_s3 + $0x188] sm:$0xff]  ;;  %5073 = vst [vmem:[#allocation65_spill] sm:$0xff] %v3436_v9 }
  0x84   :  { %940 = vmatprep.subr.mxu0 %v3157_v14  ;;  %1035 = vmatprep.subr.mxu1 %v3163_v15  ;;  %v3412_v15 = vld [vmem:[%s4902_s3 + $0x190] sm:$0xff]  ;;  %5071 = vst [vmem:[#allocation63_spill] sm:$0xff] %v3424_v13 }
  0x85   :  { %941 = vmatpush1.msra.mxu0 %v3169_v16  ;;  %1036 = vmatpush1.msra.mxu1 %v3175_v17  ;;  %v3400_v17 = vld [vmem:[%s4902_s3 + $0x198] sm:$0xff]  ;;  %5069 = vst [vmem:[#allocation61_spill] sm:$0xff] %v3412_v15 }
  0x86   :  { %942 = vmatprep.subr.mxu0 %v3181_v19  ;;  %1037 = vmatprep.subr.mxu1 %v3187_v21  ;;  %v3388_v21 = vld [vmem:[%s4902_s3 + $0x1a0] sm:$0xff]  ;;  %5067 = vst [vmem:[#allocation59_spill] sm:$0xff] %v3400_v17 }
  0x87   :  { %943 = vmatpush1.msra.mxu0 %v3193_v22  ;;  %1038 = vmatpush1.msra.mxu1 %v3199_v23  ;;  %v3369_v23 = vld [vmem:[%s4902_s3 + $0x3d0] sm:$0xff]  ;;  %5065 = vst [vmem:[#allocation57_spill] sm:$0xff] %v3388_v21 }
  0x88   :  { %944 = vmatprep.subr.mxu0 %v3205_v24  ;;  %1039 = vmatprep.subr.mxu1 %v3211_v25  ;;  %v3357_v25 = vld [vmem:[%s4902_s3 + $0x1b8] sm:$0xff]  ;;  %5062 = vst [vmem:[#allocation54_spill] sm:$0xff] %v3369_v23  ;;  %v3707_v24 = vld [vmem:[%s4903_s2] ss:$0 sm:$0xff] }
  0x89   :  { %945 = vmatpush1.msra.mxu0 %v3217_v27  ;;  %1040 = vmatpush1.msra.mxu1 %v3223_v29  ;;  %v3350_v29 = vld [vmem:[%s4902_s3 + $0x3d8] sm:$0xff]  ;;  %5060 = vst [vmem:[#allocation52_spill] sm:$0xff] %v3357_v25 }
  0x8a   :  { %946 = vmatprep.subr.mxu0 %v3229_v30  ;;  %1041 = vmatprep.subr.mxu1 %v3235_v31  ;;  %v3338_v31 = vld [vmem:[%s4902_s3 + $0x3e0] sm:$0xff]  ;;  %5059 = vst [vmem:[#allocation51_spill] sm:$0xff] %v3350_v29 }
  0x8b   :  { %947 = vmatpush1.msra.mxu0 %v3241_v32  ;;  %1042 = vmatpush1.msra.mxu1 %v3261_v39  ;;  %v3333_v39 = vld [vmem:[%s4902_s3 + $0x3e8] sm:$0xff]  ;;  %5057 = vst [vmem:[#allocation49_spill] sm:$0xff] %v3338_v31 }
  0x8c   :  { %948 = vmatprep.subr.mxu0 %v3248_v33  ;;  %1043 = vmatprep.subr.mxu1 %v3273_v41  ;;  %v3321_v41 = vld [vmem:[%s4902_s3 + $0x3f0] sm:$0xff]  ;;  %5056 = vst [vmem:[#allocation48_spill] sm:$0xff] %v3333_v39 }
  0x8d   :  { %949 = vmatpush1.msra.mxu0 %v3255_v38  ;;  %1044 = vmatpush1.msra.mxu1 %v3278_v46  ;;  %v3316_v46 = vld [vmem:[%s4902_s3 + $0x1d0] sm:$0xff]  ;;  %5054 = vst [vmem:[#allocation46_spill] sm:$0xff] %v3321_v41 }
  0x8e   :  { %950 = vmatprep.subr.mxu0 %v3267_v40  ;;  %1045 = vmatprep.subr.mxu1 %v3290_v48  ;;  %5053 = vst [vmem:[#allocation45_spill] sm:$0xff] %v3316_v46  ;;  %v3328_v48 = vld [vmem:[%s4902_s3 + $0x1c8] sm:$0xff] }
  0x8f   :  { %951 = vmatpush2.msra.mxu0 %v3284_v47  ;;  %1046 = vmatpush2.msra.mxu1 %v3321_v41  ;;  %5055 = vst [vmem:[#allocation47_spill] sm:$0xff] %v3328_v48  ;;  %v3345_v41 = vld [vmem:[%s4902_s3 + $0x1c0] sm:$0xff] }
  0x90   :  { %952 = vmatprep.subr.mxu0 %v3296_v49  ;;  %1047 = vmatprep.subr.mxu1 %v3333_v39  ;;  %5058 = vst [vmem:[#allocation50_spill] sm:$0xff] %v3345_v41  ;;  %v3364_v39 = vld [vmem:[%s4902_s3 + $0x1b0] sm:$0xff] }
  0x91   :  { %953 = vmatpush2.msra.mxu0 %v3303_v54  ;;  %1048 = vmatpush2.msra.mxu1 %v3338_v31  ;;  %5061 = vst [vmem:[#allocation53_spill] sm:$0xff] %v3364_v39  ;;  %v3376_v31 = vld [vmem:[%s4902_s3 + $0x1a8] sm:$0xff] }
  0x92   :  { %954 = vmatprep.subr.mxu0 %v3310_v55  ;;  %1049 = vmatprep.subr.mxu1 %v3350_v29  ;;  %5063 = vst [vmem:[#allocation55_spill] sm:$0xff] %v3376_v31  ;;  %v3381_v29 = vld [vmem:[%s4902_s3 + $0x3c8] sm:$0xff] }
  0x93   :  { %955 = vmatpush2.msra.mxu0 %v3316_v46  ;;  %1050 = vmatpush2.msra.mxu1 %v3369_v23  ;;  %5064 = vst [vmem:[#allocation56_spill] sm:$0xff] %v3381_v29  ;;  %v3393_v23 = vld [vmem:[%s4902_s3 + $0x3c0] sm:$0xff] }
  0x94   :  { %956 = vmatprep.subr.mxu0 %v3328_v48  ;;  %1051 = vmatprep.subr.mxu1 %v3381_v29  ;;  %5066 = vst [vmem:[#allocation58_spill] sm:$0xff] %v3393_v23  ;;  %v3405_v29 = vld [vmem:[%s4902_s3 + $0x3b8] sm:$0xff] }
  0x95   :  { %957 = vmatpush2.msra.mxu0 %v3345_v41  ;;  %1052 = vmatpush2.msra.mxu1 %v3393_v23  ;;  %5068 = vst [vmem:[#allocation60_spill] sm:$0xff] %v3405_v29  ;;  %v3417_v23 = vld [vmem:[%s4902_s3 + $0x3b0] sm:$0xff] }
  0x96   :  { %958 = vmatprep.subr.mxu0 %v3357_v25  ;;  %1053 = vmatprep.subr.mxu1 %v3405_v29  ;;  %5070 = vst [vmem:[#allocation62_spill] sm:$0xff] %v3417_v23  ;;  %v3429_v29 = vld [vmem:[%s4902_s3 + $0x3a8] sm:$0xff] }
  0x97   :  { %959 = vmatpush2.msra.mxu0 %v3364_v39  ;;  %1054 = vmatpush2.msra.mxu1 %v3417_v23  ;;  %5072 = vst [vmem:[#allocation64_spill] sm:$0xff] %v3429_v29  ;;  %v3441_v23 = vld [vmem:[%s4902_s3 + $0x3a0] sm:$0xff] }
  0x98   :  { %960 = vmatprep.subr.mxu0 %v3376_v31  ;;  %1055 = vmatprep.subr.mxu1 %v3429_v29  ;;  %5074 = vst [vmem:[#allocation66_spill] sm:$0xff] %v3441_v23  ;;  %v3453_v29 = vld [vmem:[%s4902_s3 + $0x398] sm:$0xff] }
  0x99   :  { %961 = vmatpush2.msra.mxu0 %v3388_v21  ;;  %1056 = vmatpush2.msra.mxu1 %v3441_v23  ;;  %5076 = vst [vmem:[#allocation68_spill] sm:$0xff] %v3453_v29  ;;  %v3465_v23 = vld [vmem:[%s4902_s3 + $0x390] sm:$0xff] }
  0x9a   :  { %962 = vmatprep.subr.mxu0 %v3400_v17  ;;  %1057 = vmatprep.subr.mxu1 %v3453_v29  ;;  %5078 = vst [vmem:[#allocation70_spill] sm:$0xff] %v3465_v23  ;;  %v3477_v29 = vld [vmem:[%s4902_s3 + $0x388] sm:$0xff] }
  0x9b   :  { %963 = vmatpush2.msra.mxu0 %v3412_v15  ;;  %1058 = vmatpush2.msra.mxu1 %v3465_v23  ;;  %5080 = vst [vmem:[#allocation72_spill] sm:$0xff] %v3477_v29  ;;  %v3489_v23 = vld [vmem:[%s4902_s3 + $0x380] sm:$0xff] }
  0x9c   :  { %964 = vmatprep.subr.mxu0 %v3424_v13  ;;  %v3472_v13 = vld [vmem:[%s4902_s3 + $0x168] sm:$0xff]  ;;  %1059 = vmatprep.subr.mxu1 %v3477_v29  ;;  %5082 = vst [vmem:[#allocation74_spill] sm:$0xff] %v3489_v23  ;;  %v3501_v29 = vld [vmem:[%s4902_s3 + $0x378] sm:$0xff] }
  0x9d   :  { %965 = vmatpush2.msra.mxu0 %v3436_v9  ;;  %5079 = vst [vmem:[#allocation71_spill] sm:$0xff] %v3472_v13  ;;  %v3484_v9 = vld [vmem:[%s4902_s3 + $0x160] sm:$0xff]  ;;  %1060 = vmatpush2.msra.mxu1 %v3489_v23  ;;  %5084 = vst [vmem:[#allocation76_spill] sm:$0xff] %v3501_v29  ;;  %v3513_v23 = vld [vmem:[%s4902_s3 + $0x370] sm:$0xff] }
  0x9e   :  { %966 = vmatprep.subr.mxu0 %v3448_v7  ;;  %5081 = vst [vmem:[#allocation73_spill] sm:$0xff] %v3484_v9  ;;  %v3496_v7 = vld [vmem:[%s4902_s3 + $0x158] sm:$0xff]  ;;  %1061 = vmatprep.subr.mxu1 %v3501_v29  ;;  %5086 = vst [vmem:[#allocation78_spill] sm:$0xff] %v3513_v23  ;;  %v3525_v29 = vld [vmem:[%s4902_s3 + $0x368] sm:$0xff] }
  0x9f   :  { %967 = vmatpush2.msra.mxu0 %v3460_v5  ;;  %5083 = vst [vmem:[#allocation75_spill] sm:$0xff] %v3496_v7  ;;  %v3508_v5 = vld [vmem:[%s4902_s3 + $0x150] sm:$0xff]  ;;  %1062 = vmatpush2.msra.mxu1 %v3513_v23  ;;  %5088 = vst [vmem:[#allocation80_spill] sm:$0xff] %v3525_v29  ;;  %v3537_v23 = vld [vmem:[%s4902_s3 + $0x360] sm:$0xff] }
  0xa0   :  { %968 = vmatprep.subr.mxu0 %v3472_v13  ;;  %5085 = vst [vmem:[#allocation77_spill] sm:$0xff] %v3508_v5  ;;  %v3520_v13 = vld [vmem:[%s4902_s3 + $0x148] sm:$0xff]  ;;  %1063 = vmatprep.subr.mxu1 %v3525_v29  ;;  %5090 = vst [vmem:[#allocation82_spill] sm:$0xff] %v3537_v23  ;;  %v3549_v29 = vld [vmem:[%s4902_s3 + $0x358] sm:$0xff] }
  0xa1   :  { %969 = vmatpush2.msra.mxu0 %v3484_v9  ;;  %5087 = vst [vmem:[#allocation79_spill] sm:$0xff] %v3520_v13  ;;  %v3532_v9 = vld [vmem:[%s4902_s3 + $0x140] sm:$0xff]  ;;  %1064 = vmatpush2.msra.mxu1 %v3537_v23  ;;  %5092 = vst [vmem:[#allocation84_spill] sm:$0xff] %v3549_v29  ;;  %v3561_v23 = vld [vmem:[%s4902_s3 + $0x350] sm:$0xff] }
  0xa2   :  { %970 = vmatprep.subr.mxu0 %v3496_v7  ;;  %5089 = vst [vmem:[#allocation81_spill] sm:$0xff] %v3532_v9  ;;  %v3544_v7 = vld [vmem:[%s4902_s3 + $0x138] sm:$0xff]  ;;  %1065 = vmatprep.subr.mxu1 %v3549_v29  ;;  %5094 = vst [vmem:[#allocation86_spill] sm:$0xff] %v3561_v23  ;;  %v3573_v29 = vld [vmem:[%s4902_s3 + $0x348] sm:$0xff] }
  0xa3   :  { %971 = vmatpush2.msra.mxu0 %v3508_v5  ;;  %5091 = vst [vmem:[#allocation83_spill] sm:$0xff] %v3544_v7  ;;  %v3556_v5 = vld [vmem:[%s4902_s3 + $0x130] sm:$0xff]  ;;  %1066 = vmatpush2.msra.mxu1 %v3561_v23  ;;  %5096 = vst [vmem:[#allocation88_spill] sm:$0xff] %v3573_v29  ;;  %v3585_v23 = vld [vmem:[%s4902_s3 + $0x340] sm:$0xff] }
  0xa4   :  { %972 = vmatprep.subr.mxu0 %v3520_v13  ;;  %5093 = vst [vmem:[#allocation85_spill] sm:$0xff] %v3556_v5  ;;  %v3568_v13 = vld [vmem:[%s4902_s3 + $0x128] sm:$0xff]  ;;  %1067 = vmatprep.subr.mxu1 %v3573_v29  ;;  %5098 = vst [vmem:[#allocation90_spill] sm:$0xff] %v3585_v23  ;;  %v3597_v29 = vld [vmem:[%s4902_s3 + $0x338] sm:$0xff] }
  0xa5   :  { %973 = vmatpush2.msra.mxu0 %v3532_v9  ;;  %5095 = vst [vmem:[#allocation87_spill] sm:$0xff] %v3568_v13  ;;  %v3580_v9 = vld [vmem:[%s4902_s3 + $0x120] sm:$0xff]  ;;  %1068 = vmatpush2.msra.mxu1 %v3585_v23  ;;  %5100 = vst [vmem:[#allocation92_spill] sm:$0xff] %v3597_v29  ;;  %v3609_v23 = vld [vmem:[%s4902_s3 + $0x330] sm:$0xff] }
  0xa6   :  { %974 = vmatprep.subr.mxu0 %v3544_v7  ;;  %5097 = vst [vmem:[#allocation89_spill] sm:$0xff] %v3580_v9  ;;  %v3592_v7 = vld [vmem:[%s4902_s3 + $0x118] sm:$0xff]  ;;  %1069 = vmatprep.subr.mxu1 %v3597_v29  ;;  %5102 = vst [vmem:[#allocation94_spill] sm:$0xff] %v3609_v23  ;;  %v3621_v29 = vld [vmem:[%s4902_s3 + $0x328] sm:$0xff] }
  0xa7   :  { %975 = vmatpush2.msra.mxu0 %v3556_v5  ;;  %5099 = vst [vmem:[#allocation91_spill] sm:$0xff] %v3592_v7  ;;  %v3604_v5 = vld [vmem:[%s4902_s3 + $0x110] sm:$0xff]  ;;  %1070 = vmatpush2.msra.mxu1 %v3609_v23  ;;  %5104 = vst [vmem:[#allocation96_spill] sm:$0xff] %v3621_v29  ;;  %v3633_v23 = vld [vmem:[%s4902_s3 + $0x320] sm:$0xff] }
  0xa8   :  { %976 = vmatprep.subr.mxu0 %v3568_v13  ;;  %5101 = vst [vmem:[#allocation93_spill] sm:$0xff] %v3604_v5  ;;  %v3616_v13 = vld [vmem:[%s4902_s3 + $0x108] sm:$0xff]  ;;  %1071 = vmatprep.subr.mxu1 %v3621_v29  ;;  %5106 = vst [vmem:[#allocation98_spill] sm:$0xff] %v3633_v23  ;;  %v3645_v29 = vld [vmem:[%s4902_s3 + $0x4f8] sm:$0xff] }
  0xa9   :  { %977 = vmatpush2.msra.mxu0 %v3580_v9  ;;  %5103 = vst [vmem:[#allocation95_spill] sm:$0xff] %v3616_v13  ;;  %v3628_v9 = vld [vmem:[%s4902_s3 + $0x100] sm:$0xff]  ;;  %1072 = vmatpush2.msra.mxu1 %v3633_v23  ;;  %5108 = vst [vmem:[#allocation100_spill] sm:$0xff] %v3645_v29  ;;  %v3660_v23 = vld [vmem:[%s4902_s3 + $0x308] sm:$0xff] }
  0xaa   :  { %978 = vmatprep.subr.mxu0 %v3592_v7  ;;  %5105 = vst [vmem:[#allocation97_spill] sm:$0xff] %v3628_v9  ;;  %v3640_v7 = vld [vmem:[%s4902_s3 + $0x318] sm:$0xff]  ;;  %5110 = vst [vmem:[#allocation102_spill] sm:$0xff] %v3660_v23 }
  0xab   :  { %979 = vmatpush2.msra.mxu0 %v3604_v5  ;;  %5107 = vst [vmem:[#allocation99_spill] sm:$0xff] %v3640_v7  ;;  %1073 = vmatprep.subr.mxu1 %v3640_v7  ;;  %v3652_v5 = vld [vmem:[%s4902_s3 + $0x310] sm:$0xff]  ;;  %v3666_v7 = vld [vmem:[%s4902_s3 + $0x300] sm:$0xff] }
  0xac   :  { %980 = vmatprep.subr.mxu0 %v3616_v13  ;;  %5109 = vst [vmem:[#allocation101_spill] sm:$0xff] %v3652_v5  ;;  %1074 = vmatpush2.msra.mxu1 %v3652_v5  ;;  %5111 = vst [vmem:[#allocation103_spill] sm:$0xff] %v3666_v7 }
  0xad   :  { %981 = vmatpush2.msra.mxu0 %v3628_v9  ;;  %1075 = vmatprep.subr.mxu1 %v3660_v23 }
  0xae   :  { %1108 = vmatprep.subr.mxu0 %v3645_v29  ;;  %1076 = vmatpush2.msra.mxu1 %v3666_v7 }
  0xaf   :  { %1208 = vmatprep.subr.mxu1 %v2838_v10 }
  0xeb   :  { %v345_v9 = vpop.f32.mrf.mxu0  ;;  %v488_v5 = vpop.f32.mrf.mxu1 }
  0xec   :  { %v529_v47 = vmax.f32 %v345_v9, %v488_v5 }
  0xed   :  { %v347_v13 = vpop.f32.mrf.mxu0  ;;  %v490_v29 = vpop.f32.mrf.mxu1 }
  0xee   :  { %v530_v40 = vmax.f32 %v347_v13, %v490_v29 }
  0xf0   :  { %v543_v32 = vmax.f32 %v529_v47, %v530_v40 }
  0xf2   :  { %v556_v5 = vadd.f32 %v3707_v24, %v543_v32 }
  0xf4   :  { %v563_v32 = vmax.f32 %v556_v5, 0.0 }
  0xfb   :  { %v351_v3 = vpop.f32.mrf.mxu0  ;;  %v494_v15 = vpop.f32.mrf.mxu1 }
  0xfc   :  { %v531_v22 = vmax.f32 %v351_v3, %v494_v15 }
  0xfd   :  { %v353_v1 = vpop.f32.mrf.mxu0  ;;  %v496_v17 = vpop.f32.mrf.mxu1 }
  0xfe   :  { %v532_v19 = vmax.f32 %v353_v1, %v496_v17 }
 0x100   :  { %v544_v29 = vmax.f32 %v531_v22, %v532_v19 }
 0x101   :  { %v3670_v63 = vpop.f32.mrf.mxu0  ;;  %v3672_v23 = vpop.f32.mrf.mxu1 }
 0x103   :  { %v3674_v21 = vpop.f32.mrf.mxu0  ;;  %v3676_v61 = vpop.f32.mrf.mxu1 }
 0x104   :  { %v534_v15 = vmax.f32 %v3674_v21, %v3676_v61  ;;  %v3729_v61 = vld [vmem:[%s4902_s3 + $0x4e8] sm:$0xff]  ;;  %v557_v21 = vadd.f32 %v3707_v24, %v544_v29 }
 0x107   :  { %v3678_v31 = vpop.f32.mrf.mxu0  ;;  %v3680_v7 = vpop.f32.mrf.mxu1 }
 0x109   :  { %v3682_v10 = vpop.f32.mrf.mxu0  ;;  %v3684_v59 = vpop.f32.mrf.mxu1 }
 0x10d   :  { %v3686_v39 = vpop.f32.mrf.mxu0  ;;  %v3688_v57 = vpop.f32.mrf.mxu1 }
 0x10f   :  { %v3690_v25 = vpop.f32.mrf.mxu0  ;;  %v3692_v53 = vpop.f32.mrf.mxu1 }
 0x113   :  { %v3694_v41 = vpop.f32.mrf.mxu0  ;;  %v3696_v51 = vpop.f32.mrf.mxu1 }
 0x115   :  { %v3698_v48 = vpop.f32.mrf.mxu0  ;;  %v3700_v45 = vpop.f32.mrf.mxu1 }
 0x119   :  { %v381_v46 = vpop.f32.mrf.mxu0  ;;  %v524_v43 = vpop.f32.mrf.mxu1 }
 0x11a   :  { %v541_v55 = vmax.f32 %v381_v46, %v524_v43 }
 0x11b   :  { %v383_v37 = vpop.f32.mrf.mxu0  ;;  %v526_v54 = vpop.f32.mrf.mxu1 }
 0x11c   :  { %v542_v35 = vmax.f32 %v383_v37, %v526_v54 }
 0x11e   :  { %v3702_v49 = vmax.f32 %v541_v55, %v542_v35  ;;  %v533_v55 = vmax.f32 %v3670_v63, %v3672_v23 }
 0x121   :  { %v679_v38 = vpop.f32.mrf.mxu0  ;;  %v822_v33 = vpop.f32.mrf.mxu1 }
 0x122   :  { %v863_v43 = vmax.f32 %v679_v38, %v822_v33 }
 0x123   :  { %v681_v30 = vpop.f32.mrf.mxu0  ;;  %v824_v27 = vpop.f32.mrf.mxu1 }
 0x124   :  { %v864_v46 = vmax.f32 %v681_v30, %v824_v27 }
 0x125   :  { %v685_v16 = vpop.f32.mrf.mxu0  ;;  %v828_v37 = vpop.f32.mrf.mxu1 }
 0x126   :  { %v877_v35 = vmax.f32 %v863_v43, %v864_v46  ;;  %v865_v40 = vmax.f32 %v685_v16, %v828_v37  ;;  %v3721_v16 = vld [vmem:[%s4902_s3 + $0x4f0] sm:$0xff]  ;;  %v3735_v43 = vld [vmem:[%s4902_s3 + $0x4e0] sm:$0xff]  ;;  %v545_v46 = vmax.f32 %v533_v55, %v534_v15 }
 0x127   :  { %v687_v9 = vpop.f32.mrf.mxu0  ;;  %v830_v13 = vpop.f32.mrf.mxu1 }
 0x128   :  { %v866_v47 = vmax.f32 %v687_v9, %v830_v13  ;;  %v3711_v54 = vadd.f32 %v3707_v24, %v877_v35  ;;  %v3743_v9 = vld [vmem:[%s4902_s3 + $0x4d8] sm:$0xff]  ;;  %v535_v13 = vmax.f32 %v3678_v31, %v3680_v7  ;;  %v3758_v7 = vld [vmem:[%s4902_s3 + $0x4d0] sm:$0xff]  ;;  %v558_v15 = vadd.f32 %v3707_v24, %v545_v46 }
 0x129   :  { %v691_v3 = vpop.f32.mrf.mxu0  ;;  %v834_v1 = vpop.f32.mrf.mxu1 }
 0x12a   :  { %v878_v17 = vmax.f32 %v865_v40, %v866_v47  ;;  %v867_v27 = vmax.f32 %v691_v3, %v834_v1  ;;  %v891_v30 = vmax.f32 %v3711_v54, 0.0  ;;  %v536_v47 = vmax.f32 %v3682_v10, %v3684_v59  ;;  %v3765_v10 = vld [vmem:[%s4902_s3 + $0x4c8] sm:$0xff]  ;;  %v5188_v54 = vld [vmem:[#allocation60_spill] sm:$0xff] }
 0x12b   :  { %v693_v33 = vpop.f32.mrf.mxu0  ;;  %v836_v19 = vpop.f32.mrf.mxu1  ;;  %v3753_v1 = vmax.f32 %v557_v21, 0.0 }
 0x12c   :  { %v885_v22 = vadd.f32 %v3707_v24, %v878_v17  ;;  %v868_v63 = vmax.f32 %v693_v33, %v836_v19  ;;  %982 = vmatprep.mubr.f32.mxu0 %v891_v30  ;;  %v3775_v33 = vld [vmem:[%s4902_s3 + $0x4c0] sm:$0xff] }
 0x12d   :  { %v697_v23 = vpop.f32.mrf.mxu0  ;;  %v840_v38 = vpop.f32.mrf.mxu1  ;;  %983 = vmatmul.mubr.f32.vlgmr.msra.gmra.mxu0 %v563_v32 }
 0x12e   :  { %v3737_v37 = vmax.f32 %v885_v22, 0.0  ;;  %v879_v35 = vmax.f32 %v867_v27, %v868_v63  ;;  %v869_v5 = vmax.f32 %v697_v23, %v840_v38  ;;  %1109 = vmatpush1.msra.mxu0 %v3721_v16  ;;  %v546_v63 = vmax.f32 %v535_v13, %v536_v47  ;;  %v3785_v38 = vld [vmem:[%s4902_s3 + $0x4b8] sm:$0xff] }
 0x12f   :  { %1110 = vmatprep.subr.mxu0 %v3729_v61  ;;  %v699_v29 = vpop.f32.mrf.mxu0  ;;  %v842_v40 = vpop.f32.mrf.mxu1 }
 0x130   :  { %v886_v55 = vadd.f32 %v3707_v24, %v879_v35  ;;  %v870_v3 = vmax.f32 %v699_v29, %v842_v40  ;;  %1111 = vmatpush1.msra.mxu0 %v3735_v43  ;;  %988 = vmatprep.mubr.f32.mxu0 %v3737_v37  ;;  %v3789_v35 = vmax.f32 %v558_v15, 0.0  ;;  %v3800_v29 = vld [vmem:[%s4902_s3 + $0x4b0] sm:$0xff]  ;;  %v540_v15 = vmax.f32 %v3698_v48, %v3700_v45 }
 0x131   :  { %1077 = vmatprep.mubr.f32.mxu1 %v3737_v37  ;;  %1112 = vmatprep.subr.mxu0 %v3743_v9  ;;  %v703_v31 = vpop.f32.mrf.mxu0  ;;  %v846_v59 = vpop.f32.mrf.mxu1 }
 0x132   :  { %v3768_v17 = vmax.f32 %v886_v55, 0.0  ;;  %v880_v27 = vmax.f32 %v869_v5, %v870_v3  ;;  %v871_v32 = vmax.f32 %v703_v31, %v846_v59  ;;  %989 = vmatmul.mubr.f32.gmra.mxu0 %v3753_v1  ;;  %1078 = vmatmul.mubr.f32.vlgmr.msra.gmra.mxu1 %v3753_v1  ;;  %v537_v5 = vmax.f32 %v3686_v39, %v3688_v57  ;;  %v3827_v31 = vld [vmem:[%s4902_s3 + $0x498] sm:$0xff] }
 0x133   :  { %1113 = vmatpush1.msra.mxu0 %v3758_v7  ;;  %1209 = vmatpush1.msra.mxu1 %v2846_v12  ;;  %v705_v19 = vpop.f32.mrf.mxu0  ;;  %v848_v22 = vpop.f32.mrf.mxu1  ;;  %v539_v59 = vmax.f32 %v3694_v41, %v3696_v51  ;;  %v3859_v41 = vld [vmem:[%s4902_s3 + $0x480] sm:$0xff] }
 0x134   :  { %v887_v21 = vadd.f32 %v3707_v24, %v880_v27  ;;  %1114 = vmatprep.subr.mxu0 %v3765_v10  ;;  %1210 = vmatprep.subr.mxu1 %v2870_v18  ;;  %v872_v23 = vmax.f32 %v705_v19, %v848_v22  ;;  %v538_v18 = vmax.f32 %v3690_v25, %v3692_v53  ;;  %v3895_v22 = vld [vmem:[%s4902_s3 + $0x460] sm:$0xff] }
 0x135   :  { %1115 = vmatpush1.msra.mxu0 %v3775_v33  ;;  %1211 = vmatpush1.msra.mxu1 %v2878_v20  ;;  %v709_v12 = vpop.f32.mrf.mxu0  ;;  %v852_v46 = vpop.f32.mrf.mxu1  ;;  %v3807_v20 = vld [vmem:[%s4902_s3 + $0x4a8] sm:$0xff]  ;;  %v559_v25 = vadd.f32 %v3707_v24, %v546_v63  ;;  %v548_v48 = vmax.f32 %v539_v59, %v540_v15  ;;  %v2292_v59 = vld [vmem:[%s4902_s3 + $0x2e0] sm:$0xff] }
 0x136   :  { %v881_v13 = vmax.f32 %v871_v32, %v872_v23  ;;  %994 = vmatprep.mubr.f32.mxu0 %v3768_v17  ;;  %1083 = vmatprep.mubr.f32.mxu1 %v3768_v17  ;;  %v3810_v39 = vmax.f32 %v887_v21, 0.0  ;;  %v873_v40 = vmax.f32 %v709_v12, %v852_v46  ;;  %v547_v55 = vmax.f32 %v537_v5, %v538_v18  ;;  %v3915_v23 = vld [vmem:[%s4902_s3 + $0x450] sm:$0xff]  ;;  %v5112_v12 = vld [vmem:[#allocation21_spill] sm:$0xff]  ;;  %v5113_v46 = vld [vmem:[#allocation23_spill] sm:$0xff] }
 0x137   :  { %1116 = vmatprep.subr.mxu0 %v3785_v38  ;;  %1212 = vmatprep.subr.mxu1 %v2902_v26  ;;  %v711_v53 = vpop.f32.mrf.mxu0  ;;  %v854_v57 = vpop.f32.mrf.mxu1  ;;  %v3817_v26 = vld [vmem:[%s4902_s3 + $0x4a0] sm:$0xff]  ;;  %v5115_v5 = vld [vmem:[#allocation27_spill] sm:$0xff]  ;;  %v2295_v18 = vmov 0.0   ;;  %v5121_v15 = vld [vmem:[#allocation37_spill] sm:$0xff] }
 0x138   :  { %995 = vmatmul.mubr.f32.gmra.mxu0 %v3789_v35  ;;  %1084 = vmatmul.mubr.f32.gmra.mxu1 %v3789_v35  ;;  %v874_v47 = vmax.f32 %v711_v53, %v854_v57  ;;  %v888_v3 = vadd.f32 %v3707_v24, %v881_v13  ;;  %v560_v45 = vadd.f32 %v3707_v24, %v547_v55  ;;  %v5116_v13 = vld [vmem:[#allocation29_spill] sm:$0xff]  ;;  %v5117_v53 = vld [vmem:[#allocation31_spill] sm:$0xff] }
 0x139   :  { %1117 = vmatpush1.msra.mxu0 %v3800_v29  ;;  %1213 = vmatpush1.msra.mxu1 %v2910_v28  ;;  %v3835_v28 = vmax.f32 %v559_v25, 0.0  ;;  %v2289_v57 = vld [vmem:[%s4902_s3 + $0x2f8] sm:$0xff]  ;;  %v5118_v25 = vld [vmem:[#allocation33_spill] sm:$0xff] }
 0x13a   :  { %1118 = vmatprep.subr.mxu0 %v3807_v20  ;;  %1214 = vmatprep.subr.mxu1 %v2934_v34  ;;  %v882_v27 = vmax.f32 %v873_v40, %v874_v47  ;;  %v3842_v34 = vld [vmem:[%s4902_s3 + $0x490] sm:$0xff]  ;;  %v3852_v51 = vmax.f32 %v888_v3, 0.0  ;;  %v3873_v19 = vmax.f32 %v560_v45, 0.0  ;;  %v2291_v55 = vld [vmem:[%s4902_s3 + $0x2e8] sm:$0xff]  ;;  %v5120_v3 = vld [vmem:[#allocation35_spill] sm:$0xff] }
 0x13b   :  { %1119 = vmatpush1.msra.mxu0 %v3817_v26  ;;  %1215 = vmatpush1.msra.mxu1 %v2944_v36  ;;  %v3849_v36 = vld [vmem:[%s4902_s3 + $0x488] sm:$0xff]  ;;  %v2290_v40 = vld [vmem:[%s4902_s3 + $0x2f0] sm:$0xff]  ;;  %v5122_v45 = vld [vmem:[#allocation40_spill] sm:$0xff] }
 0x13c   :  { %1000 = vmatprep.mubr.f32.mxu0 %v3810_v39  ;;  %1089 = vmatprep.mubr.f32.mxu1 %v3810_v39  ;;  %v889_v32 = vadd.f32 %v3707_v24, %v882_v27  ;;  %v5119_v47 = vld [vmem:[#allocation34_spill] sm:$0xff]  ;;  %v2293_v27 = vld [vmem:[%s4902_s3 + $0x2d8] sm:$0xff] }
 0x13d   :  { %1120 = vmatprep.subr.mxu0 %v3827_v31  ;;  %1216 = vmatprep.subr.mxu1 %v2971_v42  ;;  %v3868_v42 = vld [vmem:[%s4902_s3 + $0x478] sm:$0xff] }
 0x13e   :  { %1001 = vmatmul.mubr.f32.gmra.mxu0 %v3835_v28  ;;  %1090 = vmatmul.mubr.f32.gmra.mxu1 %v3835_v28  ;;  %v3897_v63 = vmax.f32 %v889_v32, 0.0  ;;  %v5123_v32 = vld [vmem:[#allocation42_spill] sm:$0xff] }
 0x13f   :  { %1121 = vmatpush1.msra.mxu0 %v3842_v34  ;;  %1217 = vmatpush1.msra.mxu1 %v2982_v44  ;;  %v3880_v44 = vld [vmem:[%s4902_s3 + $0x470] sm:$0xff] }
 0x140   :  { %1122 = vmatprep.subr.mxu0 %v3849_v36  ;;  %1218 = vmatprep.subr.mxu1 %v3009_v50  ;;  %v561_v50 = vadd.f32 %v3707_v24, %v548_v48  ;;  %v2294_v48 = vld [vmem:[%s4902_s3 + $0x2d0] sm:$0xff] }
 0x141   :  { %1123 = vmatpush1.msra.mxu0 %v3859_v41  ;;  %1219 = vmatpush1.msra.mxu1 %v3020_v52  ;;  %v3888_v52 = vld [vmem:[%s4902_s3 + $0x468] sm:$0xff] }
 0x142   :  { %1006 = vmatprep.mubr.f32.mxu0 %v3852_v51  ;;  %1095 = vmatprep.mubr.f32.mxu1 %v3852_v51  ;;  %v3908_v21 = vmax.f32 %v561_v50, 0.0  ;;  %v5124_v50 = vld [vmem:[#allocation4_spill] sm:$0xff] }
 0x143   :  { %1124 = vmatprep.subr.mxu0 %v3868_v42  ;;  %1220 = vmatprep.subr.mxu1 %v3039_v56  ;;  %v3904_v56 = vld [vmem:[%s4902_s3 + $0x458] sm:$0xff] }
 0x144   :  { %1007 = vmatmul.mubr.f32.gmra.mxu0 %v3873_v19  ;;  %1096 = vmatmul.mubr.f32.gmra.mxu1 %v3873_v19 }
 0x145   :  { %1125 = vmatpush1.msra.mxu0 %v3880_v44  ;;  %1221 = vmatpush1.msra.mxu1 %v3051_v58  ;;  %v3922_v58 = vld [vmem:[%s4902_s3 + $0x448] sm:$0xff] }
 0x146   :  { %1126 = vmatprep.subr.mxu0 %v3888_v52  ;;  %1222 = vmatprep.subr.mxu1 %v3062_v60  ;;  %v3929_v60 = vld [vmem:[%s4902_s3 + $0x440] sm:$0xff] }
 0x147   :  { %1127 = vmatpush1.msra.mxu0 %v3895_v22  ;;  %1223 = vmatpush1.msra.mxu1 %v3073_v62  ;;  %v3936_v62 = vld [vmem:[%s4902_s3 + $0x438] sm:$0xff] }
 0x148   :  { %1101 = vmatprep.mubr.f32.mxu1 %v3897_v63  ;;  %1128 = vmatprep.subr.mxu0 %v3904_v56 }
 0x149   :  { %1224 = vmatprep.subr.mxu1 %v3085_v0  ;;  %1102 = vmatmul.mubr.f32.gmra.mxu1 %v3908_v21  ;;  %v3943_v0 = vld [vmem:[%s4902_s3 + $0x430] sm:$0xff] }
 0x14a   :  { %1129 = vmatpush1.msra.mxu0 %v3915_v23  ;;  %1225 = vmatpush1.msra.mxu1 %v3097_v2  ;;  %v3950_v2 = vld [vmem:[%s4902_s3 + $0x428] sm:$0xff] }
 0x14b   :  { %1130 = vmatprep.subr.mxu0 %v3922_v58  ;;  %1226 = vmatprep.subr.mxu1 %v3109_v4  ;;  %v3957_v4 = vld [vmem:[%s4902_s3 + $0x420] sm:$0xff] }
 0x14c   :  { %1272 = vmatprep.mubr.f32.mxu1 %v3753_v1  ;;  %1131 = vmatpush1.msra.mxu0 %v3929_v60  ;;  %v3964_v1 = vld [vmem:[%s4902_s3 + $0x418] sm:$0xff] }
 0x14d   :  { %1227 = vmatpush1.msra.mxu1 %v3121_v6  ;;  %1132 = vmatprep.subr.mxu0 %v3936_v62  ;;  %v3971_v6 = vld [vmem:[%s4902_s3 + $0x410] sm:$0xff] }
 0x14e   :  { %1228 = vmatprep.subr.mxu1 %v3133_v8  ;;  %1133 = vmatpush1.msra.mxu0 %v3943_v0  ;;  %v3978_v8 = vld [vmem:[%s4902_s3 + $0x408] sm:$0xff] }
 0x14f   :  { %1229 = vmatpush1.msra.mxu1 %v3145_v11  ;;  %1134 = vmatprep.subr.mxu0 %v3950_v2  ;;  %v3985_v11 = vld [vmem:[%s4902_s3 + $0x400] sm:$0xff] }
 0x150   :  { %1230 = vmatprep.subr.mxu1 %v3157_v14  ;;  %1135 = vmatpush1.msra.mxu0 %v3957_v4  ;;  %v5114_v14 = vld [vmem:[#allocation25_spill] sm:$0xff] }
 0x151   :  { %1231 = vmatpush1.msra.mxu1 %v5112_v12  ;;  %1136 = vmatprep.subr.mxu0 %v3964_v1  ;;  %v5125_v12 = vld [vmem:[#allocation43_spill] sm:$0xff] }
 0x152   :  { %1232 = vmatprep.subr.mxu1 %v5113_v46  ;;  %1137 = vmatpush1.msra.mxu0 %v3971_v6  ;;  %v5126_v46 = vld [vmem:[#allocation5_spill] sm:$0xff] }
 0x153   :  { %1233 = vmatpush1.msra.mxu1 %v5114_v14  ;;  %1138 = vmatprep.subr.mxu0 %v3978_v8  ;;  %v5127_v14 = vld [vmem:[#allocation44_spill] sm:$0xff] }
 0x154   :  { %1234 = vmatprep.subr.mxu1 %v5115_v5  ;;  %1139 = vmatpush1.msra.mxu0 %v3985_v11  ;;  %v5128_v5 = vld [vmem:[#allocation6_spill] sm:$0xff] }
 0x155   :  { %1172 = vmatprep.mubr.f32.mxu0 %v2295_v18  ;;  %1235 = vmatpush1.msra.mxu1 %v5116_v13  ;;  %v5129_v13 = vld [vmem:[#allocation45_spill] sm:$0xff] }
 0x156   :  { %1173 = vmatmul.mubr.f32.vlgmr.msra.gmra.mxu0 %v3789_v35  ;;  %1236 = vmatprep.subr.mxu1 %v5117_v53  ;;  %v5130_v53 = vld [vmem:[#allocation7_spill] sm:$0xff] }
 0x157   :  { %1303 = vmatprep.subr.mxu0 %v2289_v57  ;;  %1237 = vmatpush1.msra.mxu1 %v5118_v25  ;;  %v5131_v57 = vld [vmem:[#allocation47_spill] sm:$0xff]  ;;  %v5132_v25 = vld [vmem:[#allocation8_spill] sm:$0xff] }
 0x158   :  { %1304 = vmatpush1.msra.mxu0 %v2290_v40  ;;  %1238 = vmatprep.subr.mxu1 %v5119_v47  ;;  %v5133_v40 = vld [vmem:[#allocation50_spill] sm:$0xff]  ;;  %v5134_v47 = vld [vmem:[#allocation9_spill] sm:$0xff] }
 0x159   :  { %1305 = vmatprep.subr.mxu0 %v2291_v55  ;;  %1178 = vmatprep.mubr.f32.mxu0 %v2295_v18  ;;  %v4039_v55 = vadd.f32 %v3707_v24, %v3702_v49  ;;  %v5141_v49 = vld [vmem:[#allocation57_spill] sm:$0xff] }
 0x15a   :  { %1239 = vmatpush1.msra.mxu1 %v5120_v3  ;;  %1306 = vmatpush1.msra.mxu0 %v2292_v59  ;;  %v5135_v3 = vld [vmem:[#allocation52_spill] sm:$0xff]  ;;  %v5136_v59 = vld [vmem:[#allocation10_spill] sm:$0xff] }
 0x15b   :  { %1179 = vmatmul.mubr.f32.gmra.mxu0 %v3835_v28  ;;  %1240 = vmatprep.subr.mxu1 %v5121_v15  ;;  %v5137_v15 = vld [vmem:[#allocation53_spill] sm:$0xff] }
 0x15c   :  { %1307 = vmatprep.subr.mxu0 %v2293_v27  ;;  %1241 = vmatpush2.msra.mxu1 %v5122_v45  ;;  %v5138_v27 = vld [vmem:[#allocation11_spill] sm:$0xff] }
 0x15d   :  { %1308 = vmatpush1.msra.mxu0 %v2294_v48  ;;  %1242 = vmatprep.subr.mxu1 %v5123_v32  ;;  %v5139_v45 = vld [vmem:[#allocation55_spill] sm:$0xff]  ;;  %v5140_v48 = vld [vmem:[#allocation12_spill] sm:$0xff]  ;;  %v569_v32 = vmax.f32 %v4039_v55, 0.0 }
 0x15e   :  { %1309 = vmatprep.subr.mxu0 %v5124_v50  ;;  %1184 = vmatprep.mubr.f32.mxu0 %v2295_v18  ;;  %v5142_v50 = vld [vmem:[#allocation13_spill] sm:$0xff]  ;;  %v1557_v55 = vld [vmem:[%s4904_s5 + $0xb8] sm:$0xff] }
 0x15f   :  { %1243 = vmatpush2.msra.mxu1 %v5125_v12  ;;  %1310 = vmatpush1.msra.mxu0 %v5126_v46  ;;  %v5143_v12 = vld [vmem:[#allocation59_spill] sm:$0xff]  ;;  %v5144_v46 = vld [vmem:[#allocation14_spill] sm:$0xff] }
 0x160   :  { %1185 = vmatmul.mubr.f32.gmra.mxu0 %v3873_v19  ;;  %1244 = vmatprep.subr.mxu1 %v5127_v14  ;;  %v5145_v14 = vld [vmem:[#allocation61_spill] sm:$0xff] }
 0x161   :  { %1311 = vmatprep.subr.mxu0 %v5128_v5  ;;  %1245 = vmatpush2.msra.mxu1 %v5129_v13  ;;  %v5146_v5 = vld [vmem:[#allocation15_spill] sm:$0xff] }
 0x162   :  { %1312 = vmatpush1.msra.mxu0 %v5130_v53  ;;  %1246 = vmatprep.subr.mxu1 %v5131_v57  ;;  %v5147_v13 = vld [vmem:[#allocation63_spill] sm:$0xff]  ;;  %v5148_v53 = vld [vmem:[#allocation16_spill] sm:$0xff]  ;;  %v5149_v57 = vld [vmem:[#allocation65_spill] sm:$0xff] }
 0x163   :  { %1313 = vmatprep.subr.mxu0 %v5132_v25  ;;  %1190 = vmatprep.mubr.f32.mxu0 %v2295_v18  ;;  %v5150_v25 = vld [vmem:[#allocation17_spill] sm:$0xff] }
 0x164   :  { %1247 = vmatpush2.msra.mxu1 %v5133_v40  ;;  %1314 = vmatpush1.msra.mxu0 %v5134_v47  ;;  %v5151_v40 = vld [vmem:[#allocation67_spill] sm:$0xff]  ;;  %v5152_v47 = vld [vmem:[#allocation18_spill] sm:$0xff] }
 0x165   :  { %1191 = vmatmul.mubr.f32.gmra.mxu0 %v3908_v21  ;;  %1248 = vmatprep.subr.mxu1 %v5135_v3  ;;  %v5153_v3 = vld [vmem:[#allocation69_spill] sm:$0xff] }
 0x166   :  { %1315 = vmatprep.subr.mxu0 %v5136_v59  ;;  %1249 = vmatpush2.msra.mxu1 %v5137_v15  ;;  %v5154_v59 = vld [vmem:[#allocation19_spill] sm:$0xff] }
 0x167   :  { %1316 = vmatpush1.msra.mxu0 %v5138_v27  ;;  %1250 = vmatprep.subr.mxu1 %v5139_v45  ;;  %v5155_v15 = vld [vmem:[#allocation71_spill] sm:$0xff]  ;;  %v5156_v27 = vld [vmem:[#allocation20_spill] sm:$0xff]  ;;  %v5157_v45 = vld [vmem:[#allocation73_spill] sm:$0xff] }
 0x168   :  { %1317 = vmatprep.subr.mxu0 %v5140_v48  ;;  %1196 = vmatprep.mubr.f32.mxu0 %v2295_v18  ;;  %v5158_v48 = vld [vmem:[#allocation22_spill] sm:$0xff] }
 0x169   :  { %1251 = vmatpush2.msra.mxu1 %v5141_v49  ;;  %1318 = vmatpush1.msra.mxu0 %v5142_v50  ;;  %v5159_v49 = vld [vmem:[#allocation75_spill] sm:$0xff]  ;;  %v5160_v50 = vld [vmem:[#allocation24_spill] sm:$0xff] }
 0x16a   :  { %1197 = vmatmul.mubr.f32.gmra.mxu0 %v569_v32  ;;  %1252 = vmatprep.subr.mxu1 %v5143_v12  ;;  %v5161_v12 = vld [vmem:[#allocation77_spill] sm:$0xff] }
 0x16b   :  { %1319 = vmatprep.subr.mxu0 %v5144_v46  ;;  %1253 = vmatpush2.msra.mxu1 %v5145_v14  ;;  %v5162_v46 = vld [vmem:[#allocation26_spill] sm:$0xff]  ;;  %v5163_v14 = vld [vmem:[#allocation79_spill] sm:$0xff] }
 0x16c   :  { %1320 = vmatpush1.msra.mxu0 %v5146_v5  ;;  %1367 = vmatprep.mubr.f32.mxu0 %v3789_v35  ;;  %v5164_v5 = vld [vmem:[#allocation28_spill] sm:$0xff] }
 0x16d   :  { %1254 = vmatprep.subr.mxu1 %v5147_v13  ;;  %1321 = vmatprep.subr.mxu0 %v5148_v53  ;;  %v5165_v13 = vld [vmem:[#allocation81_spill] sm:$0xff]  ;;  %v5166_v53 = vld [vmem:[#allocation30_spill] sm:$0xff] }
 0x16e   :  { %1255 = vmatpush2.msra.mxu1 %v5149_v57  ;;  %1322 = vmatpush1.msra.mxu0 %v5150_v25  ;;  %v5167_v57 = vld [vmem:[#allocation83_spill] sm:$0xff]  ;;  %v5168_v25 = vld [vmem:[#allocation32_spill] sm:$0xff] }
 0x16f   :  { %1256 = vmatprep.subr.mxu1 %v5151_v40  ;;  %1323 = vmatprep.subr.mxu0 %v5152_v47  ;;  %v5169_v40 = vld [vmem:[#allocation85_spill] sm:$0xff]  ;;  %v5170_v47 = vld [vmem:[#allocation36_spill] sm:$0xff] }
 0x170   :  { %1257 = vmatpush2.msra.mxu1 %v5153_v3  ;;  %1324 = vmatpush1.msra.mxu0 %v5154_v59  ;;  %v5171_v3 = vld [vmem:[#allocation87_spill] sm:$0xff]  ;;  %v5172_v59 = vld [vmem:[#allocation38_spill] sm:$0xff] }
 0x171   :  { %1258 = vmatprep.subr.mxu1 %v5155_v15  ;;  %1325 = vmatprep.subr.mxu0 %v5156_v27  ;;  %v5173_v15 = vld [vmem:[#allocation89_spill] sm:$0xff]  ;;  %v5174_v27 = vld [vmem:[#allocation39_spill] sm:$0xff] }
 0x172   :  { %1259 = vmatpush2.msra.mxu1 %v5157_v45  ;;  %1326 = vmatpush1.msra.mxu0 %v5158_v48  ;;  %v5175_v45 = vld [vmem:[#allocation91_spill] sm:$0xff]  ;;  %v5176_v48 = vld [vmem:[#allocation41_spill] sm:$0xff] }
 0x173   :  { %1260 = vmatprep.subr.mxu1 %v5159_v49  ;;  %1327 = vmatprep.subr.mxu0 %v5160_v50  ;;  %v5177_v49 = vld [vmem:[#allocation93_spill] sm:$0xff]  ;;  %v5178_v50 = vld [vmem:[#allocation46_spill] sm:$0xff] }
 0x174   :  { %1261 = vmatpush2.msra.mxu1 %v5161_v12  ;;  %1328 = vmatpush1.msra.mxu0 %v5162_v46  ;;  %v5179_v12 = vld [vmem:[#allocation95_spill] sm:$0xff]  ;;  %v5180_v46 = vld [vmem:[#allocation48_spill] sm:$0xff] }
 0x175   :  { %1262 = vmatprep.subr.mxu1 %v5163_v14  ;;  %1329 = vmatprep.subr.mxu0 %v5164_v5  ;;  %v5181_v14 = vld [vmem:[#allocation97_spill] sm:$0xff] }
 0x176   :  { %1263 = vmatpush2.msra.mxu1 %v5165_v13  ;;  %1330 = vmatpush1.msra.mxu0 %v5166_v53  ;;  %v5182_v5 = vld [vmem:[#allocation49_spill] sm:$0xff]  ;;  %v5183_v13 = vld [vmem:[#allocation51_spill] sm:$0xff]  ;;  %v5184_v53 = vld [vmem:[#allocation100_spill] sm:$0xff] }
 0x177   :  { %1264 = vmatprep.subr.mxu1 %v5167_v57  ;;  %1331 = vmatprep.subr.mxu0 %v5168_v25  ;;  %v5185_v57 = vld [vmem:[#allocation54_spill] sm:$0xff]  ;;  %v5186_v25 = vld [vmem:[#allocation56_spill] sm:$0xff] }
 0x178   :  { %1265 = vmatpush2.msra.mxu1 %v5169_v40  ;;  %1332 = vmatpush1.msra.mxu0 %v5170_v47  ;;  %v5187_v40 = vld [vmem:[#allocation58_spill] sm:$0xff]  ;;  %v715_v47 = vpop.f32.mrf.mxu0 }
 0x179   :  { %1266 = vmatprep.subr.mxu1 %v5171_v3  ;;  %1333 = vmatprep.subr.mxu0 %v5172_v59  ;;  %v5211_v3 = vld [vmem:[#allocation103_spill] sm:$0xff]  ;;  %v1556_v59 = vld [vmem:[%s4904_s5 + $0xb0] sm:$0xff] }
 0x17a   :  { %1267 = vmatpush2.msra.mxu1 %v5173_v15  ;;  %1334 = vmatpush1.msra.mxu0 %v5174_v27  ;;  %v1624_v15 = vld [vmem:[%s4904_s5 + $0x2d0] sm:$0xff]  ;;  %v1555_v27 = vld [vmem:[%s4904_s5 + $0xa8] sm:$0xff] }
 0x17b   :  { %1268 = vmatprep.subr.mxu1 %v5175_v45  ;;  %1335 = vmatprep.subr.mxu0 %v5176_v48  ;;  %v1554_v45 = vld [vmem:[%s4904_s5 + $0xa0] sm:$0xff]  ;;  %v1553_v48 = vld [vmem:[%s4904_s5 + $0x98] sm:$0xff] }
 0x17c   :  { %1269 = vmatpush2.msra.mxu1 %v5177_v49  ;;  %1336 = vmatpush2.msra.mxu0 %v5178_v50  ;;  %v1552_v49 = vld [vmem:[%s4904_s5 + $0x90] sm:$0xff]  ;;  %v1551_v50 = vld [vmem:[%s4904_s5 + $0x88] sm:$0xff] }
 0x17d   :  { %1270 = vmatprep.subr.mxu1 %v5179_v12  ;;  %1337 = vmatprep.subr.mxu0 %v5180_v46  ;;  %v1550_v12 = vld [vmem:[%s4904_s5 + $0x80] sm:$0xff]  ;;  %v1623_v46 = vld [vmem:[%s4904_s5 + $0x2c8] sm:$0xff] }
 0x17e   :  { %1271 = vmatpush2.msra.mxu1 %v5181_v14  ;;  %1338 = vmatpush2.msra.mxu0 %v5182_v5  ;;  %v1549_v14 = vld [vmem:[%s4904_s5 + $0x78] sm:$0xff]  ;;  %v1622_v5 = vld [vmem:[%s4904_s5 + $0x2c0] sm:$0xff] }
 0x17f   :  { %1273 = vmatmul.mubr.f32.vlgmr.msra.gmra.mxu1 %v891_v30  ;;  %1339 = vmatprep.subr.mxu0 %v5183_v13  ;;  %v5189_v30 = vld [vmem:[#allocation62_spill] sm:$0xff] }
 0x180   :  { %1398 = vmatprep.subr.mxu1 %v5184_v53  ;;  %1278 = vmatprep.mubr.f32.mxu1 %v3789_v35  ;;  %v5198_v35 = vld [vmem:[#allocation80_spill] sm:$0xff]  ;;  %v1548_v13 = vld [vmem:[%s4904_s5 + $0x70] sm:$0xff]  ;;  %v1621_v53 = vld [vmem:[%s4904_s5 + $0x2b8] sm:$0xff] }
 0x181   :  { %1340 = vmatpush2.msra.mxu0 %v5185_v57  ;;  %1399 = vmatpush1.msra.mxu1 %v3721_v16  ;;  %v5190_v16 = vld [vmem:[#allocation64_spill] sm:$0xff]  ;;  %v1547_v57 = vld [vmem:[%s4904_s5 + $0x68] sm:$0xff] }
 0x182   :  { %1341 = vmatprep.subr.mxu0 %v5186_v25  ;;  %1400 = vmatprep.subr.mxu1 %v3729_v61  ;;  %v5191_v61 = vld [vmem:[#allocation66_spill] sm:$0xff] }
 0x183   :  { %1342 = vmatpush2.msra.mxu0 %v5187_v40  ;;  %1401 = vmatpush1.msra.mxu1 %v3735_v43  ;;  %v5192_v43 = vld [vmem:[#allocation68_spill] sm:$0xff]  ;;  %v1620_v25 = vld [vmem:[%s4904_s5 + $0x2b0] sm:$0xff] }
 0x184   :  { %1279 = vmatmul.mubr.f32.gmra.mxu1 %v3737_v37  ;;  %1343 = vmatprep.subr.mxu0 %v5188_v54  ;;  %v1546_v40 = vld [vmem:[%s4904_s5 + $0x60] sm:$0xff]  ;;  %v1619_v54 = vld [vmem:[%s4904_s5 + $0x2a8] sm:$0xff] }
 0x185   :  { %1402 = vmatprep.subr.mxu1 %v3743_v9  ;;  %1284 = vmatprep.mubr.f32.mxu1 %v3835_v28  ;;  %v5193_v9 = vld [vmem:[#allocation70_spill] sm:$0xff] }
 0x186   :  { %1344 = vmatpush2.msra.mxu0 %v5189_v30  ;;  %1403 = vmatpush1.msra.mxu1 %v3758_v7  ;;  %v5194_v7 = vld [vmem:[#allocation72_spill] sm:$0xff]  ;;  %v1545_v30 = vld [vmem:[%s4904_s5 + $0x58] sm:$0xff] }
 0x187   :  { %1345 = vmatprep.subr.mxu0 %v5190_v16  ;;  %1404 = vmatprep.subr.mxu1 %v3765_v10  ;;  %v5195_v10 = vld [vmem:[#allocation74_spill] sm:$0xff]  ;;  %v1618_v16 = vld [vmem:[%s4904_s5 + $0x2a0] sm:$0xff] }
 0x188   :  { %1346 = vmatpush2.msra.mxu0 %v5191_v61  ;;  %1405 = vmatpush1.msra.mxu1 %v3775_v33  ;;  %v5196_v33 = vld [vmem:[#allocation76_spill] sm:$0xff]  ;;  %v1544_v61 = vld [vmem:[%s4904_s5 + $0x50] sm:$0xff] }
 0x189   :  { %1285 = vmatmul.mubr.f32.gmra.mxu1 %v3768_v17  ;;  %1347 = vmatprep.subr.mxu0 %v5192_v43  ;;  %v1617_v43 = vld [vmem:[%s4904_s5 + $0x298] sm:$0xff] }
 0x18a   :  { %1406 = vmatprep.subr.mxu1 %v3785_v38  ;;  %1290 = vmatprep.mubr.f32.mxu1 %v3873_v19  ;;  %v5197_v38 = vld [vmem:[#allocation78_spill] sm:$0xff] }
 0x18b   :  { %1348 = vmatpush2.msra.mxu0 %v5193_v9  ;;  %1407 = vmatpush1.msra.mxu1 %v3800_v29  ;;  %v5199_v29 = vld [vmem:[#allocation82_spill] sm:$0xff]  ;;  %v1543_v9 = vld [vmem:[%s4904_s5 + $0x48] sm:$0xff] }
 0x18c   :  { %1349 = vmatprep.subr.mxu0 %v5194_v7  ;;  %1408 = vmatprep.subr.mxu1 %v3807_v20  ;;  %v5200_v20 = vld [vmem:[#allocation84_spill] sm:$0xff]  ;;  %v1616_v7 = vld [vmem:[%s4904_s5 + $0x290] sm:$0xff] }
 0x18d   :  { %1350 = vmatpush2.msra.mxu0 %v5195_v10  ;;  %1409 = vmatpush1.msra.mxu1 %v3817_v26  ;;  %v5201_v26 = vld [vmem:[#allocation86_spill] sm:$0xff]  ;;  %v1542_v10 = vld [vmem:[%s4904_s5 + $0x40] sm:$0xff] }
 0x18e   :  { %1291 = vmatmul.mubr.f32.gmra.mxu1 %v3810_v39  ;;  %1351 = vmatprep.subr.mxu0 %v5196_v33  ;;  %v1615_v33 = vld [vmem:[%s4904_s5 + $0x288] sm:$0xff] }
 0x18f   :  { %1410 = vmatprep.subr.mxu1 %v3827_v31  ;;  %1296 = vmatprep.mubr.f32.mxu1 %v3908_v21  ;;  %v5202_v31 = vld [vmem:[#allocation88_spill] sm:$0xff] }
 0x190   :  { %1352 = vmatpush2.msra.mxu0 %v5197_v38  ;;  %1411 = vmatpush1.msra.mxu1 %v3842_v34  ;;  %v5203_v34 = vld [vmem:[#allocation90_spill] sm:$0xff]  ;;  %v1541_v38 = vld [vmem:[%s4904_s5 + $0x38] sm:$0xff] }
 0x191   :  { %1353 = vmatprep.subr.mxu0 %v5198_v35  ;;  %1412 = vmatprep.subr.mxu1 %v3849_v36  ;;  %v5204_v36 = vld [vmem:[#allocation92_spill] sm:$0xff] }
 0x192   :  { %1354 = vmatpush2.msra.mxu0 %v5199_v29  ;;  %1413 = vmatpush1.msra.mxu1 %v3859_v41  ;;  %v5205_v41 = vld [vmem:[#allocation94_spill] sm:$0xff]  ;;  %v1614_v35 = vld [vmem:[%s4904_s5 + $0x280] sm:$0xff] }
 0x193   :  { %1297 = vmatmul.mubr.f32.gmra.mxu1 %v3852_v51  ;;  %1355 = vmatprep.subr.mxu0 %v5200_v20  ;;  %v1540_v29 = vld [vmem:[%s4904_s5 + $0x30] sm:$0xff]  ;;  %v1613_v20 = vld [vmem:[%s4904_s5 + $0x278] sm:$0xff] }
 0x194   :  { %1414 = vmatprep.subr.mxu1 %v3868_v42  ;;  %1356 = vmatpush2.msra.mxu0 %v5201_v26  ;;  %v5206_v42 = vld [vmem:[#allocation96_spill] sm:$0xff]  ;;  %v1539_v26 = vld [vmem:[%s4904_s5 + $0x28] sm:$0xff] }
 0x195   :  { %1415 = vmatpush1.msra.mxu1 %v3880_v44  ;;  %1357 = vmatprep.subr.mxu0 %v5202_v31  ;;  %v5207_v44 = vld [vmem:[#allocation98_spill] sm:$0xff] }
 0x196   :  { %1416 = vmatprep.subr.mxu1 %v3888_v52  ;;  %1358 = vmatpush2.msra.mxu0 %v5203_v34  ;;  %v5208_v52 = vld [vmem:[#allocation99_spill] sm:$0xff]  ;;  %v1612_v31 = vld [vmem:[%s4904_s5 + $0x270] sm:$0xff]  ;;  %v1538_v34 = vld [vmem:[%s4904_s5 + $0x20] sm:$0xff] }
 0x197   :  { %1417 = vmatpush1.msra.mxu1 %v3895_v22  ;;  %1359 = vmatprep.subr.mxu0 %v5204_v36  ;;  %v5209_v22 = vld [vmem:[#allocation101_spill] sm:$0xff] }
 0x198   :  { %1418 = vmatprep.subr.mxu1 %v3904_v56  ;;  %1360 = vmatpush2.msra.mxu0 %v5205_v41  ;;  %v5210_v56 = vld [vmem:[#allocation102_spill] sm:$0xff]  ;;  %v1611_v36 = vld [vmem:[%s4904_s5 + $0x268] sm:$0xff]  ;;  %v1537_v41 = vld [vmem:[%s4904_s5 + $0x18] sm:$0xff] }
 0x199   :  { %1419 = vmatpush1.msra.mxu1 %v3915_v23  ;;  %1361 = vmatprep.subr.mxu0 %v5206_v42  ;;  %v858_v23 = vpop.f32.mrf.mxu1  ;;  %v1610_v42 = vld [vmem:[%s4904_s5 + $0x260] sm:$0xff] }
 0x19a   :  { %1420 = vmatprep.subr.mxu1 %v3922_v58  ;;  %1362 = vmatpush2.msra.mxu0 %v5207_v44  ;;  %v717_v58 = vpop.f32.mrf.mxu0  ;;  %v1536_v44 = vld [vmem:[%s4904_s5 + $0x10] sm:$0xff] }
 0x19b   :  { %1421 = vmatpush1.msra.mxu1 %v3929_v60  ;;  %1363 = vmatprep.subr.mxu0 %v5208_v52  ;;  %v860_v60 = vpop.f32.mrf.mxu1  ;;  %v1609_v52 = vld [vmem:[%s4904_s5 + $0x258] sm:$0xff] }
 0x19c   :  { %1422 = vmatprep.subr.mxu1 %v3936_v62  ;;  %1364 = vmatpush2.msra.mxu0 %v5209_v22  ;;  %v876_v62 = vmax.f32 %v717_v58, %v860_v60  ;;  %v1535_v22 = vld [vmem:[%s4904_s5 + $0x8] sm:$0xff]  ;;  %v1606_v58 = vld [vmem:[%s4904_s5 + $0x240] sm:$0xff]  ;;  %v1596_v60 = vld [vmem:[%s4904_s5 + $0x1f0] sm:$0xff] }
 0x19d   :  { %1423 = vmatpush1.msra.mxu1 %v3943_v0  ;;  %1365 = vmatprep.subr.mxu0 %v5210_v56  ;;  %v1561_v0 = vld [vmem:[%s4904_s5 + $0xd8] sm:$0xff]  ;;  %v1608_v56 = vld [vmem:[%s4904_s5 + $0x250] sm:$0xff] }
 0x19e   :  { %1424 = vmatprep.subr.mxu1 %v3950_v2  ;;  %1366 = vmatpush2.msra.mxu0 %v5211_v3  ;;  %v1560_v2 = vld [vmem:[%s4904_s5 + $0xd0] sm:$0xff]  ;;  %v1597_v3 = vld [vmem:[%s4904_s5 + $0x1f8] sm:$0xff] }
 0x19f   :  { %1425 = vmatpush1.msra.mxu1 %v3957_v4  ;;  %1368 = vmatmul.mubr.f32.vlgmr.msra.gmra.mxu0 %v3737_v37  ;;  %v875_v37 = vmax.f32 %v715_v47, %v858_v23  ;;  %v1629_v4 = vld [vmem:[%s4904_s5 + $0x2f8] sm:$0xff]  ;;  %v1534_v47 = vld [vmem:[%s4904_s5] sm:$0xff]  ;;  %v1607_v23 = vld [vmem:[%s4904_s5 + $0x248] sm:$0xff] }
 0x1a0   :  { %1426 = vmatprep.subr.mxu1 %v3964_v1  ;;  %1373 = vmatprep.mubr.f32.mxu0 %v3835_v28  ;;  %v1628_v1 = vld [vmem:[%s4904_s5 + $0x2f0] sm:$0xff] }
 0x1a1   :  { %1427 = vmatpush1.msra.mxu1 %v3971_v6  ;;  %1462 = vmatprep.mubr.f32.mxu1 %v2295_v18  ;;  %v883_v28 = vmax.f32 %v875_v37, %v876_v62  ;;  %v1627_v6 = vld [vmem:[%s4904_s5 + $0x2e8] sm:$0xff]  ;;  %v1605_v37 = vld [vmem:[%s4904_s5 + $0x238] sm:$0xff] }
 0x1a2   :  { %1428 = vmatprep.subr.mxu1 %v3978_v8  ;;  %v1558_v8 = vld [vmem:[%s4904_s5 + $0xc0] sm:$0xff]  ;;  %v1595_v62 = vld [vmem:[%s4904_s5 + $0x1e8] sm:$0xff] }
 0x1a3   :  { %1429 = vmatpush1.msra.mxu1 %v3985_v11  ;;  %1374 = vmatmul.mubr.f32.gmra.mxu0 %v3768_v17  ;;  %v1626_v11 = vld [vmem:[%s4904_s5 + $0x2e0] sm:$0xff] }
 0x1a4   :  { %1463 = vmatmul.mubr.f32.vlgmr.msra.gmra.mxu1 %v3768_v17  ;;  %1379 = vmatprep.mubr.f32.mxu0 %v3873_v19  ;;  %v890_v17 = vadd.f32 %v3707_v24, %v883_v28  ;;  %v1564_v19 = vld [vmem:[%s4904_s5 + $0xf0] sm:$0xff]  ;;  %v1562_v24 = vld [vmem:[%s4904_s5 + $0xe0] sm:$0xff] }
 0x1a5   :  { %1468 = vmatprep.mubr.f32.mxu1 %v2295_v18  ;;  %1776 = vmatprep.subr.mxu1 %v1629_v4  ;;  %v1604_v28 = vld [vmem:[%s4904_s5 + $0x230] sm:$0xff]  ;;  %v1590_v4 = vld [vmem:[%s4904_s5 + $0x1c0] sm:$0xff] }
 0x1a6   :  { %1777 = vmatpush1.msra.mxu1 %v1628_v1  ;;  %v1589_v1 = vld [vmem:[%s4904_s5 + $0x1b8] sm:$0xff] }
 0x1a7   :  { %1380 = vmatmul.mubr.f32.gmra.mxu0 %v3810_v39  ;;  %1778 = vmatprep.subr.mxu1 %v1627_v6  ;;  %v1598_v6 = vld [vmem:[%s4904_s5 + $0x200] sm:$0xff] }
 0x1a8   :  { %1469 = vmatmul.mubr.f32.gmra.mxu1 %v3810_v39  ;;  %1385 = vmatprep.mubr.f32.mxu0 %v3908_v21  ;;  %v1565_v39 = vld [vmem:[%s4904_s5 + $0xf8] sm:$0xff]  ;;  %v1563_v21 = vld [vmem:[%s4904_s5 + $0xe8] sm:$0xff] }
 0x1a9   :  { %1474 = vmatprep.mubr.f32.mxu1 %v2295_v18  ;;  %1705 = vmatprep.subr.mxu0 %v1565_v39  ;;  %v1603_v39 = vld [vmem:[%s4904_s5 + $0x228] sm:$0xff] }
 0x1aa   :  { %1706 = vmatpush1.msra.mxu0 %v1564_v19  ;;  %1779 = vmatpush1.msra.mxu1 %v1626_v11  ;;  %v1593_v19 = vld [vmem:[%s4904_s5 + $0x1d8] sm:$0xff] }
 0x1ab   :  { %1386 = vmatmul.mubr.f32.gmra.mxu0 %v3852_v51  ;;  %1707 = vmatprep.subr.mxu0 %v1563_v21  ;;  %v1602_v21 = vld [vmem:[%s4904_s5 + $0x220] sm:$0xff]  ;;  %v1661_v11 = vld [vmem:[%s4904_s5 + $0x3f8] sm:$0xff] }
 0x1ac   :  { %1475 = vmatmul.mubr.f32.gmra.mxu1 %v3852_v51  ;;  %1391 = vmatprep.mubr.f32.mxu0 %v569_v32  ;;  %v897_v51 = vmax.f32 %v890_v17, 0.0  ;;  %v1625_v32 = vld [vmem:[%s4904_s5 + $0x2d8] sm:$0xff]  ;;  %v1594_v17 = vld [vmem:[%s4904_s5 + $0x1e0] sm:$0xff] }
 0x1ad   :  { %1480 = vmatprep.mubr.f32.mxu1 %v2295_v18  ;;  %1708 = vmatpush1.msra.mxu0 %v1562_v24  ;;  %v1592_v24 = vld [vmem:[%s4904_s5 + $0x1d0] sm:$0xff] }
 0x1ae   :  { %1709 = vmatprep.subr.mxu0 %v1561_v0  ;;  %1780 = vmatprep.subr.mxu1 %v1625_v32  ;;  %v1591_v0 = vld [vmem:[%s4904_s5 + $0x1c8] sm:$0xff]  ;;  %v1660_v32 = vld [vmem:[%s4904_s5 + $0x3f0] sm:$0xff] }
 0x1af   :  { %1392 = vmatmul.mubr.f32.gmra.mxu0 %v3897_v63  ;;  %1781 = vmatpush1.msra.mxu1 %v1624_v15  ;;  %v1659_v15 = vld [vmem:[%s4904_s5 + $0x3e8] sm:$0xff] }
 0x1b0   :  { %1481 = vmatmul.mubr.f32.gmra.mxu1 %v3897_v63  ;;  %v1559_v63 = vld [vmem:[%s4904_s5 + $0xc8] sm:$0xff]  ;;  %1710 = vmatpush1.msra.mxu0 %v1560_v2  ;;  %v1600_v2 = vld [vmem:[%s4904_s5 + $0x210] sm:$0xff] }
 0x1b1   :  { %1486 = vmatprep.mubr.f32.mxu1 %v2295_v18  ;;  %1711 = vmatprep.subr.mxu0 %v1559_v63  ;;  %v1599_v63 = vld [vmem:[%s4904_s5 + $0x208] sm:$0xff] }
 0x1b2   :  { %1712 = vmatpush1.msra.mxu0 %v1558_v8  ;;  %1782 = vmatprep.subr.mxu1 %v1623_v46  ;;  %v1588_v8 = vld [vmem:[%s4904_s5 + $0x1b0] sm:$0xff]  ;;  %v1582_v46 = vld [vmem:[%s4904_s5 + $0x180] sm:$0xff] }
 0x1b3   :  { %1713 = vmatprep.subr.mxu0 %v1557_v55  ;;  %1783 = vmatpush1.msra.mxu1 %v1622_v5  ;;  %v1587_v55 = vld [vmem:[%s4904_s5 + $0x1a8] sm:$0xff]  ;;  %v1581_v5 = vld [vmem:[%s4904_s5 + $0x178] sm:$0xff] }
 0x1b4   :  { %1487 = vmatmul.mubr.f32.gmra.mxu1 %v897_v51  ;;  %1714 = vmatpush1.msra.mxu0 %v1556_v59  ;;  %v1601_v51 = vld [vmem:[%s4904_s5 + $0x218] sm:$0xff]  ;;  %v1586_v59 = vld [vmem:[%s4904_s5 + $0x1a0] sm:$0xff] }
 0x1b5   :  { %1715 = vmatprep.subr.mxu0 %v1555_v27  ;;  %1784 = vmatprep.subr.mxu1 %v1621_v53  ;;  %v1585_v27 = vld [vmem:[%s4904_s5 + $0x198] sm:$0xff]  ;;  %v1580_v53 = vld [vmem:[%s4904_s5 + $0x170] sm:$0xff] }
 0x1b6   :  { %1716 = vmatpush1.msra.mxu0 %v1554_v45  ;;  %1785 = vmatpush1.msra.mxu1 %v1620_v25  ;;  %v1658_v45 = vld [vmem:[%s4904_s5 + $0x3e0] sm:$0xff]  ;;  %v1579_v25 = vld [vmem:[%s4904_s5 + $0x168] sm:$0xff] }
 0x1b7   :  { %1717 = vmatprep.subr.mxu0 %v1553_v48  ;;  %1786 = vmatprep.subr.mxu1 %v1619_v54  ;;  %v1584_v48 = vld [vmem:[%s4904_s5 + $0x190] sm:$0xff]  ;;  %v1578_v54 = vld [vmem:[%s4904_s5 + $0x160] sm:$0xff] }
 0x1b8   :  { %1718 = vmatpush1.msra.mxu0 %v1552_v49  ;;  %1787 = vmatpush1.msra.mxu1 %v1618_v16  ;;  %v1657_v49 = vld [vmem:[%s4904_s5 + $0x3d8] sm:$0xff] }
 0x1b9   :  { %1719 = vmatprep.subr.mxu0 %v1551_v50  ;;  %1788 = vmatprep.subr.mxu1 %v1617_v43  ;;  %v1583_v50 = vld [vmem:[%s4904_s5 + $0x188] sm:$0xff]  ;;  %v1577_v16 = vld [vmem:[%s4904_s5 + $0x158] sm:$0xff]  ;;  %v1576_v43 = vld [vmem:[%s4904_s5 + $0x150] sm:$0xff] }
 0x1ba   :  { %1720 = vmatpush1.msra.mxu0 %v1550_v12  ;;  %1789 = vmatpush1.msra.mxu1 %v1616_v7  ;;  %v1656_v12 = vld [vmem:[%s4904_s5 + $0x3d0] sm:$0xff]  ;;  %v1575_v7 = vld [vmem:[%s4904_s5 + $0x148] sm:$0xff] }
 0x1bb   :  { %1721 = vmatprep.subr.mxu0 %v1549_v14  ;;  %1790 = vmatprep.subr.mxu1 %v1615_v33  ;;  %v1655_v14 = vld [vmem:[%s4904_s5 + $0x3c8] sm:$0xff]  ;;  %v1574_v33 = vld [vmem:[%s4904_s5 + $0x140] sm:$0xff] }
 0x1bc   :  { %1722 = vmatpush1.msra.mxu0 %v1548_v13  ;;  %1791 = vmatpush1.msra.mxu1 %v1614_v35  ;;  %v1654_v13 = vld [vmem:[%s4904_s5 + $0x3c0] sm:$0xff]  ;;  %v1573_v35 = vld [vmem:[%s4904_s5 + $0x138] sm:$0xff] }
 0x1bd   :  { %1723 = vmatprep.subr.mxu0 %v1547_v57  ;;  %1792 = vmatprep.subr.mxu1 %v1613_v20  ;;  %v1653_v57 = vld [vmem:[%s4904_s5 + $0x3b8] sm:$0xff]  ;;  %v1572_v20 = vld [vmem:[%s4904_s5 + $0x130] sm:$0xff] }
 0x1be   :  { %1724 = vmatpush1.msra.mxu0 %v1546_v40  ;;  %1793 = vmatpush1.msra.mxu1 %v1612_v31  ;;  %v1652_v40 = vld [vmem:[%s4904_s5 + $0x3b0] sm:$0xff]  ;;  %v1571_v31 = vld [vmem:[%s4904_s5 + $0x128] sm:$0xff] }
 0x1bf   :  { %1725 = vmatprep.subr.mxu0 %v1545_v30  ;;  %1794 = vmatprep.subr.mxu1 %v1611_v36  ;;  %v1651_v30 = vld [vmem:[%s4904_s5 + $0x3a8] sm:$0xff]  ;;  %v1570_v36 = vld [vmem:[%s4904_s5 + $0x120] sm:$0xff] }
 0x1c0   :  { %1726 = vmatpush1.msra.mxu0 %v1544_v61  ;;  %1795 = vmatpush1.msra.mxu1 %v1610_v42  ;;  %v1650_v61 = vld [vmem:[%s4904_s5 + $0x3a0] sm:$0xff]  ;;  %v1569_v42 = vld [vmem:[%s4904_s5 + $0x118] sm:$0xff] }
 0x1c1   :  { %1727 = vmatprep.subr.mxu0 %v1543_v9  ;;  %1796 = vmatprep.subr.mxu1 %v1609_v52  ;;  %v1649_v9 = vld [vmem:[%s4904_s5 + $0x398] sm:$0xff]  ;;  %v1568_v52 = vld [vmem:[%s4904_s5 + $0x110] sm:$0xff] }
 0x1c2   :  { %1728 = vmatpush1.msra.mxu0 %v1542_v10  ;;  %1797 = vmatpush1.msra.mxu1 %v1608_v56  ;;  %v1648_v10 = vld [vmem:[%s4904_s5 + $0x390] sm:$0xff]  ;;  %v1567_v56 = vld [vmem:[%s4904_s5 + $0x108] sm:$0xff] }
 0x1c3   :  { %1729 = vmatprep.subr.mxu0 %v1541_v38  ;;  %1798 = vmatprep.subr.mxu1 %v1607_v23  ;;  %v1647_v38 = vld [vmem:[%s4904_s5 + $0x388] sm:$0xff]  ;;  %v1566_v23 = vld [vmem:[%s4904_s5 + $0x100] sm:$0xff] }
 0x1c4   :  { %1730 = vmatpush1.msra.mxu0 %v1540_v29  ;;  %1799 = vmatpush1.msra.mxu1 %v1606_v58  ;;  %v1646_v29 = vld [vmem:[%s4904_s5 + $0x380] sm:$0xff] }
 0x1c5   :  { %1731 = vmatprep.subr.mxu0 %v1539_v26  ;;  %1800 = vmatprep.subr.mxu1 %v1605_v37  ;;  %v1645_v26 = vld [vmem:[%s4904_s5 + $0x378] sm:$0xff]  ;;  %v1638_v58 = vld [vmem:[%s4904_s5 + $0x340] sm:$0xff] }
 0x1c6   :  { %1732 = vmatpush1.msra.mxu0 %v1538_v34  ;;  %1801 = vmatpush1.msra.mxu1 %v1604_v28  ;;  %v1644_v34 = vld [vmem:[%s4904_s5 + $0x370] sm:$0xff]  ;;  %v1637_v37 = vld [vmem:[%s4904_s5 + $0x338] sm:$0xff]  ;;  %v1635_v28 = vld [vmem:[%s4904_s5 + $0x328] sm:$0xff] }
 0x1c7   :  { %1733 = vmatprep.subr.mxu0 %v1537_v41  ;;  %1802 = vmatprep.subr.mxu1 %v1603_v39  ;;  %v1643_v41 = vld [vmem:[%s4904_s5 + $0x368] sm:$0xff]  ;;  %v1633_v39 = vld [vmem:[%s4904_s5 + $0x318] sm:$0xff] }
 0x1c8   :  { %1734 = vmatpush1.msra.mxu0 %v1536_v44  ;;  %1803 = vmatpush1.msra.mxu1 %v1602_v21  ;;  %v1642_v44 = vld [vmem:[%s4904_s5 + $0x360] sm:$0xff]  ;;  %v1631_v21 = vld [vmem:[%s4904_s5 + $0x308] sm:$0xff] }
 0x1c9   :  { %1735 = vmatprep.subr.mxu0 %v1535_v22  ;;  %1804 = vmatprep.subr.mxu1 %v1601_v51  ;;  %v1641_v22 = vld [vmem:[%s4904_s5 + $0x358] sm:$0xff] }
 0x1ca   :  { %1736 = vmatpush1.msra.mxu0 %v1534_v47  ;;  %1805 = vmatpush1.msra.mxu1 %v1600_v2  ;;  %v1640_v47 = vld [vmem:[%s4904_s5 + $0x350] sm:$0xff] }
 0x1cb   :  { %1737 = vmatprep.subr.mxu0 %v1597_v3  ;;  %1806 = vmatprep.subr.mxu1 %v1599_v63  ;;  %v1639_v3 = vld [vmem:[%s4904_s5 + $0x348] sm:$0xff] }
 0x1cc   :  { %1738 = vmatpush2.msra.mxu0 %v1596_v60  ;;  %1807 = vmatpush1.msra.mxu1 %v1598_v6  ;;  %v1693_v60 = vld [vmem:[%s4904_s5 + $0x4f8] sm:$0xff] }
 0x1cd   :  { %1739 = vmatprep.subr.mxu0 %v1595_v62  ;;  %1808 = vmatprep.subr.mxu1 %v1661_v11  ;;  %v1636_v62 = vld [vmem:[%s4904_s5 + $0x330] sm:$0xff] }
 0x1ce   :  { %1740 = vmatpush2.msra.mxu0 %v1594_v17  ;;  %1809 = vmatpush2.msra.mxu1 %v1660_v32  ;;  %v1634_v17 = vld [vmem:[%s4904_s5 + $0x320] sm:$0xff] }
 0x1cf   :  { %1741 = vmatprep.subr.mxu0 %v1593_v19  ;;  %1810 = vmatprep.subr.mxu1 %v1659_v15  ;;  %v1632_v19 = vld [vmem:[%s4904_s5 + $0x310] sm:$0xff] }
 0x1d0   :  { %1742 = vmatpush2.msra.mxu0 %v1592_v24  ;;  %1811 = vmatpush2.msra.mxu1 %v1658_v45  ;;  %v1630_v24 = vld [vmem:[%s4904_s5 + $0x300] sm:$0xff] }
 0x1d1   :  { %1743 = vmatprep.subr.mxu0 %v1591_v0  ;;  %1812 = vmatprep.subr.mxu1 %v1657_v49 }
 0x1d2   :  { %1744 = vmatpush2.msra.mxu0 %v1590_v4  ;;  %1813 = vmatpush2.msra.mxu1 %v1656_v12 }
 0x1d3   :  { %1745 = vmatprep.subr.mxu0 %v1589_v1  ;;  %1814 = vmatprep.subr.mxu1 %v1655_v14 }
 0x1d4   :  { %1746 = vmatpush2.msra.mxu0 %v1588_v8  ;;  %1815 = vmatpush2.msra.mxu1 %v1654_v13 }
 0x1d5   :  { %1747 = vmatprep.subr.mxu0 %v1587_v55  ;;  %1816 = vmatprep.subr.mxu1 %v1653_v57 }
 0x1d6   :  { %1748 = vmatpush2.msra.mxu0 %v1586_v59  ;;  %1817 = vmatpush2.msra.mxu1 %v1652_v40 }
 0x1d7   :  { %1749 = vmatprep.subr.mxu0 %v1585_v27  ;;  %1818 = vmatprep.subr.mxu1 %v1651_v30 }
 0x1d8   :  { %1750 = vmatpush2.msra.mxu0 %v1584_v48  ;;  %1819 = vmatpush2.msra.mxu1 %v1650_v61 }
 0x1d9   :  { %1751 = vmatprep.subr.mxu0 %v1583_v50  ;;  %1820 = vmatprep.subr.mxu1 %v1649_v9 }
 0x1da   :  { %1752 = vmatpush2.msra.mxu0 %v1582_v46  ;;  %1821 = vmatpush2.msra.mxu1 %v1648_v10 }
 0x1db   :  { %1753 = vmatprep.subr.mxu0 %v1581_v5  ;;  %1822 = vmatprep.subr.mxu1 %v1647_v38 }
 0x1dc   :  { %1754 = vmatpush2.msra.mxu0 %v1580_v53  ;;  %1823 = vmatpush2.msra.mxu1 %v1646_v29 }
 0x1dd   :  { %1755 = vmatprep.subr.mxu0 %v1579_v25  ;;  %1824 = vmatprep.subr.mxu1 %v1645_v26 }
 0x1de   :  { %1756 = vmatpush2.msra.mxu0 %v1578_v54  ;;  %1825 = vmatpush2.msra.mxu1 %v1644_v34 }
 0x1df   :  { %1757 = vmatprep.subr.mxu0 %v1577_v16  ;;  %1826 = vmatprep.subr.mxu1 %v1643_v41 }
 0x1e0   :  { %1758 = vmatpush2.msra.mxu0 %v1576_v43  ;;  %1827 = vmatpush2.msra.mxu1 %v1642_v44 }
 0x1e1   :  { %1759 = vmatprep.subr.mxu0 %v1575_v7  ;;  %1828 = vmatprep.subr.mxu1 %v1641_v22 }
 0x1e2   :  { %1760 = vmatpush2.msra.mxu0 %v1574_v33  ;;  %1829 = vmatpush2.msra.mxu1 %v1640_v47 }
 0x1e3   :  { %1761 = vmatprep.subr.mxu0 %v1573_v35  ;;  %1830 = vmatprep.subr.mxu1 %v1639_v3 }
 0x1e4   :  { %1762 = vmatpush2.msra.mxu0 %v1572_v20  ;;  %1831 = vmatpush2.msra.mxu1 %v1638_v58 }
 0x1e5   :  { %1763 = vmatprep.subr.mxu0 %v1571_v31  ;;  %1832 = vmatprep.subr.mxu1 %v1637_v37 }
 0x1e6   :  { %1764 = vmatpush2.msra.mxu0 %v1570_v36  ;;  %1833 = vmatpush2.msra.mxu1 %v1636_v62 }
 0x1e7   :  { %1765 = vmatprep.subr.mxu0 %v1569_v42  ;;  %1834 = vmatprep.subr.mxu1 %v1635_v28 }
 0x1e8   :  { %1766 = vmatpush2.msra.mxu0 %v1568_v52  ;;  %1835 = vmatpush2.msra.mxu1 %v1634_v17 }
 0x1e9   :  { %1767 = vmatprep.subr.mxu0 %v1567_v56  ;;  %1836 = vmatprep.subr.mxu1 %v1633_v39 }
 0x1ea   :  { %1768 = vmatpush2.msra.mxu0 %v1566_v23  ;;  %1837 = vmatpush2.msra.mxu1 %v1632_v19 }
 0x1eb   :  { %1847 = vmatprep.subr.mxu0 %v1693_v60  ;;  %1838 = vmatprep.subr.mxu1 %v1631_v21 }
 0x1ec   :  { %1839 = vmatpush2.msra.mxu1 %v1630_v24 }
 0x1ed   :  { %v984_v51 = vpop.f32.mrf.mxu0 }
 0x1ef   :  { %v986_v0 = vpop.f32.mrf.mxu0 }
 0x1f2   :  { %v1079_v2 = vpop.f32.mrf.mxu1  ;;  %v990_v4 = vpop.f32.mrf.mxu0 }
 0x1f3   :  { %v1080_v22 = vadd.f32 %v1079_v2, %v984_v51 }
 0x1f4   :  { %v1081_v63 = vpop.f32.mrf.mxu1  ;;  %v992_v1 = vpop.f32.mrf.mxu0 }
 0x1f5   :  { %v1082_v42 = vadd.f32 %v1081_v63, %v986_v0 }
 0x1f8   :  { %v1085_v6 = vpop.f32.mrf.mxu1  ;;  %v4572_v8 = vpop.f32.mrf.mxu0 }
 0x1f9   :  { %v1086_v37 = vadd.f32 %v1085_v6, %v990_v4  ;;  %v4610_v4 = vld [vmem:[%s4905_s4] ss:$0 sm:$0xff] }
 0x1fa   :  { %v1087_v11 = vpop.f32.mrf.mxu1  ;;  %v4574_v55 = vpop.f32.mrf.mxu0 }
 0x1fb   :  { %v1088_v17 = vadd.f32 %v1087_v11, %v992_v1 }
 0x1fe   :  { %v4576_v32 = vpop.f32.mrf.mxu1  ;;  %v4578_v59 = vpop.f32.mrf.mxu0 }
 0x200   :  { %v1093_v15 = vpop.f32.mrf.mxu1  ;;  %v4580_v27 = vpop.f32.mrf.mxu0 }
 0x204   :  { %v4582_v45 = vpop.f32.mrf.mxu1  ;;  %v4584_v48 = vpop.f32.mrf.mxu0 }
 0x206   :  { %v4586_v49 = vpop.f32.mrf.mxu1  ;;  %v4588_v50 = vpop.f32.mrf.mxu0 }
 0x209   :  { %v4590_v12 = vpop.f32.mrf.mxu1 }
 0x20b   :  { %v4592_v14 = vpop.f32.mrf.mxu1 }
 0x216   :  { %v1174_v46 = vpop.f32.mrf.mxu0 }
 0x217   :  { %v1175_v62 = vadd.f32 %v1174_v46, %v1080_v22  ;;  %v1092_v46 = vadd.f32 %v4576_v32, %v4572_v8 }
 0x218   :  { %v1176_v5 = vpop.f32.mrf.mxu0 }
 0x219   :  { %v1177_v23 = vadd.f32 %v1176_v5, %v1082_v42 }
 0x21b   :  { %v1180_v53 = vpop.f32.mrf.mxu0 }
 0x21c   :  { %v1181_v0 = vadd.f32 %v1180_v53, %v1086_v37  ;;  %v1688_v37 = vld [vmem:[%s4904_s5 + $0x4d0] sm:$0xff] }
 0x21d   :  { %v1182_v25 = vpop.f32.mrf.mxu0 }
 0x21e   :  { %v1183_v63 = vadd.f32 %v1182_v25, %v1088_v17  ;;  %v1686_v17 = vld [vmem:[%s4904_s5 + $0x4c0] sm:$0xff] }
 0x220   :  { %v1186_v54 = vpop.f32.mrf.mxu0 }
 0x221   :  { %v1187_v42 = vadd.f32 %v1186_v54, %v1092_v46 }
 0x222   :  { %v1188_v16 = vpop.f32.mrf.mxu0 }
 0x225   :  { %v4594_v43 = vpop.f32.mrf.mxu0 }
 0x227   :  { %v4596_v7 = vpop.f32.mrf.mxu0 }
 0x22a   :  { %v4598_v33 = vpop.f32.mrf.mxu0 }
 0x22c   :  { %v4600_v35 = vpop.f32.mrf.mxu0 }
 0x23f   :  { %v1274_v13 = vpop.f32.mrf.mxu1 }
 0x241   :  { %v1276_v57 = vpop.f32.mrf.mxu1 }
 0x244   :  { %v1280_v40 = vpop.f32.mrf.mxu1 }
 0x246   :  { %v1282_v30 = vpop.f32.mrf.mxu1 }
 0x249   :  { %v1286_v61 = vpop.f32.mrf.mxu1 }
 0x24b   :  { %v1288_v9 = vpop.f32.mrf.mxu1 }
 0x24e   :  { %v1292_v10 = vpop.f32.mrf.mxu1 }
 0x250   :  { %v1294_v38 = vpop.f32.mrf.mxu1 }
 0x253   :  { %v4602_v29 = vpop.f32.mrf.mxu1 }
 0x255   :  { %v4604_v31 = vpop.f32.mrf.mxu1 }
 0x25f   :  { %v1369_v20 = vpop.f32.mrf.mxu0 }
 0x260   :  { %v1370_v36 = vadd.f32 %v1369_v20, %v1274_v13 }
 0x261   :  { %v1371_v26 = vpop.f32.mrf.mxu0 }
 0x262   :  { %v1372_v44 = vadd.f32 %v1371_v26, %v1276_v57 }
 0x263   :  { %v1375_v34 = vpop.f32.mrf.mxu0 }
 0x264   :  { %v1464_v41 = vpop.f32.mrf.mxu1  ;;  %v1376_v3 = vadd.f32 %v1375_v34, %v1280_v40  ;;  %v1094_v40 = vadd.f32 %v1093_v15, %v4574_v55  ;;  %v1098_v55 = vadd.f32 %v4582_v45, %v4578_v59  ;;  %v1100_v15 = vadd.f32 %v4586_v49, %v4580_v27  ;;  %v1692_v27 = vld [vmem:[%s4904_s5 + $0x4f0] sm:$0xff] }
 0x265   :  { %v1377_v52 = vpop.f32.mrf.mxu0  ;;  %v1465_v56 = vadd.f32 %v1464_v41, %v1370_v36 }
 0x266   :  { %v1466_v47 = vpop.f32.mrf.mxu1  ;;  %v1378_v39 = vadd.f32 %v1377_v52, %v1282_v30  ;;  %v1189_v34 = vadd.f32 %v1188_v16, %v1094_v40 }
 0x267   :  { %v1467_v58 = vadd.f32 %v1466_v47, %v1372_v44  ;;  %v1381_v60 = vpop.f32.mrf.mxu0  ;;  %v1493_v13 = vmax.f32 %v1175_v62, %v1465_v56  ;;  %v1195_v47 = vadd.f32 %v4596_v7, %v1100_v15  ;;  %v1687_v62 = vld [vmem:[%s4904_s5 + $0x4c8] sm:$0xff]  ;;  %v1668_v15 = vld [vmem:[%s4904_s5 + $0x430] sm:$0xff] }
 0x268   :  { %v1470_v28 = vpop.f32.mrf.mxu1  ;;  %v1382_v26 = vadd.f32 %v1381_v60, %v1286_v61 }
 0x269   :  { %v1494_v19 = vmax.f32 %v1177_v23, %v1467_v58  ;;  %v1471_v21 = vadd.f32 %v1470_v28, %v1376_v3  ;;  %v1383_v24 = vpop.f32.mrf.mxu0  ;;  %v1689_v58 = vld [vmem:[%s4904_s5 + $0x4d8] sm:$0xff] }
 0x26a   :  { %v1472_v20 = vpop.f32.mrf.mxu1  ;;  %v1384_v6 = vadd.f32 %v1383_v24, %v1288_v9 }
 0x26b   :  { %v1473_v57 = vadd.f32 %v1472_v20, %v1378_v39  ;;  %v1387_v51 = vpop.f32.mrf.mxu0  ;;  %v1503_v2 = vmax.f32 %v1493_v13, %v1494_v19  ;;  %v1495_v1 = vmax.f32 %v1181_v0, %v1471_v21  ;;  %v1685_v21 = vld [vmem:[%s4904_s5 + $0x4b8] sm:$0xff]  ;;  %v1684_v13 = vld [vmem:[%s4904_s5 + $0x4b0] sm:$0xff]  ;;  %v1683_v0 = vld [vmem:[%s4904_s5 + $0x4a8] sm:$0xff] }
 0x26c   :  { %v1476_v5 = vpop.f32.mrf.mxu1  ;;  %v1388_v61 = vadd.f32 %v1387_v51, %v1292_v10  ;;  %v1193_v10 = vadd.f32 %v4594_v43, %v1098_v55  ;;  %v1690_v43 = vld [vmem:[%s4904_s5 + $0x4e0] sm:$0xff]  ;;  %v1681_v51 = vld [vmem:[%s4904_s5 + $0x498] sm:$0xff] }
 0x26d   :  { %v1496_v11 = vmax.f32 %v1183_v63, %v1473_v57  ;;  %v1477_v53 = vadd.f32 %v1476_v5, %v1382_v26  ;;  %v1389_v25 = vpop.f32.mrf.mxu0  ;;  %v1514_v9 = vadd.f32 %v4610_v4, %v1503_v2  ;;  %v1682_v63 = vld [vmem:[%s4904_s5 + $0x4a0] sm:$0xff]  ;;  %v1680_v2 = vld [vmem:[%s4904_s5 + $0x490] sm:$0xff]  ;;  %v1679_v5 = vld [vmem:[%s4904_s5 + $0x488] sm:$0xff] }
 0x26e   :  { %v1478_v30 = vpop.f32.mrf.mxu1  ;;  %v1390_v52 = vadd.f32 %v1389_v25, %v1294_v38  ;;  %v1691_v38 = vld [vmem:[%s4904_s5 + $0x4e8] sm:$0xff] }
 0x26f   :  { %v1504_v36 = vmax.f32 %v1495_v1, %v1496_v11  ;;  %v1479_v41 = vadd.f32 %v1478_v30, %v1384_v6  ;;  %v1497_v56 = vmax.f32 %v1187_v42, %v1477_v53  ;;  %v1519_v45 = vmax.f32 %v1514_v9, 0.0  ;;  %v1393_v39 = vpop.f32.mrf.mxu0  ;;  %v1678_v1 = vld [vmem:[%s4904_s5 + $0x480] sm:$0xff]  ;;  %v1677_v6 = vld [vmem:[%s4904_s5 + $0x478] sm:$0xff]  ;;  %v1675_v25 = vld [vmem:[%s4904_s5 + $0x468] sm:$0xff] }
 0x270   :  { %v1482_v44 = vpop.f32.mrf.mxu1  ;;  %v1106_v11 = vadd.f32 %v4592_v14, %v4588_v50  ;;  %v1394_v46 = vadd.f32 %v1393_v39, %v4602_v29  ;;  %v1104_v30 = vadd.f32 %v4590_v12, %v4584_v48  ;;  %v1674_v50 = vld [vmem:[%s4904_s5 + $0x460] sm:$0xff]  ;;  %v1673_v14 = vld [vmem:[%s4904_s5 + $0x458] sm:$0xff]  ;;  %v1672_v48 = vld [vmem:[%s4904_s5 + $0x450] sm:$0xff] }
 0x271   :  { %v1498_v22 = vmax.f32 %v1189_v34, %v1479_v41  ;;  %v1483_v8 = vadd.f32 %v1482_v44, %v1388_v61  ;;  %v1515_v32 = vadd.f32 %v4610_v4, %v1504_v36  ;;  %v1395_v57 = vpop.f32.mrf.mxu0  ;;  %v1671_v12 = vld [vmem:[%s4904_s5 + $0x448] sm:$0xff]  ;;  %v1670_v41 = vld [vmem:[%s4904_s5 + $0x440] sm:$0xff]  ;;  %v1665_v44 = vld [vmem:[%s4904_s5 + $0x418] sm:$0xff] }
 0x272   :  { %v1484_v16 = vpop.f32.mrf.mxu1  ;;  %v1396_v40 = vadd.f32 %v1395_v57, %v4604_v31  ;;  %v1676_v31 = vld [vmem:[%s4904_s5 + $0x470] sm:$0xff]  ;;  %v1201_v34 = vadd.f32 %v4600_v35, %v1106_v11  ;;  %v1199_v29 = vadd.f32 %v4598_v33, %v1104_v30  ;;  %v1669_v33 = vld [vmem:[%s4904_s5 + $0x438] sm:$0xff]  ;;  %v1667_v42 = vld [vmem:[%s4904_s5 + $0x428] sm:$0xff] }
 0x273   :  { %v1485_v23 = vadd.f32 %v1484_v16, %v1390_v52  ;;  %v1520_v59 = vmax.f32 %v1515_v32, 0.0  ;;  %v1505_v3 = vmax.f32 %v1497_v56, %v1498_v22  ;;  %v1499_v49 = vmax.f32 %v1193_v10, %v1483_v8  ;;  %v1666_v9 = vld [vmem:[%s4904_s5 + $0x420] sm:$0xff]  ;;  %v1664_v22 = vld [vmem:[%s4904_s5 + $0x410] sm:$0xff]  ;;  %v1663_v8 = vld [vmem:[%s4904_s5 + $0x408] sm:$0xff] }
 0x274   :  { %v1488_v20 = vpop.f32.mrf.mxu1  ;;  %v1662_v32 = vld [vmem:[%s4904_s5 + $0x400] sm:$0xff]  ;;  %v1935_v16 = vld [vmem:[%s4906_s7 + $0x78] sm:$0xff]  ;;  %v1950_v10 = vld [vmem:[%s4906_s7 + $0xf0] sm:$0xff] }
 0x275   :  { %v1500_v54 = vmax.f32 %v1195_v47, %v1485_v23  ;;  %1769 = vmatprep.mubr.f32.mxu0 %v1520_v59  ;;  %v1516_v60 = vadd.f32 %v4610_v4, %v1505_v3  ;;  %v1489_v36 = vadd.f32 %v1488_v20, %v1394_v46  ;;  %v1934_v47 = vld [vmem:[%s4906_s7 + $0x70] sm:$0xff]  ;;  %v1949_v23 = vld [vmem:[%s4906_s7 + $0xe8] sm:$0xff]  ;;  %v1932_v3 = vld [vmem:[%s4906_s7 + $0x60] sm:$0xff] }
 0x276   :  { %1770 = vmatmul.mubr.f32.vlgmr.msra.gmra.mxu0 %v1519_v45  ;;  %v1490_v26 = vpop.f32.mrf.mxu1  ;;  %v1933_v59 = vld [vmem:[%s4906_s7 + $0x68] sm:$0xff]  ;;  %v1948_v45 = vld [vmem:[%s4906_s7 + $0xe0] sm:$0xff]  ;;  %v1923_v20 = vld [vmem:[%s4906_s7 + $0x18] sm:$0xff] }
 0x277   :  { %v1506_v7 = vmax.f32 %v1499_v49, %v1500_v54  ;;  %1848 = vmatpush1.msra.mxu0 %v1692_v27  ;;  %1911 = vmatprep.mubr.f32.mxu0 %v2295_v18  ;;  %v1521_v24 = vmax.f32 %v1516_v60, 0.0  ;;  %v1491_v53 = vadd.f32 %v1490_v26, %v1396_v40  ;;  %v1501_v35 = vmax.f32 %v1199_v29, %v1489_v36  ;;  %v1947_v27 = vld [vmem:[%s4906_s7 + $0xd8] sm:$0xff]  ;;  %v1946_v54 = vld [vmem:[%s4906_s7 + $0xd0] sm:$0xff]  ;;  %v1928_v60 = vld [vmem:[%s4906_s7 + $0x40] sm:$0xff] }
 0x278   :  { %1849 = vmatprep.subr.mxu0 %v1691_v38  ;;  %v1931_v49 = vld [vmem:[%s4906_s7 + $0x58] sm:$0xff]  ;;  %v1930_v38 = vld [vmem:[%s4906_s7 + $0x50] sm:$0xff]  ;;  %v1941_v39 = vld [vmem:[%s4906_s7 + $0xa8] sm:$0xff]  ;;  %v1695_v36 = vlaneseq }
 0x279   :  { %1850 = vmatpush1.msra.mxu0 %v1690_v43  ;;  %v1517_v28 = vadd.f32 %v4610_v4, %v1506_v7  ;;  %v1502_v61 = vmax.f32 %v1201_v34, %v1491_v53  ;;  %v1945_v43 = vld [vmem:[%s4906_s7 + $0xc8] sm:$0xff]  ;;  %v1920_v26 = vld [vmem:[%s4906_s7] sm:$0xff]  ;;  %v2043_v40 = vld [vmem:[%s4907_s9 + $0x70] sm:$0xff] }
 0x27a   :  { %1851 = vmatprep.subr.mxu0 %v1689_v58  ;;  %v1929_v7 = vld [vmem:[%s4906_s7 + $0x48] sm:$0xff]  ;;  %v1944_v58 = vld [vmem:[%s4906_s7 + $0xc0] sm:$0xff]  ;;  %v2040_v11 = vld [vmem:[%s4907_s9 + $0x58] sm:$0xff] }
 0x27b   :  { %1852 = vmatpush1.msra.mxu0 %v1688_v37  ;;  %v1522_v19 = vmax.f32 %v1517_v28, 0.0  ;;  %v1507_v55 = vmax.f32 %v1501_v35, %v1502_v61  ;;  %v1943_v37 = vld [vmem:[%s4906_s7 + $0xb8] sm:$0xff]  ;;  %v1942_v28 = vld [vmem:[%s4906_s7 + $0xb0] sm:$0xff]  ;;  %v1937_v57 = vld [vmem:[%s4906_s7 + $0x88] sm:$0xff] }
 0x27c   :  { %1853 = vmatprep.subr.mxu0 %v1687_v62  ;;  %v1927_v62 = vld [vmem:[%s4906_s7 + $0x38] sm:$0xff]  ;;  %v2039_v46 = vld [vmem:[%s4907_s9 + $0x50] sm:$0xff]  ;;  %v2038_v53 = vld [vmem:[%s4907_s9 + $0x48] sm:$0xff] }
 0x27d   :  { %1854 = vmatpush1.msra.mxu0 %v1686_v17  ;;  %1840 = vmatprep.mubr.f32.mxu1 %v1522_v19  ;;  %v1518_v52 = vadd.f32 %v4610_v4, %v1507_v55  ;;  %v1951_v4 = vld [vmem:[%s4906_s7 + $0xf8] sm:$0xff]  ;;  %v1926_v17 = vld [vmem:[%s4906_s7 + $0x30] sm:$0xff]  ;;  %v1925_v19 = vld [vmem:[%s4906_s7 + $0x28] sm:$0xff] }
 0x27e   :  { %1855 = vmatprep.subr.mxu0 %v1685_v21  ;;  %1841 = vmatmul.mubr.f32.vlgmr.msra.gmra.mxu1 %v1521_v24  ;;  %v1940_v21 = vld [vmem:[%s4906_s7 + $0xa0] sm:$0xff]  ;;  %v2035_v30 = vld [vmem:[%s4907_s9 + $0x30] sm:$0xff]  ;;  %v2034_v34 = vld [vmem:[%s4907_s9 + $0x28] sm:$0xff] }
 0x27f   :  { %1856 = vmatpush1.msra.mxu0 %v1684_v13  ;;  %v1523_v56 = vmax.f32 %v1518_v52, 0.0  ;;  %2200 = vmatprep.subr.mxu1 %v1951_v4  ;;  %v1924_v24 = vld [vmem:[%s4906_s7 + $0x20] sm:$0xff]  ;;  %v1939_v13 = vld [vmem:[%s4906_s7 + $0x98] sm:$0xff] }
 0x280   :  { %1857 = vmatprep.subr.mxu0 %v1683_v0  ;;  %2201 = vmatpush3.msra.mxu1 %v1935_v16  ;;  %v1938_v0 = vld [vmem:[%s4906_s7 + $0x90] sm:$0xff]  ;;  %v240_v29 = vld [vmem:[%s4908_s6] sm:$0x3] }
 0x281   :  { %1858 = vmatpush1.msra.mxu0 %v1682_v63  ;;  %2202 = vmatprep.subr.mxu1 %v1950_v10  ;;  %v1922_v63 = vld [vmem:[%s4906_s7 + $0x10] sm:$0xff]  ;;  %v2033_v16 = vld [vmem:[%s4907_s9 + $0x20] sm:$0xff]  ;;  %v2032_v10 = vld [vmem:[%s4907_s9 + $0x18] sm:$0xff] }
 0x282   :  { %1859 = vmatprep.subr.mxu0 %v1681_v51  ;;  %2203 = vmatpush3.msra.mxu1 %v1934_v47  ;;  %v1921_v51 = vld [vmem:[%s4906_s7 + $0x8] sm:$0xff]  ;;  %v2031_v47 = vld [vmem:[%s4907_s9 + $0x10] sm:$0xff] }
 0x283   :  { %1860 = vmatpush1.msra.mxu0 %v1680_v2  ;;  %2204 = vmatprep.subr.mxu1 %v1949_v23  ;;  %v1936_v2 = vld [vmem:[%s4906_s7 + $0x80] sm:$0xff]  ;;  %v2030_v23 = vld [vmem:[%s4907_s9 + $0x8] sm:$0xff] }
 0x284   :  { %1861 = vmatprep.subr.mxu0 %v1679_v5  ;;  %2205 = vmatpush3.msra.mxu1 %v1933_v59  ;;  %v2044_v5 = vld [vmem:[%s4907_s9 + $0x78] sm:$0xff]  ;;  %v2029_v59 = vld [vmem:[%s4907_s9] sm:$0xff] }
 0x285   :  { %1862 = vmatpush1.msra.mxu0 %v1678_v1  ;;  %2206 = vmatprep.subr.mxu1 %v1948_v45  ;;  %v2042_v1 = vld [vmem:[%s4907_s9 + $0x68] sm:$0xff] }
 0x286   :  { %1863 = vmatprep.subr.mxu0 %v1677_v6  ;;  %2207 = vmatpush3.msra.mxu1 %v1932_v3  ;;  %v2041_v6 = vld [vmem:[%s4907_s9 + $0x60] sm:$0xff] }
 0x287   :  { %1864 = vmatpush1.msra.mxu0 %v1676_v31  ;;  %2208 = vmatprep.subr.mxu1 %v1947_v27  ;;  %v2037_v31 = vld [vmem:[%s4907_s9 + $0x40] sm:$0xff] }
 0x288   :  { %1865 = vmatprep.subr.mxu0 %v1675_v25  ;;  %2209 = vmatpush3.msra.mxu1 %v1931_v49  ;;  %v2036_v25 = vld [vmem:[%s4907_s9 + $0x38] sm:$0xff]  ;;  %v2198_v3 = vld [vmem:[%s4909_s8] ss:$0 sm:$0xff] }
 0x289   :  { %1866 = vmatpush1.msra.mxu0 %v1674_v50  ;;  %2210 = vmatprep.subr.mxu1 %v1946_v54  ;;  %v1696_v50 = vshrl.u32 %v1695_v36, 7 }
 0x28a   :  { %1867 = vmatprep.subr.mxu0 %v1673_v14  ;;  %2211 = vmatpush3.msra.mxu1 %v1930_v38 }
 0x28b   :  { %1868 = vmatpush1.msra.mxu0 %v1672_v48  ;;  %2212 = vmatprep.subr.mxu1 %v1945_v43  ;;  %v1697_v14 = vsub.s32 0, %v1696_v50  ;;  %v1701_v61 = vsub.s32 1, %v1696_v50  ;;  %v2199_v43 = vld [vmem:[%s4910_s10] ss:$0 sm:$0xff] }
 0x28c   :  { %1869 = vmatprep.subr.mxu0 %v1671_v12  ;;  %2213 = vmatpush3.msra.mxu1 %v1929_v7 }
 0x28d   :  { %1870 = vmatpush1.msra.mxu0 %v1670_v41  ;;  %2214 = vmatprep.subr.mxu1 %v1944_v58  ;;  %v1698_v12 = vrot.slane %v240_v29, %v1697_v14  ;;  %v1702_v41 = vrot.slane %v240_v29, %v1701_v61 }
 0x28e   :  { %1871 = vmatprep.subr.mxu0 %v1669_v33  ;;  %2215 = vmatpush3.msra.mxu1 %v1928_v60 }
 0x28f   :  { %1872 = vmatpush1.msra.mxu0 %v1668_v15  ;;  %2216 = vmatprep.subr.mxu1 %v1943_v37 }
 0x290   :  { %1873 = vmatprep.subr.mxu0 %v1667_v42  ;;  %2217 = vmatpush3.msra.mxu1 %v1927_v62 }
 0x291   :  { %1874 = vmatpush1.msra.mxu0 %v1666_v9  ;;  %2218 = vmatprep.subr.mxu1 %v1942_v28 }
 0x292   :  { %1875 = vmatprep.subr.mxu0 %v1665_v44  ;;  %2219 = vmatpush3.msra.mxu1 %v1926_v17 }
 0x293   :  { %1876 = vmatpush1.msra.mxu0 %v1664_v22  ;;  %2220 = vmatprep.subr.mxu1 %v1941_v39 }
 0x294   :  { %1877 = vmatprep.subr.mxu0 %v1663_v8  ;;  %2221 = vmatpush3.msra.mxu1 %v1925_v19 }
 0x295   :  { %1878 = vmatpush1.msra.mxu0 %v1662_v32  ;;  %2222 = vmatprep.subr.mxu1 %v1940_v21 }
 0x296   :  { %1912 = vmatmul.mubr.f32.vlgmr.msra.gmra.mxu0 %v1523_v56  ;;  %2252 = vmatprep.subr.mxu0 %v2295_v18 }
 0x297   :  { %2223 = vmatpush3.msra.mxu1 %v1924_v24  ;;  %2253 = vmatpush3.msra.mxu0 %v2044_v5 }
 0x298   :  { %2224 = vmatprep.subr.mxu1 %v1939_v13  ;;  %2254 = vmatprep.subr.mxu0 %v2295_v18 }
 0x299   :  { %2225 = vmatpush3.msra.mxu1 %v1923_v20  ;;  %2255 = vmatpush3.msra.mxu0 %v2043_v40 }
 0x29a   :  { %2226 = vmatprep.subr.mxu1 %v1938_v0  ;;  %2256 = vmatprep.subr.mxu0 %v2295_v18 }
 0x29b   :  { %2227 = vmatpush3.msra.mxu1 %v1922_v63  ;;  %2257 = vmatpush3.msra.mxu0 %v2042_v1 }
 0x29c   :  { %2228 = vmatprep.subr.mxu1 %v1937_v57  ;;  %2258 = vmatprep.subr.mxu0 %v2295_v18 }
 0x29d   :  { %2229 = vmatpush3.msra.mxu1 %v1921_v51  ;;  %2259 = vmatpush3.msra.mxu0 %v2041_v6 }
 0x29e   :  { %2230 = vmatprep.subr.mxu1 %v1936_v2  ;;  %2260 = vmatprep.subr.mxu0 %v2295_v18 }
 0x29f   :  { %2231 = vmatpush3.msra.mxu1 %v1920_v26  ;;  %2261 = vmatpush3.msra.mxu0 %v2040_v11 }
 0x2a0   :  { %2262 = vmatprep.subr.mxu0 %v2295_v18  ;;  %2284 = vmatprep.mubr.msk.f32.mxu0 %vm2296_vm1, %v2295_v18 }
 0x2a1   :  { %2263 = vmatpush3.msra.mxu0 %v2039_v46 }
 0x2a2   :  { %2264 = vmatprep.subr.mxu0 %v2295_v18 }
 0x2a3   :  { %2265 = vmatpush3.msra.mxu0 %v2038_v53 }
 0x2a4   :  { %2266 = vmatprep.subr.mxu0 %v2295_v18 }
 0x2a5   :  { %2267 = vmatpush3.msra.mxu0 %v2037_v31 }
 0x2a6   :  { %2268 = vmatprep.subr.mxu0 %v2295_v18 }
 0x2a7   :  { %2269 = vmatpush3.msra.mxu0 %v2036_v25 }
 0x2a8   :  { %2270 = vmatprep.subr.mxu0 %v2295_v18 }
 0x2a9   :  { %2271 = vmatpush3.msra.mxu0 %v2035_v30 }
 0x2aa   :  { %2272 = vmatprep.subr.mxu0 %v2295_v18 }
 0x2ab   :  { %2273 = vmatpush3.msra.mxu0 %v2034_v34 }
 0x2ac   :  { %2274 = vmatprep.subr.mxu0 %v2295_v18 }
 0x2ad   :  { %2275 = vmatpush3.msra.mxu0 %v2033_v16 }
 0x2ae   :  { %2276 = vmatprep.subr.mxu0 %v2295_v18 }
 0x2af   :  { %2277 = vmatpush3.msra.mxu0 %v2032_v10 }
 0x2b0   :  { %2278 = vmatprep.subr.mxu0 %v2295_v18 }
 0x2b1   :  { %2279 = vmatpush3.msra.mxu0 %v2031_v47 }
 0x2b2   :  { %2280 = vmatprep.subr.mxu0 %v2295_v18 }
 0x2b3   :  { %2281 = vmatpush3.msra.mxu0 %v2030_v23 }
 0x2b4   :  { %2282 = vmatprep.subr.mxu0 %v2295_v18 }
 0x2b5   :  { %2283 = vmatpush3.msra.mxu0 %v2029_v59 }
 0x336   :  { %v1771_v48 = vpop.f32.mrf.mxu0 }
 0x337   :  { %v1772_v55 = vadd.f32 %v1771_v48, %v1698_v12 }
 0x338   :  { %v1773_v33 = vpop.f32.mrf.mxu0 }
 0x339   :  { %v1774_v42 = vadd.f32 %v1773_v33, %v1702_v41 }
 0x33e   :  { %v1842_v35 = vpop.f32.mrf.mxu1 }
 0x33f   :  { %v1843_v9 = vadd.f32 %v1842_v35, %v1772_v55 }
 0x340   :  { %v1844_v15 = vpop.f32.mrf.mxu1 }
 0x341   :  { %v1845_v52 = vadd.f32 %v1844_v15, %v1774_v42 }
 0x356   :  { %v1913_v44 = vpop.f32.mrf.mxu0 }
 0x357   :  { %v1914_v22 = vadd.f32 %v1913_v44, %v1843_v9 }
 0x358   :  { %v1915_v8 = vpop.f32.mrf.mxu0 }
 0x359   :  { %v1916_v32 = vadd.f32 %v1915_v8, %v1845_v52  ;;  %v1918_v4 = vmax.f32 %v1914_v22, 0.0 }
 0x35b   :  { %v1919_v56 = vmax.f32 %v1916_v32, 0.0 }
 0x35d   :  { %2022 = vmatprep.mubr.f32.mxu1 %v1919_v56 }
 0x35e   :  { %2023 = vmatmul.mubr.f32.vlgmr.msra.gmra.mxu1 %v1918_v4 }
 0x41e   :  { %v2232_v45 = vpop.f32.mrf.mxu1 }
 0x420   :  { %v2233_v27 = vpop.f32.mrf.mxu1 }
 0x421   :  { %v2234_v49 = vadd.f32 %v2233_v27, %v2232_v45 }
 0x423   :  { %v2025_v54 = vadd.f32 %v2234_v49, %v2198_v3 }
 0x425   :  { %v2028_v38 = vmax.f32 %v2025_v54, 0.0 }
 0x427   :  { %2285 = vmatmul.mubr.f32.vlgmr.msra.gmra.mxu0 %v2028_v38 }
 0x4e7   :  { %v2117_v7 = vpop.f32.mrf.mxu0 }
 0x4e8   :  { %v2118_v58 = vadd.f32 %v2199_v43, %v2117_v7 }
 0x4e9   :  { %v2286_v60 = vpop.f32.mrf.mxu0 }
 0x4ea   :  { %2121 = vst [vmem:[%s4911_s11] sm:$0xff] %v2118_v58 }

</bundles_post_ra>
